<compile_context>
chip_gen: v7x
topology: tpu7x:2x2x1
jax: 0.10.0
libtpu: 0.0.40
codegen_flags: <defaults>
</compile_context>

<pallas_src>
import functools
import math

import jax
import jax.numpy as jnp
import numpy as np
from jax import lax
from jax.experimental import pallas as pl
from jax.experimental.pallas import tpu as pltpu

_EPS = 1e-5
_LANE = 128


def _round_up(v, m):
    return ((v + m - 1) // m) * m


# ---------------------------------------------------------------------------
# Kernel
# ---------------------------------------------------------------------------
def _bottleneck_kernel(W, hw, pad, x_ref, w1_ref, b1_ref, w2_ref, b2_ref,
                       w3_ref, b3_ref, o_ref, h1pad_ref, patch_ref):
    """One block of whole images per grid step.

    x_ref     : (rows, Cin_p)       bf16, rows = images_per_block * H * W
    w1_ref    : (Cin_p, C_p)        bf16 (BN1 scale folded)
    w2_ref    : (9*C_p, C_p)        bf16 (BN2 scale folded, taps stacked along K)
    w3_ref    : (C_p, Cout_p)       bf16 (BN3 scale folded)
    b*_ref    : (1, C)              f32 folded BN bias
    o_ref     : (rows, Cout_p)      bf16 output
    h1pad_ref : (rows+2*pad, C_p)   bf16 scratch (zero halo of `pad` rows each end)
    patch_ref : (rows, 9*C_p)       bf16 scratch (im2col-style tap buffer)
    """
    rows = x_ref.shape[0]
    C_p = h1pad_ref.shape[1]

    # Zero the halo rows. Cheap (few KiB) and done unconditionally so correctness
    # does not depend on grid-iteration order under "parallel" semantics.
    h1pad_ref[:pad, :] = jnp.zeros((pad, C_p), jnp.bfloat16)
    h1pad_ref[pad + rows:, :] = jnp.zeros((pad, C_p), jnp.bfloat16)

    x = x_ref[...]                                            # bf16 (rows, Cin_p)

    # ---- conv1 (1x1) + bn1 + relu : bf16 in, f32 accumulate ----------------
    h1 = jnp.dot(x, w1_ref[...], preferred_element_type=jnp.float32)
    h1 = jnp.maximum(h1 + b1_ref[...], 0.0).astype(jnp.bfloat16)
    h1pad_ref[pad:pad + rows, :] = h1

    # ---- boundary-validity masks from full-lane iota (no HBM mask input) ---
    # All quantities are small exact integers in f32; the +0.25/denominator
    # guard keeps floor() robust against division rounding at exact multiples.
    rid = lax.broadcasted_iota(jnp.int32, (rows, C_p), 0).astype(jnp.float32)
    fhw, fW = float(hw), float(W)
    p = rid - jnp.floor(rid / fhw + 0.25 / fhw) * fhw         # index within image
    xc = p - jnp.floor(p / fW + 0.25 / fW) * fW               # column within row
    ok_up = p >= (fW - 0.5)                                   # y > 0     (di = -1)
    ok_dn = p < (fhw - fW - 0.5)                              # y < H-1   (di = +1)
    ok_lt = xc >= 0.5                                         # x > 0     (dj = -1)
    ok_rt = xc < (fW - 1.5)                                   # x < W-1   (dj = +1)

    # ---- conv2 (3x3, stride 1, pad 1): 9 bf16 taps, one K = 9*C_p matmul ---
    for di in (-1, 0, 1):
        for dj in (-1, 0, 1):
            k = (di + 1) * 3 + (dj + 1)                       # kh*3 + kw
            if di == 0 and dj == 0:
                patch_ref[:, k * C_p:(k + 1) * C_p] = h1      # center tap as-is
                continue
            off = di * W + dj                                 # flat-row offset
            # static shifted view of the halo'd h1 scratch (plain vector loads)
            tap = h1pad_ref[pad + off:pad + off + rows, :]
            ok = None
            if di == -1:
                ok = ok_up
            elif di == 1:
                ok = ok_dn
            if dj == -1:
                ok = ok_lt if ok is None else jnp.logical_and(ok, ok_lt)
            elif dj == 1:
                ok = ok_rt if ok is None else jnp.logical_and(ok, ok_rt)
            patch_ref[:, k * C_p:(k + 1) * C_p] = jnp.where(ok, tap, 0)

    h2 = jnp.dot(patch_ref[...], w2_ref[...], preferred_element_type=jnp.float32)
    h2 = jnp.maximum(h2 + b2_ref[...], 0.0).astype(jnp.bfloat16)

    # ---- conv3 (1x1) + bn3 + identity residual + relu ----------------------
    h3 = jnp.dot(h2, w3_ref[...], preferred_element_type=jnp.float32)
    o_ref[...] = jnp.maximum(h3 + b3_ref[...] + x.astype(jnp.float32),
                             0.0).astype(o_ref.dtype)


# ---------------------------------------------------------------------------
# Blocking / VMEM sizing
# ---------------------------------------------------------------------------
def _vmem_estimate(rows, Cin_p, C_p, Cout_p, pad):
    est = 2 * rows * Cin_p * 2                   # x input, bf16, double-buffered
    est += 2 * rows * Cout_p * 2                 # bf16 output, double-buffered
    est += (rows + 2 * pad) * C_p * 2            # h1 halo scratch (bf16)
    est += rows * 9 * C_p * 2                    # patch scratch (bf16)
    est += 2 * 2 * (Cin_p * C_p + 9 * C_p * C_p + C_p * Cout_p)   # weights
    est += 2 * 4 * (2 * C_p + Cout_p)            # biases
    est += 6 * rows * max(C_p, Cout_p) * 4       # f32 temporaries / masks headroom
    return est


def _choose_blocking(N, hw, target_rows, Cin_p, C_p, Cout_p, pad,
                     vmem_budget=40 * 1024 * 1024):
    # b_blk must be a multiple of `align` so rows = b_blk*hw is sublane-aligned.
    align = 8 // math.gcd(hw, 8)
    b = max(align, ((target_rows // hw) // align) * align)
    # Keep >= 2 grid steps when the batch allows it (v7x has 2 TensorCores and
    # shards the "parallel" grid axis across them).
    half = _round_up(max(1, -(-N // 2)), align)
    b = max(align, min(b, half))
    # Shrink the block if the VMEM estimate exceeds the portable budget.
    while b > align and _vmem_estimate(b * hw, Cin_p, C_p, Cout_p, pad) > vmem_budget:
        b = max(align, ((b // 2) // align) * align)
    return b


# ---------------------------------------------------------------------------
# Wrapper
# ---------------------------------------------------------------------------
def bottleneck_forward(x_nchw, kernel_params, cout, *, target_rows=4096,
                       flat_output=False):
    """x_nchw: (N, Cin, H, W) f32 -> (N, cout, H, W) f32 (identity shortcut).

    flat_output=True returns the lane-dense (N*H*W, Cout_p) bf16 activations so
    chained bottleneck blocks can skip the NCHW round-trip entirely.
    """
    w1, b1, w2, b2, w3, b3 = kernel_params
    N, Cin, H, W = x_nchw.shape
    Cin_p, C_p = w1.shape
    Cout_p = w3.shape[1]
    assert Cin_p == Cout_p, "identity shortcut requires in_channels == out_channels*4"
    hw = H * W
    pad = _round_up(W + 1, 8)                     # sublane-aligned halo rows

    b_blk = _choose_blocking(N, hw, target_rows, Cin_p, C_p, Cout_p, pad)
    rows = b_blk * hw
    assert rows % 8 == 0
    N_pad = _round_up(N, b_blk)                   # pad batch instead of forcing b_blk|N
    grid = (N_pad // b_blk,)
    vmem_limit = int(min(max(_vmem_estimate(rows, Cin_p, C_p, Cout_p, pad)
                             + (8 << 20), 32 << 20), 64 << 20))

    # NCHW -> lane-dense (N_pad*H*W, Cin_p) bf16.
    # TODO(synk): when chaining blocks, feed the previous block's flat bf16 output
    # (flat_output=True) directly instead of paying this transpose/pad round-trip.
    x = jnp.transpose(x_nchw, (0, 2, 3, 1)).reshape(N * hw, Cin)
    x = jnp.pad(x, ((0, N_pad * hw - N * hw), (0, Cin_p - Cin))).astype(jnp.bfloat16)

    out = pl.pallas_call(
        functools.partial(_bottleneck_kernel, W, hw, pad),
        out_shape=jax.ShapeDtypeStruct((N_pad * hw, Cout_p), jnp.bfloat16),
        grid_spec=pltpu.PrefetchScalarGridSpec(
            num_scalar_prefetch=0,
            grid=grid,
            in_specs=[
                pl.BlockSpec((rows, Cin_p), lambda n: (n, 0)),
                pl.BlockSpec((Cin_p, C_p), lambda n: (0, 0)),
                pl.BlockSpec((1, C_p), lambda n: (0, 0)),
                pl.BlockSpec((9 * C_p, C_p), lambda n: (0, 0)),
                pl.BlockSpec((1, C_p), lambda n: (0, 0)),
                pl.BlockSpec((C_p, Cout_p), lambda n: (0, 0)),
                pl.BlockSpec((1, Cout_p), lambda n: (0, 0)),
            ],
            out_specs=pl.BlockSpec((rows, Cout_p), lambda n: (n, 0)),
            scratch_shapes=[
                pltpu.VMEM((rows + 2 * pad, C_p), jnp.bfloat16),   # h1 + halo
                pltpu.VMEM((rows, 9 * C_p), jnp.bfloat16),         # im2col patches
            ],
        ),
        compiler_params=pltpu.CompilerParams(
            # image blocks are independent -> megacore-shardable on v7x
            dimension_semantics=("parallel",),
            vmem_limit_bytes=vmem_limit,
        ),
    )(x, w1, b1, w2, b2, w3, b3)

    if flat_output:
        return out[:N * hw]
    out = out[:N * hw, :cout].astype(jnp.float32).reshape(N, H, W, cout)
    return jnp.transpose(out, (0, 3, 1, 2))


# ---------------------------------------------------------------------------
# Deterministic parameter construction (PyTorch OIHW layout + BN stats)
# ---------------------------------------------------------------------------
def init_torch_params(key, in_channels, out_channels, groups=1, base_channels=64):
    channels = int(out_channels * (base_channels / 64.0)) * groups
    cout = out_channels * 4  # expansion
    ks = jax.random.split(key, 6)

    w1_t = jax.random.normal(ks[0], (channels, in_channels, 1, 1), jnp.float32) \
        * (1.0 / np.sqrt(in_channels))
    w2_t = jax.random.normal(ks[1], (channels, channels, 3, 3), jnp.float32) \
        * (1.0 / np.sqrt(9.0 * channels))
    w3_t = jax.random.normal(ks[2], (cout, channels, 1, 1), jnp.float32) \
        * (1.0 / np.sqrt(channels))

    def bn(k, c):
        k1, k2, k3, k4 = jax.random.split(k, 4)
        gamma = jax.random.uniform(k1, (c,), jnp.float32, 0.5, 1.5)
        beta = jax.random.normal(k2, (c,), jnp.float32) * 0.1
        mean = jax.random.normal(k3, (c,), jnp.float32) * 0.1
        var = jax.random.uniform(k4, (c,), jnp.float32, 0.5, 1.5)
        return gamma, beta, mean, var

    return (w1_t, bn(ks[3], channels), w2_t, bn(ks[4], channels), w3_t, bn(ks[5], cout))


def fold_for_kernel(torch_params):
    """Fold BN scale into the conv weights, pad channels to 128, cast to bf16."""
    w1_t, bn1, w2_t, bn2, w3_t, bn3 = torch_params
    C, Cin = w1_t.shape[0], w1_t.shape[1]
    Cout = w3_t.shape[0]
    Cin_p, C_p, Cout_p = (_round_up(c, _LANE) for c in (Cin, C, Cout))

    def fold(bn):
        gamma, beta, mean, var = bn
        scale = gamma / jnp.sqrt(var + _EPS)
        return scale, beta - mean * scale

    s1, b1 = fold(bn1)
    s2, b2 = fold(bn2)
    s3, b3 = fold(bn3)

    w1 = jnp.transpose(w1_t[:, :, 0, 0], (1, 0)) * s1[None, :]          # (Cin, C)
    w2 = jnp.transpose(w2_t, (2, 3, 1, 0)) * s2[None, None, None, :]    # (kh,kw,Ci,Co)
    w3 = jnp.transpose(w3_t[:, :, 0, 0], (1, 0)) * s3[None, :]          # (C, Cout)

    def pad2(a, r, c):
        return jnp.pad(a, ((0, r - a.shape[0]), (0, c - a.shape[1])))

    w1 = pad2(w1, Cin_p, C_p).astype(jnp.bfloat16)
    w2 = jnp.pad(w2, ((0, 0), (0, 0), (0, C_p - C), (0, C_p - C)))
    w2 = w2.reshape(9 * C_p, C_p).astype(jnp.bfloat16)   # taps stacked along K
    w3 = pad2(w3, C_p, Cout_p).astype(jnp.bfloat16)

    def padb(b, c):
        return jnp.pad(b, (0, c - b.shape[0]))[None, :].astype(jnp.float32)

    return (w1, padb(b1, C_p), w2, padb(b2, C_p), w3, padb(b3, Cout_p))


# ---------------------------------------------------------------------------
# References
# ---------------------------------------------------------------------------
def reference_forward(x, torch_params):
    """Pure-JAX f32 mirror of the PyTorch forward (inference-mode BN)."""
    w1_t, bn1, w2_t, bn2, w3_t, bn3 = torch_params
    dn = ("NCHW", "OIHW", "NCHW")
    hp = lax.Precision.HIGHEST

    def bn_apply(y, bn):
        gamma, beta, mean, var = bn
        inv = gamma / jnp.sqrt(var + _EPS)
        return (y - mean[None, :, None, None]) * inv[None, :, None, None] \
            + beta[None, :, None, None]

    out = lax.conv_general_dilated(x, w1_t, (1, 1), "VALID",
                                   dimension_numbers=dn, precision=hp)
    out = jnp.maximum(bn_apply(out, bn1), 0.0)
    out = lax.conv_general_dilated(out, w2_t, (1, 1), ((1, 1), (1, 1)),
                                   dimension_numbers=dn, precision=hp)
    out = jnp.maximum(bn_apply(out, bn2), 0.0)
    out = lax.conv_general_dilated(out, w3_t, (1, 1), "VALID",
                                   dimension_numbers=dn, precision=hp)
    out = bn_apply(out, bn3)
    return jnp.maximum(out + x, 0.0)


def bf16_reference(x_nchw, kernel_params, cout):
    """Pure-JAX emulation using the exact folded/padded bf16 params (tight check)."""
    w1, b1, w2, b2, w3, b3 = kernel_params
    Cin_p, C_p = w1.shape
    N, Cin, H, W = x_nchw.shape
    x = jnp.transpose(x_nchw, (0, 2, 3, 1))
    x = jnp.pad(x, ((0, 0), (0, 0), (0, 0), (0, Cin_p - Cin))).astype(jnp.bfloat16)
    h = jnp.einsum("nhwc,cd->nhwd", x, w1, preferred_element_type=jnp.float32)
    h = jnp.maximum(h + b1[0], 0.0)
    h = lax.conv_general_dilated(
        h.astype(jnp.bfloat16), w2.reshape(3, 3, C_p, C_p), (1, 1),
        ((1, 1), (1, 1)), dimension_numbers=("NHWC", "HWIO", "NHWC"),
        preferred_element_type=jnp.float32)
    h = jnp.maximum(h + b2[0], 0.0)
    h = jnp.einsum("nhwc,cd->nhwd", h.astype(jnp.bfloat16), w3,
                   preferred_element_type=jnp.float32)
    out = jnp.maximum(h + b3[0] + x.astype(jnp.float32), 0.0)
    out = out.astype(jnp.bfloat16).astype(jnp.float32)   # kernel output is bf16
    return jnp.transpose(out, (0, 3, 1, 2))[:, :cout]


# ---------------------------------------------------------------------------
if __name__ == "__main__":
    # Small shapes consistent with the module; identity shortcut requires
    # in_channels == out_channels * expansion. N=4 exercises both the
    # multi-image-per-block path (b_blk=2) and a 2-step grid.
    N, H, W = 4, 8, 8
    in_channels, out_channels = 64, 16          # channels = 16, cout = 64
    cout = out_channels * 4

    key = jax.random.PRNGKey(0)
    kx, kp = jax.random.split(key)
    x = jax.random.normal(kx, (N, in_channels, H, W), jnp.float32)

    torch_params = init_torch_params(kp, in_channels, out_channels)
    kernel_params = fold_for_kernel(torch_params)

    out = bottleneck_forward(x, kernel_params, cout)
    out = jax.block_until_ready(out)
    assert out.shape == (N, cout, H, W)

    # Tight check: identical folded bf16 weights / casts -> only accumulation
    # order and final bf16 rounding differ.
    ref_b = bf16_reference(x, kernel_params, cout)
    np.testing.assert_allclose(np.asarray(out), np.asarray(ref_b),
                               rtol=2e-2, atol=2e-2)

    # Loose check vs. the f32 PyTorch-semantics reference (bf16 weights/output
    # in the kernel, so allow bf16-level noise through three chained convs).
    ref_f = reference_forward(x, torch_params)
    np.testing.assert_allclose(np.asarray(out), np.asarray(ref_f),
                               rtol=1e-1, atol=1e-1)

    print("KERNEL_OK")
</pallas_src>

<mosaic_0001>
module attributes {stable_mosaic.version = 11 : i64} {
  func.func @_bottleneck_kernel(%arg0: i32, %arg1: memref<128x128xbf16, #tpu.memory_space<vmem>>, %arg2: memref<128x128xbf16, #tpu.memory_space<vmem>>, %arg3: memref<1x128xf32, #tpu.memory_space<vmem>>, %arg4: memref<1152x128xbf16, #tpu.memory_space<vmem>>, %arg5: memref<1x128xf32, #tpu.memory_space<vmem>>, %arg6: memref<128x128xbf16, #tpu.memory_space<vmem>>, %arg7: memref<1x128xf32, #tpu.memory_space<vmem>>, %arg8: memref<128x128xbf16, #tpu.memory_space<vmem>>, %arg9: memref<160x128xbf16, #tpu.memory_space<vmem>>, %arg10: memref<128x1152xbf16, #tpu.memory_space<vmem>>) attributes {dimension_semantics = [#tpu.dimension_semantics<parallel>], iteration_bounds = array<i64: 2>, scalar_prefetch = 0 : i64, scratch_operands = 2 : i64, tpu.core_type = #tpu.core_type<tc>, window_params = [{transform_indices = @transform_0, window_bounds = array<i64: 128, 128>}, {pipeline_mode = #tpu.pipeline_mode<synchronous>, transform_indices = @transform_1, window_bounds = array<i64: 128, 128>}, {pipeline_mode = #tpu.pipeline_mode<synchronous>, transform_indices = @transform_2, window_bounds = array<i64: 1, 128>}, {pipeline_mode = #tpu.pipeline_mode<synchronous>, transform_indices = @transform_3, window_bounds = array<i64: 1152, 128>}, {pipeline_mode = #tpu.pipeline_mode<synchronous>, transform_indices = @transform_4, window_bounds = array<i64: 1, 128>}, {pipeline_mode = #tpu.pipeline_mode<synchronous>, transform_indices = @transform_5, window_bounds = array<i64: 128, 128>}, {pipeline_mode = #tpu.pipeline_mode<synchronous>, transform_indices = @transform_6, window_bounds = array<i64: 1, 128>}, {transform_indices = @transform_7, window_bounds = array<i64: 128, 128>}]} {
    %cst = arith.constant 0.000000e+00 : bf16
    %0 = vector.broadcast %cst : bf16 to vector<16x128xbf16>
    %c0 = arith.constant 0 : index
    %c0_0 = arith.constant 0 : index
    %1 = vector.load %arg9[%c0, %c0_0] : memref<160x128xbf16, #tpu.memory_space<vmem>>, vector<16x128xbf16>
    tpu.vector_store %arg9[%c0, %c0_0], %0 {strides = array<i32>} : memref<160x128xbf16, #tpu.memory_space<vmem>>, vector<16x128xbf16>,
    %cst_1 = arith.constant 0.000000e+00 : bf16
    %2 = vector.broadcast %cst_1 : bf16 to vector<16x128xbf16>
    %c144 = arith.constant 144 : index
    %c0_2 = arith.constant 0 : index
    %3 = vector.load %arg9[%c144, %c0_2] : memref<160x128xbf16, #tpu.memory_space<vmem>>, vector<16x128xbf16>
    tpu.vector_store %arg9[%c144, %c0_2], %2 {strides = array<i32>} : memref<160x128xbf16, #tpu.memory_space<vmem>>, vector<16x128xbf16>,
    %c0_3 = arith.constant 0 : index
    %c0_4 = arith.constant 0 : index
    %4 = vector.load %arg1[%c0_3, %c0_4] : memref<128x128xbf16, #tpu.memory_space<vmem>>, vector<128x128xbf16>
    %c0_5 = arith.constant 0 : index
    %c0_6 = arith.constant 0 : index
    %5 = vector.load %arg2[%c0_5, %c0_6] : memref<128x128xbf16, #tpu.memory_space<vmem>>, vector<128x128xbf16>
    %cst_7 = arith.constant dense<0.000000e+00> : vector<128x128xf32>
    %6 = tpu.matmul %4, %5, %cst_7 {dimension_numbers = #tpu.dot_dimension_numbers<[1], [0], [0], [1], [0, 0, 1, 1], [], []>} : vector<128x128xbf16>, vector<128x128xbf16>, vector<128x128xf32> -> vector<128x128xf32>
    %c0_8 = arith.constant 0 : index
    %c0_9 = arith.constant 0 : index
    %7 = vector.load %arg3[%c0_8, %c0_9] : memref<1x128xf32, #tpu.memory_space<vmem>>, vector<1x128xf32>
    %8 = vector.broadcast %7 : vector<1x128xf32> to vector<128x128xf32>
    %9 = arith.addf %6, %8 : vector<128x128xf32>
    %cst_10 = arith.constant 0.000000e+00 : f32
    %10 = vector.broadcast %cst_10 : f32 to vector<128x128xf32>
    %11 = arith.maximumf %9, %10 : vector<128x128xf32>
    %12 = arith.truncf %11 : vector<128x128xf32> to vector<128x128xbf16>
    %c16 = arith.constant 16 : index
    %c0_11 = arith.constant 0 : index
    %13 = vector.load %arg9[%c16, %c0_11] : memref<160x128xbf16, #tpu.memory_space<vmem>>, vector<128x128xbf16>
    tpu.vector_store %arg9[%c16, %c0_11], %12 {strides = array<i32>} : memref<160x128xbf16, #tpu.memory_space<vmem>>, vector<128x128xbf16>,
    %14 = tpu.iota {dimensions = array<i32: 0>} : vector<128x128xi32>
    %15 = arith.sitofp %14 : vector<128x128xi32> to vector<128x128xf32>
    %cst_12 = arith.constant 6.400000e+01 : f32
    %16 = vector.broadcast %cst_12 : f32 to vector<128x128xf32>
    %17 = arith.divf %15, %16 : vector<128x128xf32>
    %cst_13 = arith.constant 3.906250e-03 : f32
    %18 = vector.broadcast %cst_13 : f32 to vector<128x128xf32>
    %19 = arith.addf %17, %18 : vector<128x128xf32>
    %20 = math.floor %19 : vector<128x128xf32>
    %cst_14 = arith.constant 6.400000e+01 : f32
    %21 = vector.broadcast %cst_14 : f32 to vector<128x128xf32>
    %22 = arith.mulf %20, %21 : vector<128x128xf32>
    %23 = arith.subf %15, %22 : vector<128x128xf32>
    %cst_15 = arith.constant 8.000000e+00 : f32
    %24 = vector.broadcast %cst_15 : f32 to vector<128x128xf32>
    %25 = arith.divf %23, %24 : vector<128x128xf32>
    %cst_16 = arith.constant 3.125000e-02 : f32
    %26 = vector.broadcast %cst_16 : f32 to vector<128x128xf32>
    %27 = arith.addf %25, %26 : vector<128x128xf32>
    %28 = math.floor %27 : vector<128x128xf32>
    %cst_17 = arith.constant 8.000000e+00 : f32
    %29 = vector.broadcast %cst_17 : f32 to vector<128x128xf32>
    %30 = arith.mulf %28, %29 : vector<128x128xf32>
    %31 = arith.subf %23, %30 : vector<128x128xf32>
    %cst_18 = arith.constant 7.500000e+00 : f32
    %32 = vector.broadcast %cst_18 : f32 to vector<128x128xf32>
    %33 = arith.cmpf oge, %23, %32 : vector<128x128xf32>
    %cst_19 = arith.constant 5.550000e+01 : f32
    %34 = vector.broadcast %cst_19 : f32 to vector<128x128xf32>
    %35 = arith.cmpf olt, %23, %34 : vector<128x128xf32>
    %cst_20 = arith.constant 5.000000e-01 : f32
    %36 = vector.broadcast %cst_20 : f32 to vector<128x128xf32>
    %37 = arith.cmpf oge, %31, %36 : vector<128x128xf32>
    %cst_21 = arith.constant 6.500000e+00 : f32
    %38 = vector.broadcast %cst_21 : f32 to vector<128x128xf32>
    %39 = arith.cmpf olt, %31, %38 : vector<128x128xf32>
    %c7 = arith.constant 7 : index
    %c0_22 = arith.constant 0 : index
    %40 = vector.load %arg9[%c7, %c0_22] : memref<160x128xbf16, #tpu.memory_space<vmem>>, vector<128x128xbf16>
    %41 = arith.andi %33, %37 : vector<128x128xi1>
    %c0_i32 = arith.constant 0 : i32
    %42 = arith.sitofp %c0_i32 : i32 to bf16
    %43 = vector.broadcast %42 : bf16 to vector<128x128xbf16>
    %44 = arith.select %41, %40, %43 : vector<128x128xi1>, vector<128x128xbf16>
    %c0_23 = arith.constant 0 : index
    %c0_24 = arith.constant 0 : index
    %45 = vector.load %arg10[%c0_23, %c0_24] : memref<128x1152xbf16, #tpu.memory_space<vmem>>, vector<128x128xbf16>
    tpu.vector_store %arg10[%c0_23, %c0_24], %44 {strides = array<i32>} : memref<128x1152xbf16, #tpu.memory_space<vmem>>, vector<128x128xbf16>,
    %c8 = arith.constant 8 : index
    %c0_25 = arith.constant 0 : index
    %46 = vector.load %arg9[%c8, %c0_25] : memref<160x128xbf16, #tpu.memory_space<vmem>>, vector<128x128xbf16>
    %c0_i32_26 = arith.constant 0 : i32
    %47 = arith.sitofp %c0_i32_26 : i32 to bf16
    %48 = vector.broadcast %47 : bf16 to vector<128x128xbf16>
    %49 = arith.select %33, %46, %48 : vector<128x128xi1>, vector<128x128xbf16>
    %c0_27 = arith.constant 0 : index
    %c128 = arith.constant 128 : index
    %50 = vector.load %arg10[%c0_27, %c128] : memref<128x1152xbf16, #tpu.memory_space<vmem>>, vector<128x128xbf16>
    tpu.vector_store %arg10[%c0_27, %c128], %49 {strides = array<i32>} : memref<128x1152xbf16, #tpu.memory_space<vmem>>, vector<128x128xbf16>,
    %c9 = arith.constant 9 : index
    %c0_28 = arith.constant 0 : index
    %51 = vector.load %arg9[%c9, %c0_28] : memref<160x128xbf16, #tpu.memory_space<vmem>>, vector<128x128xbf16>
    %52 = arith.andi %33, %39 : vector<128x128xi1>
    %c0_i32_29 = arith.constant 0 : i32
    %53 = arith.sitofp %c0_i32_29 : i32 to bf16
    %54 = vector.broadcast %53 : bf16 to vector<128x128xbf16>
    %55 = arith.select %52, %51, %54 : vector<128x128xi1>, vector<128x128xbf16>
    %c0_30 = arith.constant 0 : index
    %c256 = arith.constant 256 : index
    %56 = vector.load %arg10[%c0_30, %c256] : memref<128x1152xbf16, #tpu.memory_space<vmem>>, vector<128x128xbf16>
    tpu.vector_store %arg10[%c0_30, %c256], %55 {strides = array<i32>} : memref<128x1152xbf16, #tpu.memory_space<vmem>>, vector<128x128xbf16>,
    %c15 = arith.constant 15 : index
    %c0_31 = arith.constant 0 : index
    %57 = vector.load %arg9[%c15, %c0_31] : memref<160x128xbf16, #tpu.memory_space<vmem>>, vector<128x128xbf16>
    %c0_i32_32 = arith.constant 0 : i32
    %58 = arith.sitofp %c0_i32_32 : i32 to bf16
    %59 = vector.broadcast %58 : bf16 to vector<128x128xbf16>
    %60 = arith.select %37, %57, %59 : vector<128x128xi1>, vector<128x128xbf16>
    %c0_33 = arith.constant 0 : index
    %c384 = arith.constant 384 : index
    %61 = vector.load %arg10[%c0_33, %c384] : memref<128x1152xbf16, #tpu.memory_space<vmem>>, vector<128x128xbf16>
    tpu.vector_store %arg10[%c0_33, %c384], %60 {strides = array<i32>} : memref<128x1152xbf16, #tpu.memory_space<vmem>>, vector<128x128xbf16>,
    %c0_34 = arith.constant 0 : index
    %c512 = arith.constant 512 : index
    %62 = vector.load %arg10[%c0_34, %c512] : memref<128x1152xbf16, #tpu.memory_space<vmem>>, vector<128x128xbf16>
    tpu.vector_store %arg10[%c0_34, %c512], %12 {strides = array<i32>} : memref<128x1152xbf16, #tpu.memory_space<vmem>>, vector<128x128xbf16>,
    %c17 = arith.constant 17 : index
    %c0_35 = arith.constant 0 : index
    %63 = vector.load %arg9[%c17, %c0_35] : memref<160x128xbf16, #tpu.memory_space<vmem>>, vector<128x128xbf16>
    %c0_i32_36 = arith.constant 0 : i32
    %64 = arith.sitofp %c0_i32_36 : i32 to bf16
    %65 = vector.broadcast %64 : bf16 to vector<128x128xbf16>
    %66 = arith.select %39, %63, %65 : vector<128x128xi1>, vector<128x128xbf16>
    %c0_37 = arith.constant 0 : index
    %c640 = arith.constant 640 : index
    %67 = vector.load %arg10[%c0_37, %c640] : memref<128x1152xbf16, #tpu.memory_space<vmem>>, vector<128x128xbf16>
    tpu.vector_store %arg10[%c0_37, %c640], %66 {strides = array<i32>} : memref<128x1152xbf16, #tpu.memory_space<vmem>>, vector<128x128xbf16>,
    %c23 = arith.constant 23 : index
    %c0_38 = arith.constant 0 : index
    %68 = vector.load %arg9[%c23, %c0_38] : memref<160x128xbf16, #tpu.memory_space<vmem>>, vector<128x128xbf16>
    %69 = arith.andi %35, %37 : vector<128x128xi1>
    %c0_i32_39 = arith.constant 0 : i32
    %70 = arith.sitofp %c0_i32_39 : i32 to bf16
    %71 = vector.broadcast %70 : bf16 to vector<128x128xbf16>
    %72 = arith.select %69, %68, %71 : vector<128x128xi1>, vector<128x128xbf16>
    %c0_40 = arith.constant 0 : index
    %c768 = arith.constant 768 : index
    %73 = vector.load %arg10[%c0_40, %c768] : memref<128x1152xbf16, #tpu.memory_space<vmem>>, vector<128x128xbf16>
    tpu.vector_store %arg10[%c0_40, %c768], %72 {strides = array<i32>} : memref<128x1152xbf16, #tpu.memory_space<vmem>>, vector<128x128xbf16>,
    %c24 = arith.constant 24 : index
    %c0_41 = arith.constant 0 : index
    %74 = vector.load %arg9[%c24, %c0_41] : memref<160x128xbf16, #tpu.memory_space<vmem>>, vector<128x128xbf16>
    %c0_i32_42 = arith.constant 0 : i32
    %75 = arith.sitofp %c0_i32_42 : i32 to bf16
    %76 = vector.broadcast %75 : bf16 to vector<128x128xbf16>
    %77 = arith.select %35, %74, %76 : vector<128x128xi1>, vector<128x128xbf16>
    %c0_43 = arith.constant 0 : index
    %c896 = arith.constant 896 : index
    %78 = vector.load %arg10[%c0_43, %c896] : memref<128x1152xbf16, #tpu.memory_space<vmem>>, vector<128x128xbf16>
    tpu.vector_store %arg10[%c0_43, %c896], %77 {strides = array<i32>} : memref<128x1152xbf16, #tpu.memory_space<vmem>>, vector<128x128xbf16>,
    %c25 = arith.constant 25 : index
    %c0_44 = arith.constant 0 : index
    %79 = vector.load %arg9[%c25, %c0_44] : memref<160x128xbf16, #tpu.memory_space<vmem>>, vector<128x128xbf16>
    %80 = arith.andi %35, %39 : vector<128x128xi1>
    %c0_i32_45 = arith.constant 0 : i32
    %81 = arith.sitofp %c0_i32_45 : i32 to bf16
    %82 = vector.broadcast %81 : bf16 to vector<128x128xbf16>
    %83 = arith.select %80, %79, %82 : vector<128x128xi1>, vector<128x128xbf16>
    %c0_46 = arith.constant 0 : index
    %c1024 = arith.constant 1024 : index
    %84 = vector.load %arg10[%c0_46, %c1024] : memref<128x1152xbf16, #tpu.memory_space<vmem>>, vector<128x128xbf16>
    tpu.vector_store %arg10[%c0_46, %c1024], %83 {strides = array<i32>} : memref<128x1152xbf16, #tpu.memory_space<vmem>>, vector<128x128xbf16>,
    %c0_47 = arith.constant 0 : index
    %c0_48 = arith.constant 0 : index
    %85 = vector.load %arg10[%c0_47, %c0_48] : memref<128x1152xbf16, #tpu.memory_space<vmem>>, vector<128x1152xbf16>
    %c0_49 = arith.constant 0 : index
    %c0_50 = arith.constant 0 : index
    %86 = vector.load %arg4[%c0_49, %c0_50] : memref<1152x128xbf16, #tpu.memory_space<vmem>>, vector<1152x128xbf16>
    %cst_51 = arith.constant dense<0.000000e+00> : vector<128x128xf32>
    %87 = tpu.matmul %85, %86, %cst_51 {dimension_numbers = #tpu.dot_dimension_numbers<[1], [0], [0], [1], [0, 0, 1, 1], [], []>} : vector<128x1152xbf16>, vector<1152x128xbf16>, vector<128x128xf32> -> vector<128x128xf32>
    %c0_52 = arith.constant 0 : index
    %c0_53 = arith.constant 0 : index
    %88 = vector.load %arg5[%c0_52, %c0_53] : memref<1x128xf32, #tpu.memory_space<vmem>>, vector<1x128xf32>
    %89 = vector.broadcast %88 : vector<1x128xf32> to vector<128x128xf32>
    %90 = arith.addf %87, %89 : vector<128x128xf32>
    %cst_54 = arith.constant 0.000000e+00 : f32
    %91 = vector.broadcast %cst_54 : f32 to vector<128x128xf32>
    %92 = arith.maximumf %90, %91 : vector<128x128xf32>
    %93 = arith.truncf %92 : vector<128x128xf32> to vector<128x128xbf16>
    %c0_55 = arith.constant 0 : index
    %c0_56 = arith.constant 0 : index
    %94 = vector.load %arg6[%c0_55, %c0_56] : memref<128x128xbf16, #tpu.memory_space<vmem>>, vector<128x128xbf16>
    %cst_57 = arith.constant dense<0.000000e+00> : vector<128x128xf32>
    %95 = tpu.matmul %93, %94, %cst_57 {dimension_numbers = #tpu.dot_dimension_numbers<[1], [0], [0], [1], [0, 0, 1, 1], [], []>} : vector<128x128xbf16>, vector<128x128xbf16>, vector<128x128xf32> -> vector<128x128xf32>
    %c0_58 = arith.constant 0 : index
    %c0_59 = arith.constant 0 : index
    %96 = vector.load %arg7[%c0_58, %c0_59] : memref<1x128xf32, #tpu.memory_space<vmem>>, vector<1x128xf32>
    %97 = vector.broadcast %96 : vector<1x128xf32> to vector<128x128xf32>
    %98 = arith.addf %95, %97 : vector<128x128xf32>
    %99 = arith.extf %4 : vector<128x128xbf16> to vector<128x128xf32>
    %100 = arith.addf %98, %99 : vector<128x128xf32>
    %cst_60 = arith.constant 0.000000e+00 : f32
    %101 = vector.broadcast %cst_60 : f32 to vector<128x128xf32>
    %102 = arith.maximumf %100, %101 : vector<128x128xf32>
    %103 = arith.truncf %102 : vector<128x128xf32> to vector<128x128xbf16>
    %c0_61 = arith.constant 0 : index
    %c0_62 = arith.constant 0 : index
    %104 = vector.load %arg8[%c0_61, %c0_62] : memref<128x128xbf16, #tpu.memory_space<vmem>>, vector<128x128xbf16>
    tpu.vector_store %arg8[%c0_61, %c0_62], %103 {strides = array<i32>} : memref<128x128xbf16, #tpu.memory_space<vmem>>, vector<128x128xbf16>,
    return
  }
  func.func @transform_0(%arg0: i32) -> (i32, i32) {
    %c0_i32 = arith.constant 0 : i32
    %c0_i32_0 = arith.constant 0 : i32
    return %arg0, %c0_i32 : i32, i32
  }
  func.func @transform_1(%arg0: i32) -> (i32, i32) {
    %c0_i32 = arith.constant 0 : i32
    %c0_i32_0 = arith.constant 0 : i32
    %c0_i32_1 = arith.constant 0 : i32
    return %c0_i32, %c0_i32_0 : i32, i32
  }
  func.func @transform_2(%arg0: i32) -> (i32, i32) {
    %c0_i32 = arith.constant 0 : i32
    %c0_i32_0 = arith.constant 0 : i32
    %c0_i32_1 = arith.constant 0 : i32
    return %c0_i32, %c0_i32_0 : i32, i32
  }
  func.func @transform_3(%arg0: i32) -> (i32, i32) {
    %c0_i32 = arith.constant 0 : i32
    %c0_i32_0 = arith.constant 0 : i32
    %c0_i32_1 = arith.constant 0 : i32
    return %c0_i32, %c0_i32_0 : i32, i32
  }
  func.func @transform_4(%arg0: i32) -> (i32, i32) {
    %c0_i32 = arith.constant 0 : i32
    %c0_i32_0 = arith.constant 0 : i32
    %c0_i32_1 = arith.constant 0 : i32
    return %c0_i32, %c0_i32_0 : i32, i32
  }
  func.func @transform_5(%arg0: i32) -> (i32, i32) {
    %c0_i32 = arith.constant 0 : i32
    %c0_i32_0 = arith.constant 0 : i32
    %c0_i32_1 = arith.constant 0 : i32
    return %c0_i32, %c0_i32_0 : i32, i32
  }
  func.func @transform_6(%arg0: i32) -> (i32, i32) {
    %c0_i32 = arith.constant 0 : i32
    %c0_i32_0 = arith.constant 0 : i32
    %c0_i32_1 = arith.constant 0 : i32
    return %c0_i32, %c0_i32_0 : i32, i32
  }
  func.func @transform_7(%arg0: i32) -> (i32, i32) {
    %c0_i32 = arith.constant 0 : i32
    %c0_i32_0 = arith.constant 0 : i32
    return %arg0, %c0_i32 : i32, i32
  }
}

</mosaic_0001>

<bundles_post_ra>
// kernel: tpu_custom_call.1
= control target key start
LH: loop header
LB: loop body
LE: loop exit
PB: predicated region body
PF: predicated region fallthrough
CT: control target
= control target key end

     0   :  { %12 = vsyncpa [#allocation5], 0  ;;  %s8536_s0 = inlined_call_operand.hbm [shape: bf16[256,128], index: 0, kind: input, shape index: {}]   ;;  %s8537_s1 = inlined_call_operand.hbm [shape: bf16[128,128], index: 1, kind: input, shape index: {}]   ;;  %s8538_s2 = inlined_call_operand.vmem [shape: f32[1,128], index: 2, kind: input, shape index: {}]   ;;  %s8539_s3 = inlined_call_operand.hbm [shape: bf16[1152,128], index: 3, kind: input, shape index: {}]   ;;  %s8540_s4 = inlined_call_operand.vmem [shape: f32[1,128], index: 4, kind: input, shape index: {}]   ;;  %s8541_s5 = inlined_call_operand.hbm [shape: bf16[128,128], index: 5, kind: input, shape index: {}]   ;;  %s8542_s6 = inlined_call_operand.vmem [shape: f32[1,128], index: 6, kind: input, shape index: {}]   ;;  %s8543_s7 = inlined_call_operand.hbm [shape: bf16[256,128], index: 7, kind: output, shape index: {}]  }
   0x1   :  { %14 = vsyncpa [#allocation5 + $0x1], 0 }
   0x2   :  { %15 = vsyncpa [#allocation8], 0 }
   0x3   :  { %16 = vsyncpa [#allocation11], 0 }
   0x4   :  { %17 = vsyncpa [#allocation6], 0 }
   0x5   :  { %19 = vsyncpa [#allocation6 + $0x1], 0  ;;  %s5361_s24 = smov 0   ;;  %s5363_s25 = smov 0  }
   0x6   :  { %s5365_s26 = smov 0   ;;  %s5367_s27 = smov 0  }
   0x7 LB: > { %s5382_s28 = sadd.s32 4294967295, %s5309_s27   ;;  %s4236_s29 = sadd.s32 4294967294, %s5309_s27   ;;  %s5309_s27 = sphi %s5367_s27, %s9302_s27   ;;  %s5305_s26 = sphi %s5365_s26, %s9301_s26   ;;  %s5301_s25 = sphi %s5363_s25, %s9300_s25   ;;  %s5297_s24 = sphi %s5361_s24, %s9299_s24  }
   0x8   : > { %p45_p0 = scmp.ne.s32.totalorder %s5301_s25, %s5297_s24  ;;  %p8544_p1 = scmp.eq.s32.totalorder %s5382_s28, 0 }
   0x9   : > { %p201_p3 = scmp.eq.s32.totalorder %s4236_s29, 1  ;;  %p4237_p5 = scmp.ge.s32.totalorder %s5309_s27, 1 }
   0xa   : > { %p5391_p4 = por %p8544_p1, %p45_p0  ;;  %p208_p7 = scmp.lt.s32.totalorder %s5309_s27, 3 }
   0xb   : > { %p5396_p6 = por %p201_p3, %p45_p0  ;;  %s5311_s10 = smov [#allocation7]  }
   0xc   : > { %s8667_s30 = scalar_select %p5391_p4, 1, 0 }
   0xd   : > { %s8668_s8 = scalar_select %p5396_p6, 1, 0 }
   0xe   : > { %p5401_p8 = pnand %p4237_p5, %p208_p7  ;;  %s220_s11 = sshll.u32 %s5311_s10, 4  ;;  %s5405_s11 = int_to_ptr.vmem [resolvable:$true] %s220_s11 }
   0xf   : > { %8669 = sst [smem:[#allocation17_spill]] %s8668_s8  ;;  %s5312_s13 = smov [#allocation9]  }
  0x10   : > { %s8670_s9 = scalar_select %p5401_p8, 1, 0 }
  0x11   : > { %p4934_p9 = pneg %p5401_p8  ;;  %s236_s14 = sshll.u32 %s5312_s13, 4  ;;  %s5416_s14 = int_to_ptr.vmem [resolvable:$true] %s236_s14 }
  0x12   : > { %s5313_s15 = smov [#allocation10]   ;;  %s5121_s19 = scalar_lea.hbm %s8537_s1, 1024 }
  0x13   : > { %p5412_p11 = pnand %p4934_p9, %p8544_p1  ;;  %s5418_s16 = sshll.u32 %s5313_s15, 4  ;;  %s253_s16 = int_to_ptr.vmem [resolvable:$true] %s5418_s16 }
  0x14   : > { %p5122_p12 = scmp.ne.s32.totalorder %s8537_s1, %s5121_s19  ;;  %p5128_p5 = scmp.lt.u32.totalorder %s5121_s19, %s8537_s1 }
  0x15   : > { %p5428_p13 = pneg %p5412_p11 }
  0x17   : > { %p5124_p0 = pnand %p5428_p13, %p5122_p12 }
  0x19   : > { %p5125_p3 = pneg %p5124_p0 }
  0x1b   : > { %p5130_p7 = pnand %p5128_p5, %p5125_p3 }
  0x1d   : > { %5133 = shalt.err (!%p5130_p7)
}
  0x1e   : > { %s5134_s10 = scalar_lea.vmem %s5405_s11, 1024  ;;  %p5142_p2 = scmp.lt.s32.totalorder %s5405_s11, %s5405_s11 }
  0x1f   : > { %p5135_p9 = scmp.ne.s32.totalorder %s5405_s11, %s5134_s10  ;;  %p5143_p6 = scmp.lt.s32.totalorder %s5134_s10, %s5134_s10 }
  0x21   : > { %p5137_p10 = pnand %p5135_p9, %p5428_p13  ;;  %p5144_p12 = por %p5143_p6, %p5142_p2 }
  0x23   : > { %p5138_p1 = pneg %p5137_p10 }
  0x25   : > { %p5145_p0 = pnand %p5144_p12, %p5138_p1 }
  0x27   : > { %5148 = shalt.err (!%p5145_p0)
}
  0x28   : > { %s5314_s13 = smov 64   ;;  %s5315_s15 = smov 4  }
  0x29   : > { %4937 = dma.hbm_to_vmem [thread:$0]  (!%p5412_p11), %s8537_s1, 1024, %s5405_s11, [#allocation8], %s5314_s13, %s5314_s13, %s5315_s15  }
  0x2a   : > { %s5149_s21 = scalar_lea.hbm %s8539_s3, 9216 }
  0x2b   : > { %p5150_p1 = scmp.ne.s32.totalorder %s8539_s3, %s5149_s21  ;;  %p5156_p10 = scmp.lt.u32.totalorder %s5149_s21, %s8539_s3 }
  0x2d   : > { %p5152_p2 = pnand %p5150_p1, %p5428_p13 }
  0x2f   : > { %p5153_p6 = pneg %p5152_p2 }
  0x31   : > { %p5158_p3 = pnand %p5156_p10, %p5153_p6 }
  0x33   : > { %5161 = shalt.err (!%p5158_p3)
}
  0x34   : > { %s5162_s11 = scalar_lea.vmem %s5416_s14, 9216  ;;  %p5170_p12 = scmp.lt.s32.totalorder %s5416_s14, %s5416_s14 }
  0x35   : > { %p5163_p5 = scmp.ne.s32.totalorder %s5416_s14, %s5162_s11  ;;  %p5171_p0 = scmp.lt.s32.totalorder %s5162_s11, %s5162_s11 }
  0x37   : > { %p5165_p7 = pnand %p5163_p5, %p5428_p13  ;;  %p5172_p1 = por %p5171_p0, %p5170_p12 }
  0x39   : > { %p5166_p9 = pneg %p5165_p7 }
  0x3b   : > { %p5173_p2 = pnand %p5172_p1, %p5166_p9 }
  0x3d   : > { %5176 = shalt.err (!%p5173_p2)
}
  0x3e   : > { %4940 = dma.hbm_to_vmem [thread:$0]  (!%p5412_p11), %s8539_s3, 9216, %s5416_s14, [#allocation8], %s5314_s13, %s5314_s13, %s5315_s15  }
  0x3f   : > { %s5177_s20 = scalar_lea.hbm %s8541_s5, 1024 }
  0x40   : > { %p5178_p6 = scmp.ne.s32.totalorder %s8541_s5, %s5177_s20  ;;  %p5184_p5 = scmp.lt.u32.totalorder %s5177_s20, %s8541_s5 }
  0x42   : > { %p5180_p10 = pnand %p5178_p6, %p5428_p13 }
  0x44   : > { %p5181_p3 = pneg %p5180_p10 }
  0x46   : > { %p5186_p7 = pnand %p5184_p5, %p5181_p3 }
  0x48   : > { %5189 = shalt.err (!%p5186_p7)
}
  0x49   : > { %s5190_s11 = scalar_lea.vmem %s253_s16, 1024  ;;  %p5198_p1 = scmp.lt.s32.totalorder %s253_s16, %s253_s16 }
  0x4a   : > { %p5191_p9 = scmp.ne.s32.totalorder %s253_s16, %s5190_s11  ;;  %p5199_p2 = scmp.lt.s32.totalorder %s5190_s11, %s5190_s11 }
  0x4c   : > { %p5193_p12 = pnand %p5191_p9, %p5428_p13  ;;  %p5200_p4 = por %p5199_p2, %p5198_p1 }
  0x4e   : > { %p5194_p0 = pneg %p5193_p12 }
  0x50   : > { %p5201_p8 = pnand %p5200_p4, %p5194_p0 }
  0x52   : > { %5204 = shalt.err (!%p5201_p8)
}
  0x53   : > { %4943 = dma.hbm_to_vmem [thread:$0]  (!%p5412_p11), %s8541_s5, 1024, %s253_s16, [#allocation11], %s5314_s13, %s5314_s13, %s5315_s15  }
  0x54   : > { %s5501_s22 = sadd.s32 1, %s5309_s27   ;;  %s32_s17 = sadd.s32 1, %s5305_s26 }
  0x55   : > { %s29_s12 = ssub.s32 %s5309_s27, %s5501_s22  ;;  %p39_p8 = scmp.ne.s32.totalorder %s5305_s26, %s5301_s25 }
  0x56   : > { %p30_p4 = scmp.eq.s32.totalorder %s29_s12, 0  ;;  %p40_p13 = scmp.eq.s32.totalorder %s5309_s27, 0 }
  0x57   : > { %p4955_p6 = scmp.lt.s32.totalorder %s5309_s27, 2  ;;  %p8673_p3 = scmp.eq.s32.totalorder %s5382_s28, 1 }
  0x58   : > { %s5511_s18 = scalar_select %p30_p4, %s5305_s26, %s32_s17  }
  0x59   : > { %p41_p10 = por %p40_p13, %p39_p8  ;;  %p5515_p5 = por %p8673_p3, %p39_p8 }
  0x5a   : > { %s269_s20 = sand.u32 1, %s5305_s26   ;;  %s4437_s21 = sshll.u32 %s5309_s27, 10 }
  0x5b   : > { %s4242_s16 = sshll.u32 %s269_s20, 6  ;;  %s5524_s10 = scalar_lea.hbm %s8536_s0, %s4437_s21 }
  0x5c   : > { %s273_s11 = scalar_lea.vmem [#allocation4], %s4242_s16  ;;  %p5526_p11 = pnand %p4955_p6, %p41_p10 }
  0x5d   : > { %s280_s14 = sshll.u32 %s273_s11, 4  ;;  %s5532_s12 = scalar_lea.sflag [#allocation5], %s269_s20  ;;  %s5530_s14 = int_to_ptr.vmem [resolvable:$true] %s280_s14 }
  0x5e   : > { %s5205_s17 = scalar_lea.hbm %s5524_s10, 1024  ;;  %p5207_p9 = pneg %p5526_p11 }
  0x5f   : > { %p5206_p7 = scmp.ne.s32.totalorder %s5524_s10, %s5205_s17  ;;  %s5210_s23 = scalar_lea.hbm %s8536_s0, 2048 }
  0x60   : > { %p5211_p1 = scmp.lt.u32.totalorder %s5524_s10, %s8536_s0  ;;  %p5212_p2 = scmp.lt.u32.totalorder %s5210_s23, %s5205_s17 }
  0x61   : > { %p5208_p12 = pnand %p5207_p9, %p5206_p7  ;;  %p5214_p8 = scmp.lt.u32.totalorder %s5205_s17, %s5524_s10 }
  0x62   : > { %p5213_p4 = por %p5212_p2, %p5211_p1 }
  0x63   : > { %p5209_p0 = pneg %p5208_p12 }
  0x64   : > { %p5215_p13 = por %p5214_p8, %p5213_p4 }
  0x66   : > { %p5216_p6 = pnand %p5215_p13, %p5209_p0 }
  0x68   : > { %5219 = shalt.err (!%p5216_p6)
}
  0x69   : > { %s5220_s20 = scalar_lea.vmem %s5530_s14, 1024  ;;  %s5316_s21 = smov [#allocation4]  }
  0x6a   : > { %p5221_p10 = scmp.ne.s32.totalorder %s5530_s14, %s5220_s20  ;;  %s5225_s16 = sshll.u32 %s5316_s21, 4  ;;  %s5226_s16 = int_to_ptr.vmem [resolvable:$false] %s5225_s16 }
  0x6b   : > { %s5227_s29 = scalar_lea.vmem %s5226_s16, 2048  ;;  %p5228_p12 = scmp.lt.s32.totalorder %s5530_s14, %s5226_s16 }
  0x6c   : > { %p5223_p3 = pnand %p5221_p10, %p5207_p9  ;;  %p5229_p1 = scmp.lt.s32.totalorder %s5227_s29, %s5220_s20 }
  0x6e   : > { %p5224_p7 = pneg %p5223_p3  ;;  %p5230_p2 = por %p5229_p1, %p5228_p12 }
  0x70   : > { %p5231_p4 = pnand %p5230_p2, %p5224_p7 }
  0x72   : > { %5234 = shalt.err (!%p5231_p4)
}
  0x73   : > { %4947 = dma.hbm_to_vmem [thread:$0]  (!%p5526_p11), %s5524_s10, 1024, %s5530_s14, %s5532_s12, %s5314_s13, %s5314_s13, %s5315_s15  }
  0x74   : > { %p8676_p9 = scmp.ne.s32.totalorder %s8670_s9, 0 }
  0x76   : > { %292 = sbr.rel (%p8676_p9) target bundleno = 1048 (0x418), region = 48 }
  0x7d   : > { %s5566_s17 = sand.u32 1, %s5301_s25   ;;  %p8677_p0 = scmp.ne.s32.totalorder %s8667_s30, 0 }
  0x7e   : > { %s4246_s23 = sshll.u32 %s5566_s17, 6  ;;  %s295_s11 = scalar_lea.sflag [#allocation5], %s5566_s17 }
  0x7f   : > { %s5572_s8 = scalar_lea.vmem [#allocation4], %s4246_s23 }
  0x80   : > { %5280 = dma.done.wait (%p8677_p0), %s295_s11, 1024  }
  0x81   : > { %5282 = vsyncadd (%p8677_p0), %s295_s11, 4294966272  ;;  %p8678_p11 = scmp.eq.s32.totalorder %s5382_s28, 0 }
  0x83   : > { %5284 = dma.done.wait (%p8678_p11), [#allocation8], 10240   ;;  %p8679_p8 = pmov %p8678_p11 }
  0x85   : > { %5286 = vsyncadd (%p8679_p8), [#allocation8], 4294957056  ;;  %p8680_p13 = pmov %p8679_p8 }
  0x86   : > { %p8681_p6 = pmov %p8679_p8 }
  0x87   : > { %5288 = dma.done.wait (%p8680_p13), [#allocation11], 1024  }
  0x88   : > { %5290 = vsyncadd (%p8681_p6), [#allocation11], 4294966272  ;;  %v5000_v0 = vld [vmem:[#allocation7] sm:$0xff]   ;;  %v5001_v1 = vld [vmem:[#allocation7 + $0x8] sm:$0xff]   ;;  %v612_v23 = vlaneseq  ;;  %s8461_s12 = scalar_lea.vmem [#allocation12], %s4246_s23  ;;  %s4454_s20 = sshll.u32 %s5382_s28, 10 }
  0x89   : > { %4806 = vmatprep.subr.bf16.mxu0 %v5000_v0  ;;  %v5002_v2 = vld [vmem:[#allocation7 + $0x10] sm:$0xff]   ;;  %v5003_v3 = vld [vmem:[#allocation7 + $0x18] sm:$0xff]   ;;  %v348_v4 = vld [vmem:[%s5572_s8] sm:$0xff]   ;;  %s4134_s21 = sshll.u32 %s8461_s12, 4  ;;  %s8488_s23 = scalar_lea.hbm %s8543_s7, %s4454_s20  ;;  %s8490_s21 = int_to_ptr.vmem [resolvable:$true] %s4134_s21 }
  0x8a   : > { %4807 = vmatpush3.bf16.msra.mxu0 %v5000_v0  ;;  %v5004_v5 = vld [vmem:[#allocation7 + $0x20] sm:$0xff]   ;;  %4822 = vmatprep.mubr.bf16.mxu0 %v348_v4  ;;  %v5005_v8 = vld [vmem:[#allocation7 + $0x28] sm:$0xff]   ;;  %v5006_v11 = vld [vmem:[#allocation7 + $0x30] sm:$0xff]   ;;  %v5594_v24 = vshrl.u32 %v612_v23, 7  ;;  %s4121_s28 = scalar_lea.sflag [#allocation6], %s5566_s17  ;;  %s5235_s11 = scalar_lea.vmem %s8490_s21, 1024 }
  0x8b   : > { %4808 = vmatprep.subr.bf16.mxu0 %v5001_v1  ;;  %v5016_v6 = vld [vmem:[#allocation9 + $0x40] sm:$0xff]   ;;  %v5020_v9 = vld [vmem:[#allocation9 + $0x48] sm:$0xff]   ;;  %v5007_v12 = vld [vmem:[#allocation7 + $0x38] sm:$0xff]   ;;  %p5236_p10 = scmp.ne.s32.totalorder %s8490_s21, %s5235_s11 }
  0x8c   : > { %v5017_v7 = vld [vmem:[#allocation9] sm:$0xff]   ;;  %4518 = vmatprep.subr.bf16.mxu1 %v5016_v6  ;;  %v5021_v10 = vld [vmem:[#allocation9 + $0x8] sm:$0xff]   ;;  %v352_v14 = vld [vmem:[%s5572_s8 + $0x10] sm:$0xff]   ;;  %v615_v25 = vadd.s32 16, %v5594_v24  ;;  %v616_v26 = vadd.s32 24, %v5594_v24  ;;  %v614_v27 = vadd.s32 8, %v5594_v24  ;;  %v629_v30 = vcvt.s32.f32 %v5594_v24 }
  0x8d   : > { %4519 = vmatpush3.bf16.msra.mxu1 %v5017_v7  ;;  %v350_v13 = vld [vmem:[%s5572_s8 + $0x8] sm:$0xff]   ;;  %v5018_v15 = vld [vmem:[#allocation9 + $0xc0] sm:$0xff]   ;;  %v354_v18 = vld [vmem:[%s5572_s8 + $0x18] sm:$0xff]   ;;  %v5601_v38 = vadd.s32 32, %v5594_v24  ;;  %v5604_v39 = vadd.s32 40, %v5594_v24  ;;  %p5237_p3 = pnand %p5236_p10, %p5515_p5 }
  0x8e   : > { %4809 = vmatpush3.bf16.msra.mxu0 %v5001_v1  ;;  %4520 = vmatprep.subr.bf16.mxu1 %v5020_v9  ;;  %v5019_v16 = vld [vmem:[#allocation9 + $0x80] sm:$0xff]   ;;  %v5022_v17 = vld [vmem:[#allocation9 + $0xc8] sm:$0xff]   ;;  %v360_v21 = vld [vmem:[%s5572_s8 + $0x30] sm:$0xff]   ;;  %v631_v28 = vcvt.s32.f32 %v615_v25  ;;  %v632_v29 = vcvt.s32.f32 %v616_v26  ;;  %v630_v31 = vcvt.s32.f32 %v614_v27  ;;  %v646_v34 = vmul.f32 0.015625, %v629_v30 }
  0x8f   : > { %4810 = vmatprep.subr.bf16.mxu0 %v5002_v2  ;;  %v356_v19 = vld [vmem:[%s5572_s8 + $0x20] sm:$0xff]   ;;  %v358_v20 = vld [vmem:[%s5572_s8 + $0x28] sm:$0xff]   ;;  %v362_v22 = vld [vmem:[%s5572_s8 + $0x38] sm:$0xff]   ;;  %v633_v48 = vcvt.s32.f32 %v5601_v38  ;;  %v634_v49 = vcvt.s32.f32 %v5604_v39  ;;  %p5238_p7 = pneg %p5237_p3 }
  0x90   : > { %v648_v32 = vmul.f32 0.015625, %v631_v28  ;;  %v649_v33 = vmul.f32 0.015625, %v632_v29  ;;  %v647_v35 = vmul.f32 0.015625, %v630_v31  ;;  %v662_v40 = vadd.f32 0.00390625, %v646_v34  ;;  %v5023_v4 = vld [vmem:[#allocation9 + $0x88] sm:$0xff]   ;;  %v5024_v9 = vld [vmem:[#allocation9 + $0x50] sm:$0xff]  }
  0x91   : > { %4521 = vmatpush3.bf16.msra.mxu1 %v5021_v10  ;;  %v650_v58 = vmul.f32 0.015625, %v633_v48  ;;  %v651_v59 = vmul.f32 0.015625, %v634_v49  ;;  %v5028_v25 = vld [vmem:[#allocation9 + $0x58] sm:$0xff]  }
  0x92   : > { %4811 = vmatpush3.bf16.msra.mxu0 %v5002_v2  ;;  %v664_v36 = vadd.f32 0.00390625, %v648_v32  ;;  %v665_v37 = vadd.f32 0.00390625, %v649_v33  ;;  %v663_v41 = vadd.f32 0.00390625, %v647_v35  ;;  %v678_v44 = vfloor.f32 %v662_v40  ;;  %4522 = vmatprep.subr.bf16.mxu1 %v5024_v9  ;;  %v5029_v26 = vld [vmem:[#allocation9 + $0x18] sm:$0xff]  }
  0x93   : > { %4812 = vmatprep.subr.bf16.mxu0 %v5003_v3  ;;  %v666_v2 = vadd.f32 0.00390625, %v650_v58  ;;  %v5030_v27 = vld [vmem:[#allocation9 + $0xd8] sm:$0xff]   ;;  %v8564_v33 = vmov 0  }
  0x94   : > { %v680_v42 = vfloor.f32 %v664_v36  ;;  %v681_v43 = vfloor.f32 %v665_v37  ;;  %v679_v45 = vfloor.f32 %v663_v41  ;;  %v694_v50 = vmul.f32 64.0, %v678_v44  ;;  %v5031_v32 = vld [vmem:[#allocation9 + $0x98] sm:$0xff]   ;;  %346 = vst [vmem:[#allocation2] sm:$0xff] %v8564_v33  ;;  %347 = vst [vmem:[#allocation2 + $0x48] sm:$0xff] %v8564_v33  ;;  %v5032_v36 = vld [vmem:[#allocation9 + $0x60] sm:$0xff]  }
  0x95   : > { %v5033_v41 = vld [vmem:[#allocation9 + $0x20] sm:$0xff]  }
  0x96   : > { %4813 = vmatpush3.bf16.msra.mxu0 %v5003_v3  ;;  %v696_v46 = vmul.f32 64.0, %v680_v42  ;;  %v697_v47 = vmul.f32 64.0, %v681_v43  ;;  %v695_v51 = vmul.f32 64.0, %v679_v45  ;;  %v5612_v54 = vsub.f32 %v629_v30, %v694_v50  ;;  %v5034_v42 = vld [vmem:[#allocation9 + $0xe0] sm:$0xff]   ;;  %v5038_v50 = vld [vmem:[#allocation9 + $0xe8] sm:$0xff]  }
  0x97   : > { %4814 = vmatprep.subr.bf16.mxu0 %v5004_v5  ;;  %v667_v3 = vadd.f32 0.00390625, %v651_v59  ;;  %v5039_v59 = vld [vmem:[#allocation9 + $0xa8] sm:$0xff]  }
  0x98   : > { %v5608_v52 = vsub.f32 %v631_v28, %v696_v46  ;;  %v5610_v53 = vsub.f32 %v632_v29, %v697_v47  ;;  %v5614_v55 = vsub.f32 %v630_v31, %v695_v51  ;;  %v727_v60 = vmul.f32 0.125, %v5612_v54  ;;  %v5035_v46 = vld [vmem:[#allocation9 + $0xa0] sm:$0xff]  }
  0x99   : > { %vm807_vm0 = vcmp.ge.f32.partialorder %v5612_v54, 7.5 }
  0x9a   : > { %4815 = vmatpush3.bf16.msra.mxu0 %v5004_v5  ;;  %v729_v56 = vmul.f32 0.125, %v5608_v52  ;;  %v730_v57 = vmul.f32 0.125, %v5610_v53  ;;  %v728_v61 = vmul.f32 0.125, %v5614_v55  ;;  %v743_v0 = vadd.f32 0.03125, %v727_v60 }
  0x9b   : > { %4816 = vmatprep.subr.bf16.mxu0 %v5005_v8  ;;  %vm808_vm1 = vcmp.ge.f32.partialorder %v5614_v55, 7.5  ;;  %vm809_vm8 = vcmp.ge.f32.partialorder %v5608_v52, 7.5  ;;  %vm8551_vm10 = vcmp.ge.f32.partialorder %v5610_v53, 7.5  ;;  %v871_v51 = vld [vmem:[#allocation2] sm:$0xf8] }
  0x9c   : > { %v745_v62 = vadd.f32 0.03125, %v729_v56  ;;  %v746_v63 = vadd.f32 0.03125, %v730_v57  ;;  %v744_v1 = vadd.f32 0.03125, %v728_v61  ;;  %v759_v5 = vfloor.f32 %v743_v0  ;;  %v5041_v0 = vld [vmem:[#allocation9 + $0x30] sm:$0xff]  }
  0x9e   : > { %4817 = vmatpush3.bf16.msra.mxu0 %v5005_v8  ;;  %v760_v6 = vfloor.f32 %v744_v1  ;;  %v761_v7 = vfloor.f32 %v745_v62  ;;  %v762_v8 = vfloor.f32 %v746_v63  ;;  %v775_v10 = vmul.f32 8.0, %v759_v5  ;;  %v5040_v62 = vld [vmem:[#allocation9 + $0x70] sm:$0xff]  }
  0x9f   : > { %4818 = vmatprep.subr.bf16.mxu0 %v5006_v11  ;;  %v5042_v1 = vld [vmem:[#allocation9 + $0xf0] sm:$0xff]  }
  0xa2   : > { %4819 = vmatpush3.bf16.msra.mxu0 %v5006_v11  ;;  %v776_v11 = vmul.f32 8.0, %v760_v6  ;;  %v5043_v6 = vld [vmem:[#allocation9 + $0xb0] sm:$0xff]  }
  0xa3   : > { %4820 = vmatprep.subr.bf16.mxu0 %v5007_v12 }
  0xa6   : > { %4821 = vmatpush3.bf16.msra.mxu0 %v5007_v12  ;;  %v5625_v12 = vadd.s32 48, %v5594_v24 }
  0xa7   : > { %4582 = vmatprep.subr.bf16.mxu0 %v5018_v15  ;;  %v682_v15 = vfloor.f32 %v666_v2 }
  0xa8   : > { %v635_v23 = vcvt.s32.f32 %v5625_v12 }
  0xa9   : > { %4823 = vmatmul.mubr.bf16.vlgmr.msra.gmra.mrb[0].mxu0 %v350_v13  ;;  %v5025_v13 = vld [vmem:[#allocation9 + $0x10] sm:$0xff]   ;;  %v698_v29 = vmul.f32 64.0, %v682_v15 }
  0xaa   : > { %4826 = vmatprep.mubr.bf16.mxu0 %v352_v14  ;;  %4583 = vmatpush3.bf16.msra.mxu0 %v5019_v16  ;;  %v5026_v14 = vld [vmem:[#allocation9 + $0xd0] sm:$0xff]   ;;  %v683_v16 = vfloor.f32 %v667_v3  ;;  %v652_v40 = vmul.f32 0.015625, %v635_v23 }
  0xab   : > { %4584 = vmatprep.subr.bf16.mxu0 %v5022_v17  ;;  %v5628_v17 = vadd.s32 56, %v5594_v24  ;;  %4523 = vmatpush3.bf16.msra.mxu1 %v5025_v13  ;;  %v5676_v43 = vsub.f32 %v633_v48, %v698_v29  ;;  %v5036_v48 = vld [vmem:[#allocation9 + $0x68] sm:$0xff]   ;;  %v5045_v13 = vld [vmem:[#allocation9 + $0x38] sm:$0xff]  }
  0xac   : > { %v699_v30 = vmul.f32 64.0, %v683_v16  ;;  %4524 = vmatprep.subr.bf16.mxu1 %v5028_v25  ;;  %v668_v39 = vadd.f32 0.00390625, %v652_v40 }
  0xad   : > { %v636_v31 = vcvt.s32.f32 %v5628_v17  ;;  %v731_v56 = vmul.f32 0.125, %v5676_v43  ;;  %v5776_v17 = vadd.s32 64, %v5594_v24 }
  0xae   : > { %4585 = vmatpush3.bf16.msra.mxu0 %v5023_v4  ;;  %v5680_v44 = vsub.f32 %v634_v49, %v699_v30  ;;  %v5037_v49 = vld [vmem:[#allocation9 + $0x28] sm:$0xff]   ;;  %v684_v63 = vfloor.f32 %v668_v39 }
  0xaf   : > { %4586 = vmatprep.subr.bf16.mxu0 %v5026_v14  ;;  %4525 = vmatpush3.bf16.msra.mxu1 %v5029_v26  ;;  %v653_v45 = vmul.f32 0.015625, %v636_v31  ;;  %v747_v3 = vadd.f32 0.03125, %v731_v56  ;;  %v5046_v14 = vld [vmem:[#allocation9 + $0xf8] sm:$0xff]  }
  0xb0   : > { %4526 = vmatprep.subr.bf16.mxu1 %v5032_v36  ;;  %v732_v57 = vmul.f32 0.125, %v5680_v44 }
  0xb1   : > { %4827 = vmatmul.mubr.bf16.gmra.mrb[4].mxu0 %v354_v18  ;;  %v5027_v18 = vld [vmem:[#allocation9 + $0x90] sm:$0xff]   ;;  %v669_v58 = vadd.f32 0.00390625, %v653_v45  ;;  %v763_v15 = vfloor.f32 %v747_v3 }
  0xb2   : > { %4830 = vmatprep.mubr.bf16.mxu0 %v356_v19  ;;  %v777_v19 = vmul.f32 8.0, %v761_v7  ;;  %4587 = vmatpush3.bf16.msra.mxu0 %v5027_v18  ;;  %v748_v4 = vadd.f32 0.03125, %v732_v57 }
  0xb3   : > { %4588 = vmatprep.subr.bf16.mxu0 %v5030_v27  ;;  %4527 = vmatpush3.bf16.msra.mxu1 %v5033_v41  ;;  %v685_v5 = vfloor.f32 %v669_v58  ;;  %v637_v58 = vcvt.s32.f32 %v5776_v17 }
  0xb4   : > { %v5652_v34 = vsub.f32 %v5608_v52, %v777_v19  ;;  %4528 = vmatprep.subr.bf16.mxu1 %v5036_v48  ;;  %v764_v16 = vfloor.f32 %v748_v4  ;;  %v5047_v19 = vld [vmem:[#allocation9 + $0xb8] sm:$0xff]  }
  0xb5   : > { %v701_v18 = vmul.f32 64.0, %v685_v5 }
  0xb6   : > { %4589 = vmatpush3.bf16.msra.mxu0 %v5031_v32  ;;  %vm8552_vm9 = vcmp.ge.f32.partialorder %v5652_v34, 0.5  ;;  %v779_v32 = vmul.f32 8.0, %v763_v15  ;;  %v780_v35 = vmul.f32 8.0, %v764_v16 }
  0xb7   : > { %4590 = vmatprep.subr.bf16.mxu0 %v5034_v42  ;;  %vm5694_vm12 = vmand %vm809_vm8, %vm8552_vm9  ;;  %4529 = vmatpush3.bf16.msra.mxu1 %v5037_v49  ;;  %v5760_v36 = vsub.f32 %v636_v31, %v701_v18 }
  0xb8   : > { %4530 = vmatprep.subr.bf16.mxu1 %v5040_v62  ;;  %v5802_v48 = vsub.f32 %v5680_v44, %v780_v35 }
  0xb9   : > { %4831 = vmatmul.mubr.bf16.gmra.mrb[8].mxu0 %v358_v20  ;;  %v5631_v20 = vsub.f32 %v5612_v54, %v775_v10  ;;  %v5044_v10 = vld [vmem:[#allocation9 + $0x78] sm:$0xff]   ;;  %8695 = vst [vmem:[#allocation19_spill] sm:$0xff] %v5760_v36  ;;  %v734_v39 = vmul.f32 0.125, %v5760_v36 }
  0xba   : > { %4834 = vmatprep.mubr.bf16.mxu0 %v360_v21  ;;  %v5634_v21 = vsub.f32 %v5614_v55, %v776_v11  ;;  %4591 = vmatpush3.bf16.msra.mxu0 %v5035_v46  ;;  %v700_v11 = vmul.f32 64.0, %v684_v63  ;;  %v6179_v63 = vadd.s32 96, %v5594_v24 }
  0xbb   : > { %vm8554_vm2 = vcmp.ge.f32.partialorder %v5631_v20, 0.5  ;;  %vm8548_vm13 = vcmp.lt.f32.partialorder %v5631_v20, 6.5  ;;  %4592 = vmatprep.subr.bf16.mxu0 %v5038_v50  ;;  %4531 = vmatpush3.bf16.msra.mxu1 %v5041_v0 }
  0xbc   : > { %vm8553_vm3 = vcmp.ge.f32.partialorder %v5634_v21, 0.5  ;;  %vm5645_vm4 = vmand %vm807_vm0, %vm8554_vm2  ;;  %vm8549_vm14 = vcmp.lt.f32.partialorder %v5634_v21, 6.5  ;;  %4532 = vmatprep.subr.bf16.mxu1 %v5044_v10  ;;  %v5755_v30 = vsub.f32 %v635_v23, %v700_v11  ;;  %v5779_v23 = vadd.s32 72, %v5594_v24 }
  0xbd   : > { %vm5658_vm5 = vmand %vm808_vm1, %vm8553_vm3  ;;  %v654_v11 = vmul.f32 0.015625, %v637_v58 }
  0xbe   : > { %vm896_vm6 = vmpackc.low %vm5645_vm4, %vm5645_vm4  ;;  %4593 = vmatpush3.bf16.msra.mxu0 %v5039_v59  ;;  %8694 = vst [vmem:[#allocation18_spill] sm:$0xff] %v5755_v30  ;;  %v733_v45 = vmul.f32 0.125, %v5755_v30  ;;  %v638_v59 = vcvt.s32.f32 %v5779_v23 }
  0xbf   : > { %vm897_vm7 = vmpackc.low %vm5658_vm5, %vm5658_vm5  ;;  %v912_v47 = vsel %vm896_vm6, 65537, %v8564_v33  ;;  %4594 = vmatprep.subr.bf16.mxu0 %v5042_v1  ;;  %4533 = vmatpush3.bf16.msra.mxu1 %v5045_v13  ;;  %v750_v1 = vadd.f32 0.03125, %v734_v39 }
  0xc0   : > { %v913_v38 = vsel %vm897_vm7, 65537, %v8564_v33  ;;  %vm898_vm4 = vmpackc.low %vm5694_vm12, %vm5694_vm12  ;;  %v749_v62 = vadd.f32 0.03125, %v733_v45  ;;  %v655_v13 = vmul.f32 0.015625, %v638_v59 }
  0xc1   : > { %4835 = vmatmul.mubr.bf16.gmra.mrb[12].mxu0 %v362_v22  ;;  %v778_v22 = vmul.f32 8.0, %v762_v8  ;;  %v4268_v60 = vcombine.low %v912_v47, %v913_v38  ;;  %vm5717_vm5 = vmand %vm807_vm0, %vm8548_vm13  ;;  %v914_v28 = vsel %vm898_vm4, 65537, %v8564_v33  ;;  %v5799_v38 = vsub.f32 %v5676_v43, %v779_v32 }
  0xc2   : > { %vm5725_vm6 = vmand %vm808_vm1, %vm8549_vm14  ;;  %4595 = vmatpush3.bf16.msra.mxu0 %v5043_v6  ;;  %v5048_v6 = vld [vmem:[#allocation9 + $0x140] sm:$0xff]  }
  0xc3   : > { %v5664_v37 = vsub.f32 %v5610_v53, %v778_v22  ;;  %v954_v8 = vshrl.u32 %v4268_v60, 16  ;;  %v957_v9 = vshll.u32 %v4268_v60, 16  ;;  %vm1291_vm13 = vmpackc.low %vm5717_vm5, %vm5717_vm5  ;;  %4596 = vmatprep.subr.bf16.mxu0 %v5046_v14  ;;  %vm8557_vm5 = vcmp.lt.f32.partialorder %v5652_v34, 6.5  ;;  %v1139_v14 = vld [vmem:[#allocation2] sm:$0xf0]  ;;  %4646 = vmatprep.subr.bf16.mxu1 %v5048_v6 }
  0xc4   : > { %vm1292_vm14 = vmpackc.low %vm5725_vm6, %vm5725_vm6  ;;  %v1307_v26 = vsel %vm1291_vm13, 65537, %v8564_v33  ;;  %v1266_v60 = vld [vmem:[#allocation2] sm:$0xf0] }
  0xc5   : > { %vm8555_vm11 = vcmp.ge.f32.partialorder %v5664_v37, 0.5  ;;  %v956_v22 = vrot.slane %v954_v8, 4  ;;  %v959_v25 = vrot.slane %v957_v9, 5  ;;  %v1308_v27 = vsel %vm1292_vm14, 65537, %v8564_v33  ;;  %vm1148_vm12 = vmpackc.low %vm807_vm0, %vm807_vm0 }
  0xc6   : > { %vm5706_vm15 = vmand %vm8551_vm10, %vm8555_vm11  ;;  %4597 = vmatpush3.bf16.msra.mxu0 %v5047_v19  ;;  %vm8550_vm13 = vcmp.lt.f32.partialorder %v5664_v37, 6.5  ;;  %v4285_v40 = vcombine.low %v1307_v26, %v1308_v27  ;;  %v1164_v47 = vsel %vm1148_vm12, 65537, %v8564_v33  ;;  %vm811_vm12 = vcmp.ge.f32.partialorder %v5676_v43, 7.5 }
  0xc7   : > { %vm899_vm7 = vmpackc.low %vm5706_vm15, %vm5706_vm15  ;;  %v5765_v41 = vor.u32 %v959_v25, %v956_v22  ;;  %v4276_v61 = vcombine.low %v1164_v47, %v1164_v47  ;;  %v765_v19 = vfloor.f32 %v749_v62  ;;  %v766_v27 = vfloor.f32 %v750_v1 }
  0xc8   : > { %v915_v29 = vsel %vm899_vm7, 65537, %v8564_v33  ;;  %vm5771_vm14 = vmand %vm809_vm8, %vm8557_vm5  ;;  %v1348_v49 = vshrl.u32 %v4285_v40, 16  ;;  %v1351_v50 = vshll.u32 %v4285_v40, 16  ;;  %v671_v62 = vadd.f32 0.00390625, %v655_v13 }
  0xc9   : > { %v4269_v42 = vcombine.low %v914_v28, %v915_v29  ;;  %vm5785_vm0 = vmand %vm8551_vm10, %vm8550_vm13  ;;  %vm812_vm13 = vcmp.ge.f32.partialorder %v5680_v44, 7.5  ;;  %vm8556_vm10 = vcmp.ge.f32.partialorder %v5799_v38, 0.5  ;;  %v781_v39 = vmul.f32 8.0, %v765_v19 }
  0xca   : > { %vm5793_vm15 = vmpackc.low %vm808_vm1, %vm808_vm1  ;;  %vm1024_vm1 = vcmp.ne.s16.totalorder %v5765_v41, 0  ;;  %v1350_v4 = vrot.slane %v1348_v49, 3  ;;  %v1353_v5 = vrot.slane %v1351_v50, 4  ;;  %v687_v13 = vfloor.f32 %v671_v62 }
  0xcb   : > { %vm1293_vm4 = vmpackc.low %vm5771_vm14, %vm5771_vm14  ;;  %v962_v56 = vshrl.u32 %v4269_v42, 16  ;;  %v965_v57 = vshll.u32 %v4269_v42, 16  ;;  %v1033_v0 = vsel %vm1024_vm1, %v871_v51, 0  ;;  %vm5857_vm14 = vcmp.ne.s16.totalorder %v4276_v61, 0 }
  0xcc   : > { %vm1294_vm6 = vmpackc.low %vm5785_vm0, %vm5785_vm0  ;;  %v1309_v2 = vsel %vm1293_vm4, 65537, %v8564_v33  ;;  %v1044_v16 = vshrl.u32 %v1033_v0, 16  ;;  %v1047_v25 = vshll.u32 %v1033_v0, 16  ;;  %v5880_v28 = vsel %vm5793_vm15, 65537, %v8564_v33 }
  0xcd   : > { %vm5817_vm7 = vmpackc.low %vm809_vm8, %vm809_vm8  ;;  %vm8562_vm8 = vcmp.ge.f32.partialorder %v5802_v48, 0.5  ;;  %v1310_v3 = vsel %vm1294_vm6, 65537, %v8564_v33  ;;  %v964_v8 = vrot.slane %v962_v56, 4  ;;  %v967_v9 = vrot.slane %v965_v57, 5 }
  0xce   : > { %vm5826_vm0 = vmpackc.low %vm8552_vm9, %vm8552_vm9  ;;  %vm8559_vm6 = vcmp.lt.f32.partialorder %v5799_v38, 6.5  ;;  %v4286_v22 = vcombine.low %v1309_v2, %v1310_v3  ;;  %v5885_v29 = vsel %vm5817_vm7, 65537, %v8564_v33  ;;  %v5896_v35 = vor.u32 %v1353_v5, %v1350_v4 }
  0xcf   : > { %vm5842_vm1 = vmpackc.low %vm8554_vm2, %vm8554_vm2  ;;  %v1214_v40 = vsel %vm5857_vm14, %v1139_v14, 0  ;;  %v5900_v42 = vor.u32 %v967_v9, %v964_v8  ;;  %v1559_v45 = vsel %vm5826_vm0, 65537, %v8564_v33  ;;  %v5911_v46 = vrot.slane %v1044_v16, 3 }
  0xd0   : > { %vm5849_vm9 = vmpackc.low %vm8553_vm3, %vm8553_vm3  ;;  %vm8560_vm3 = vsmask.f32 3328  ;;  %v1557_v12 = vsel %vm5842_vm1, 65537, %v8564_v33  ;;  %v1356_v49 = vshrl.u32 %v4286_v22, 16  ;;  %v1359_v50 = vshll.u32 %v4286_v22, 16 }
  0xd1   : > { %vm5864_vm4 = vmpackc.low %vm8555_vm11, %vm8555_vm11  ;;  %vm8558_vm11 = vcmp.lt.f32.partialorder %v5802_v48, 6.5  ;;  %v1558_v31 = vsel %vm5849_vm9, 65537, %v8564_v33  ;;  %8718 = vst [vmem:[#allocation20_spill] sm:$0xff] %v5911_v46  ;;  %v5919_v51 = vrot.slane %v1047_v25, 4  ;;  %v782_v56 = vmul.f32 8.0, %v766_v27 }
  0xd2   : > { %vm5873_vm2 = vmand %vm811_vm12, %vm8556_vm10  ;;  %v1560_v47 = vsel %vm5864_vm4, 65537, %v8564_v33  ;;  %v5924_v57 = vcombine.low %v1557_v12, %v1558_v31  ;;  %vm1418_vm7 = vcmp.ne.s16.totalorder %v5896_v35, 0  ;;  %v670_v61 = vadd.f32 0.00390625, %v654_v11 }
  0xd3   : > { %vm5892_vm10 = vmand %vm812_vm13, %vm8562_vm8  ;;  %8719 = vst [vmem:[#allocation21_spill] sm:$0xff] %v5919_v51  ;;  %v5929_v0 = vrot.slane %v1214_v40, 4  ;;  %v5941_v2 = vsel %vm8560_vm3, %v5765_v41, %v5900_v42  ;;  %v5943_v3 = vcombine.low %v1559_v45, %v1560_v47  ;;  %v5960_v41 = vsub.f32 %v5755_v30, %v781_v39 }
  0xd4   : > { %vm900_vm15 = vmpackc.low %vm5873_vm2, %vm5873_vm2  ;;  %v686_v7 = vfloor.f32 %v670_v61  ;;  %v1427_v10 = vsel %vm1418_vm7, %v1266_v60, 0  ;;  %v5975_v11 = vsub.f32 %v5760_v36, %v782_v56  ;;  %v1358_v14 = vrot.slane %v1356_v49, 3  ;;  %v1532_v60 = vld [vmem:[#allocation2] sm:$0x80] }
  0xd5   : > { %vm901_vm9 = vmpackc.low %vm5892_vm10, %vm5892_vm10  ;;  %8720 = vst [vmem:[#allocation22_spill] sm:$0xff] %v5929_v0  ;;  %v916_v4 = vsel %vm900_vm15, 65537, %v8564_v33  ;;  %vm8723_vm10 = vcmp.ge.f32.partialorder %v5610_v53, 7.5  ;;  %v1361_v15 = vrot.slane %v1359_v50, 4  ;;  %v1599_v16 = vshll.u32 %v5924_v57, 16 }
  0xd6   : > { %vm5934_vm0 = vmpackc.low %vm8557_vm5, %vm8557_vm5  ;;  %v917_v5 = vsel %vm901_vm9, 65537, %v8564_v33  ;;  %8726 = vst [vmem:[#allocation23_spill] sm:$0xff] %v5960_v41  ;;  %vm813_vm4 = vcmp.ge.f32.partialorder %v5755_v30, 7.5  ;;  %v1606_v19 = vshll.u32 %v5943_v3, 16  ;;  %v702_v26 = vmul.f32 64.0, %v686_v7 }
  0xd7   : > { %vm5955_vm1 = vmpackc.low %vm8723_vm10, %vm8723_vm10  ;;  %8729 = vst [vmem:[#allocation24_spill] sm:$0xff] %v5975_v11  ;;  %v4270_v22 = vcombine.low %v916_v4, %v917_v5  ;;  %v703_v27 = vmul.f32 64.0, %v687_v13  ;;  %v5998_v32 = vsel %vm5934_vm0, 65537, %v8564_v33  ;;  %v1437_v40 = vshrl.u32 %v1427_v10, 16 }
  0xd8   : > { %vm5968_vm2 = vmand %vm811_vm12, %vm8559_vm6  ;;  %vm814_vm7 = vcmp.ge.f32.partialorder %v5760_v36, 7.5  ;;  %vm8567_vm10 = vcmp.ge.f32.partialorder %v5960_v41, 0.5  ;;  %vm8577_vm5 = vcmp.ge.f32.partialorder %v5975_v11, 0.5  ;;  %v6011_v12 = vsub.f32 %v637_v58, %v702_v26 }
  0xd9   : > { %vm5982_vm14 = vmand %vm812_vm13, %vm8558_vm11  ;;  %v6015_v31 = vsub.f32 %v638_v59, %v703_v27  ;;  %v6018_v45 = vadd.s32 80, %v5594_v24  ;;  %v6020_v47 = vor.u32 %v1361_v15, %v1358_v14  ;;  %v1601_v39 = vrot.slane %v1599_v16, 1 }
  0xda   : > { %vm5991_vm15 = vmpackc.low %vm811_vm12, %vm811_vm12  ;;  %8734 = vst [vmem:[#allocation25_spill] sm:$0xff] %v6011_v12  ;;  %v1602_v49 = vshrl.u32 %v5924_v57, 16  ;;  %vm8736_vm11 = vcmp.ge.f32.partialorder %v5799_v38, 0.5  ;;  %v1440_v58 = vshll.u32 %v1427_v10, 16  ;;  %v1608_v23 = vrot.slane %v1606_v19, 1 }
  0xdb   : > { %vm1295_vm9 = vmpackc.low %vm5968_vm2, %vm5968_vm2  ;;  %8735 = vst [vmem:[#allocation26_spill] sm:$0xff] %v6015_v31  ;;  %v6033_v59 = vsel %vm5955_vm1, 65537, %v8564_v33  ;;  %v971_v50 = vshrl.u32 %v4270_v22, 16  ;;  %v974_v56 = vshll.u32 %v4270_v22, 16  ;;  %v735_v62 = vmul.f32 0.125, %v6011_v12 }
  0xdc   : > { %vm1296_vm12 = vmpackc.low %vm5982_vm14, %vm5982_vm14  ;;  %v736_v1 = vmul.f32 0.125, %v6015_v31  ;;  %v6054_v4 = vadd.s32 88, %v5594_v24  ;;  %v1311_v5 = vsel %vm1295_vm9, 65537, %v8564_v33  ;;  %v6068_v7 = vrot.slane %v1437_v40, 4 }
  0xdd   : > { %vm6026_vm6 = vmpackc.low %vm8736_vm11, %vm8736_vm11  ;;  %vm1661_vm11 = vcmp.ne.s16.totalorder %v1601_v39, 0  ;;  %v1312_v6 = vsel %vm1296_vm12, 65537, %v8564_v33  ;;  %v8566_v9 = vcvt.s32.f32 %v6018_v45  ;;  %v1604_v13 = vor.u32 %v1602_v49, %v1601_v39 }
  0xde   : > { %vm6039_vm0 = vmand %vm813_vm4, %vm8567_vm10  ;;  %8743 = vst [vmem:[#allocation27_spill] sm:$0xff] %v6068_v7  ;;  %v6081_v14 = vsel %vm5991_vm15, 65537, %v8564_v33  ;;  %v751_v15 = vadd.f32 0.03125, %v735_v62  ;;  %v752_v16 = vadd.f32 0.03125, %v736_v1  ;;  %v1670_v18 = vsel %vm1661_vm11, %v1532_v60, 0  ;;  %v5056_v60 = vld [vmem:[#allocation9 + $0x1c0] sm:$0xff]  }
  0xdf   : > { %vm6047_vm3 = vmand %vm814_vm7, %vm8577_vm5  ;;  %v6086_v19 = vrot.slane %v1440_v58, 5  ;;  %v973_v22 = vrot.slane %v971_v50, 4  ;;  %v976_v26 = vrot.slane %v974_v56, 5  ;;  %v4287_v27 = vcombine.low %v1311_v5, %v1312_v6  ;;  %4710 = vmatprep.subr.bf16.mxu0 %v5056_v60 }
  0xe0   : > { %vm6073_vm1 = vmpackc.low %vm8562_vm8, %vm8562_vm8  ;;  %v767_v40 = vfloor.f32 %v751_v15  ;;  %v768_v25 = vfloor.f32 %v752_v16  ;;  %v8563_v39 = vcvt.s32.f32 %v6054_v4  ;;  %v1561_v49 = vsel %vm6026_vm6, 65537, %v8564_v33 }
  0xe1   : > { %vm902_vm2 = vmpackc.low %vm6039_vm0, %vm6039_vm0  ;;  %8746 = vst [vmem:[#allocation28_spill] sm:$0xff] %v6086_v19  ;;  %v1562_v58 = vsel %vm6073_vm1, 65537, %v8564_v33  ;;  %v1610_v50 = vshrl.u32 %v5943_v3, 16  ;;  %v656_v56 = vmul.f32 0.015625, %v8566_v9  ;;  %v1681_v1 = vshrl.u32 %v1670_v18, 16 }
  0xe2   : > { %vm903_vm14 = vmpackc.low %vm6047_vm3, %vm6047_vm3  ;;  %vm8594_vm3 = vcmp.lt.f32.partialorder %v5960_v41, 6.5  ;;  %v918_v17 = vsel %vm902_vm2, 65537, %v8564_v33  ;;  %v783_v62 = vmul.f32 8.0, %v767_v40  ;;  %v6109_v5 = vor.u32 %v976_v26, %v973_v22 }
  0xe3   : > { %v919_v61 = vsel %vm903_vm14, 65537, %v8564_v33  ;;  %vm8561_vm6 = vcmp.lt.f32.partialorder %v5975_v11, 6.5  ;;  %v784_v3 = vmul.f32 8.0, %v768_v25  ;;  %v6112_v6 = vcombine.low %v1561_v49, %v1562_v58  ;;  %vm6117_vm15 = vmpackc.low %vm812_vm13, %vm812_vm13 }
  0xe4   : > { %v1365_v57 = vshrl.u32 %v4287_v27, 16  ;;  %v1368_v15 = vshll.u32 %v4287_v27, 16  ;;  %v657_v16 = vmul.f32 0.015625, %v8563_v39  ;;  %vm8749_vm9 = vsmask.f32 4352  ;;  %vm6134_vm13 = vmand %vm813_vm4, %vm8594_vm3 }
  0xe5   : > { %v6128_v22 = vsel %vm8749_vm9, %v5896_v35, %v6020_v47  ;;  %v4271_v26 = vcombine.low %v918_v17, %v919_v61  ;;  %v672_v27 = vadd.f32 0.00390625, %v656_v56  ;;  %vm8752_vm12 = vsmask.f32 7424  ;;  %vm6147_vm0 = vmand %vm814_vm7, %vm8561_vm6 }
  0xe6   : > { %v6139_v25 = vsel %vm8752_vm12, %v1604_v13, %v1608_v23  ;;  %v1612_v58 = vor.u32 %v1610_v50, %v1608_v23  ;;  %v6152_v60 = vsub.f32 %v6011_v12, %v783_v62  ;;  %v6154_v17 = vrot.slane %v1681_v1, 7  ;;  %vm6164_vm1 = vmpackc.low %vm813_vm4, %vm813_vm4 }
  0xe7   : > { %vm8757_vm11 = vsmask.f32 3328  ;;  %v6169_v50 = vsub.f32 %v6015_v31, %v784_v3  ;;  %v673_v56 = vadd.f32 0.00390625, %v657_v16  ;;  %v1614_v61 = vshll.u32 %v6112_v6, 16  ;;  %vm1297_vm2 = vmpackc.low %vm6134_vm13, %vm6134_vm13 }
  0xe8   : > { %8755 = vst [vmem:[#allocation29_spill] sm:$0xff] %v6152_v60  ;;  %8756 = vst [vmem:[#allocation30_spill] sm:$0xff] %v6154_v17  ;;  %v6159_v13 = vsel %vm8757_vm11, %v5900_v42, %v6109_v5  ;;  %v1367_v62 = vrot.slane %v1365_v57, 3  ;;  %v1370_v42 = vrot.slane %v1368_v15, 4  ;;  %v688_v1 = vfloor.f32 %v672_v27 }
  0xe9   : > { %8760 = vst [vmem:[#allocation31_spill] sm:$0xff] %v6169_v50  ;;  %vm1298_vm4 = vmpackc.low %vm6147_vm0, %vm6147_vm0  ;;  %v980_v49 = vshrl.u32 %v4271_v26, 16  ;;  %v689_v8 = vfloor.f32 %v673_v56  ;;  %v6182_v3 = vadd.s32 104, %v5594_v24  ;;  %vm815_vm9 = vcmp.ge.f32.partialorder %v6011_v12, 7.5 }
  0xea   : > { %vm6187_vm14 = vmpackc.low %vm8567_vm10, %vm8567_vm10  ;;  %vm816_vm12 = vcmp.ge.f32.partialorder %v6015_v31, 7.5  ;;  %vm8592_vm11 = vcmp.ge.f32.partialorder %v6152_v60, 0.5  ;;  %v704_v57 = vmul.f32 64.0, %v688_v1  ;;  %vm8591_vm8 = vcmp.ge.f32.partialorder %v6169_v50, 0.5 }
  0xeb   : > { %vm6197_vm6 = vmpackc.low %vm8577_vm5, %vm8577_vm5  ;;  %v705_v27 = vmul.f32 64.0, %v689_v8  ;;  %v8575_v56 = vcvt.s32.f32 %v6179_v63  ;;  %v6204_v39 = vrot.slane %v1614_v61, 1  ;;  %v983_v9 = vshll.u32 %v4271_v26, 16 }
  0xec   : > { %vm6210_vm10 = vmpackc.low %vm814_vm7, %vm814_vm7  ;;  %v8767_v11 = vcvt.s32.f32 %v6018_v45  ;;  %v8769_v8 = vmov 0   ;;  %v8772_v10 = vcvt.s32.f32 %v6054_v4  ;;  %v6252_v35 = vor.u32 %v1370_v42, %v1367_v62 }
  0xed   : > { %v6221_v18 = vsel %vm6117_vm15, 65537, %v8769_v8  ;;  %v1313_v26 = vsel %vm1297_vm2, 65537, %v8769_v8  ;;  %vm6239_vm7 = vmand %vm815_vm9, %vm8592_vm11  ;;  %v6250_v61 = vsel %vm6164_vm1, 65537, %v8769_v8  ;;  %v658_v4 = vmul.f32 0.015625, %v8575_v56 }
  0xee   : > { %v6216_v30 = vsub.f32 %v8767_v11, %v704_v57  ;;  %v1314_v11 = vsel %vm1298_vm4, 65537, %v8769_v8  ;;  %v6245_v40 = vsub.f32 %v8772_v10, %v705_v27  ;;  %8774 = vst [vmem:[#allocation34_spill] sm:$0xff] %v6250_v61  ;;  %vm6258_vm15 = vmand %vm816_vm12, %vm8591_vm8  ;;  %v982_v27 = vrot.slane %v980_v49, 4 }
  0xef   : > { %vm8593_vm13 = vcmp.lt.f32.partialorder %v6152_v60, 6.5  ;;  %vm6269_vm0 = vmpackc.low %vm815_vm9, %vm815_vm9  ;;  %v8779_v42 = vcvt.s32.f32 %v6182_v3  ;;  %v4288_v36 = vcombine.low %v1313_v26, %v1314_v11  ;;  %v985_v7 = vrot.slane %v983_v9, 5 }
  0xf0   : > { %8768 = vst [vmem:[#allocation32_spill] sm:$0xff] %v6216_v30  ;;  %8773 = vst [vmem:[#allocation33_spill] sm:$0xff] %v6245_v40  ;;  %v737_v33 = vmul.f32 0.125, %v6216_v30  ;;  %v738_v62 = vmul.f32 0.125, %v6245_v40  ;;  %vm8590_vm1 = vcmp.lt.f32.partialorder %v6169_v50, 6.5  ;;  %v6281_v49 = vadd.s32 112, %v5594_v24 }
  0xf1   : > { %v659_v10 = vmul.f32 0.015625, %v8779_v42  ;;  %vm904_vm2 = vmpackc.low %vm6239_vm7, %vm6239_vm7  ;;  %v1563_v56 = vsel %vm6187_vm14, 65537, %v8769_v8  ;;  %v1564_v19 = vsel %vm6197_vm6, 65537, %v8769_v8  ;;  %vm8780_vm5 = vsmask.f32 7424 }
  0xf2   : > { %vm905_vm4 = vmpackc.low %vm6258_vm15, %vm6258_vm15  ;;  %v753_v9 = vadd.f32 0.03125, %v737_v33  ;;  %v754_v26 = vadd.f32 0.03125, %v738_v62  ;;  %v6294_v11 = vsel %vm8780_vm5, %v1612_v58, %v6204_v39  ;;  %vm8781_vm14 = vsmask.f32 4352 }
  0xf3   : > { %v6301_v16 = vsel %vm8781_vm14, %v6020_v47, %v6252_v35  ;;  %vm6307_vm6 = vmand %vm815_vm9, %vm8593_vm13  ;;  %v674_v33 = vadd.f32 0.00390625, %v658_v4  ;;  %v675_v42 = vadd.f32 0.00390625, %v659_v10  ;;  %v6320_v17 = vadd.s32 120, %v5594_v24 }
  0xf4   : > { %8782 = vst [vmem:[#allocation35_spill] sm:$0xff] %v6301_v16  ;;  %vm6315_vm5 = vmand %vm816_vm12, %vm8590_vm1  ;;  %v769_v62 = vfloor.f32 %v753_v9  ;;  %v770_v47 = vfloor.f32 %v754_v26  ;;  %v6322_v12 = vcombine.low %v1563_v56, %v1564_v19  ;;  %v6324_v46 = vor.u32 %v985_v7, %v982_v27 }
  0xf5   : > { %v1374_v51 = vshrl.u32 %v4288_v36, 16  ;;  %v8582_v4 = vcvt.s32.f32 %v6281_v49  ;;  %v6330_v0 = vsel %vm6210_vm10, 65537, %v8769_v8  ;;  %vm1299_vm9 = vmpackc.low %vm6307_vm6, %vm6307_vm6  ;;  %v1377_v10 = vshll.u32 %v4288_v36, 16 }
  0xf6   : > { %8787 = vst [vmem:[#allocation36_spill] sm:$0xff] %v6330_v0  ;;  %v785_v9 = vmul.f32 8.0, %v769_v62  ;;  %v786_v24 = vmul.f32 8.0, %v770_v47  ;;  %v920_v7 = vsel %vm904_vm2, 65537, %v8769_v8  ;;  %v921_v19 = vsel %vm905_vm4, 65537, %v8769_v8  ;;  %vm1300_vm10 = vmpackc.low %vm6315_vm5, %vm6315_vm5 }
  0xf7   : > { %v6350_v36 = vsel %vm6269_vm0, 65537, %v8769_v8  ;;  %v690_v56 = vfloor.f32 %v674_v33  ;;  %v691_v27 = vfloor.f32 %v675_v42  ;;  %v8586_v57 = vcvt.s32.f32 %v6320_v17  ;;  %vm6379_vm4 = vmpackc.low %vm816_vm12, %vm816_vm12 }
  0xf8   : > { %8788 = vst [vmem:[#allocation37_spill] sm:$0xff] %v6350_v36  ;;  %v6356_v1 = vsub.f32 %v6216_v30, %v785_v9  ;;  %v6359_v45 = vsub.f32 %v6245_v40, %v786_v24  ;;  %v1622_v26 = vshll.u32 %v6322_v12, 16  ;;  %v1376_v62 = vrot.slane %v1374_v51, 3  ;;  %vm6386_vm14 = vmpackc.low %vm8592_vm11, %vm8592_vm11 }
  0xf9   : > { %v706_v23 = vmul.f32 64.0, %v690_v56  ;;  %v660_v47 = vmul.f32 0.015625, %v8582_v4  ;;  %v4272_v58 = vcombine.low %v920_v7, %v921_v19  ;;  %v1315_v33 = vsel %vm1299_vm9, 65537, %v8769_v8  ;;  %vm6416_vm9 = vmpackc.low %vm8591_vm8, %vm8591_vm8 }
  0xfa   : > { %8789 = vst [vmem:[#allocation38_spill] sm:$0xff] %v6356_v1  ;;  %8790 = vst [vmem:[#allocation39_spill] sm:$0xff] %v6359_v45  ;;  %v1316_v9 = vsel %vm1300_vm10, 65537, %v8769_v8  ;;  %v1379_v42 = vrot.slane %v1377_v10, 4  ;;  %vm817_vm7 = vcmp.ge.f32.partialorder %v6216_v30, 7.5  ;;  %vm818_vm15 = vcmp.ge.f32.partialorder %v6245_v40, 7.5 }
  0xfb   : > { %vm8597_vm0 = vcmp.ge.f32.partialorder %v6356_v1, 0.5  ;;  %vm8595_vm2 = vcmp.ge.f32.partialorder %v6359_v45, 0.5  ;;  %v707_v10 = vmul.f32 64.0, %v691_v27  ;;  %v8795_v24 = vcvt.s32.f32 %v6179_v63  ;;  %vm6455_vm8 = vmpackc.low %vm817_vm7, %vm817_vm7 }
  0xfc   : > { %v661_v19 = vmul.f32 0.015625, %v8586_v57  ;;  %v676_v56 = vadd.f32 0.00390625, %v660_v47  ;;  %vm8797_vm12 = vcmp.lt.f32.partialorder %v5631_v20, 6.5  ;;  %v8800_v31 = vshrl.u32 %v6112_v6, 16 }
  0xfd   : > { %v6392_v7 = vsub.f32 %v8795_v24, %v706_v23  ;;  %vm6399_vm6 = vmpackc.low %vm8797_vm12, %vm8797_vm12  ;;  %vm8801_vm5 = vsmask.f32 3328  ;;  %v1626_v47 = vshrl.u32 %v6322_v12, 16  ;;  %vm8805_vm10 = vcmp.lt.f32.partialorder %v5634_v21, 6.5 }
  0xfe   : > { %v1620_v16 = vor.u32 %v8800_v31, %v6204_v39  ;;  %v6409_v63 = vsel %vm8801_vm5, %v6109_v5, %v6324_v46  ;;  %vm6424_vm12 = vmpackc.low %vm8805_vm10, %vm8805_vm10  ;;  %v1624_v39 = vrot.slane %v1622_v26, 1  ;;  %v4289_v5 = vcombine.low %v1315_v33, %v1316_v9 }
  0xff   : > { %8796 = vst [vmem:[#allocation40_spill] sm:$0xff] %v6392_v7  ;;  %8802 = vst [vmem:[#allocation41_spill] sm:$0xff] %v6409_v63  ;;  %v8810_v24 = vcvt.s32.f32 %v6182_v3  ;;  %v739_v27 = vmul.f32 0.125, %v6392_v7  ;;  %v6441_v57 = vor.u32 %v1379_v42, %v1376_v62  ;;  %v989_v50 = vshrl.u32 %v4272_v58, 16 }
 0x100   : > { %vm6432_vm5 = vmand %vm817_vm7, %vm8597_vm0  ;;  %v677_v33 = vadd.f32 0.00390625, %v661_v19  ;;  %v692_v9 = vfloor.f32 %v676_v56  ;;  %v992_v36 = vshll.u32 %v4272_v58, 16  ;;  %vm8613_vm1 = vcmp.lt.f32.partialorder %v6356_v1, 6.5 }
 0x101   : > { %v6438_v12 = vsub.f32 %v8810_v24, %v707_v10  ;;  %vm6447_vm10 = vmand %vm818_vm15, %vm8595_vm2  ;;  %v755_v42 = vadd.f32 0.03125, %v739_v27  ;;  %v1565_v10 = vsel %vm6386_vm14, 65537, %v8769_v8  ;;  %vm8604_vm11 = vcmp.lt.f32.partialorder %v6359_v45, 6.5 }
 0x102   : > { %vm906_vm13 = vmpackc.low %vm6432_vm5, %vm6432_vm5  ;;  %v693_v58 = vfloor.f32 %v677_v33  ;;  %v708_v19 = vmul.f32 64.0, %v692_v9  ;;  %vm8816_vm3 = vcmp.lt.f32.partialorder %v5664_v37, 6.5  ;;  %v1566_v15 = vsel %vm6416_vm9, 65537, %v8769_v8 }
 0x103   : > { %8811 = vst [vmem:[#allocation42_spill] sm:$0xff] %v6438_v12  ;;  %v740_v62 = vmul.f32 0.125, %v6438_v12  ;;  %vm6470_vm2 = vmpackc.low %vm8816_vm3, %vm8816_vm3  ;;  %v1383_v27 = vshrl.u32 %v4289_v5, 16  ;;  %v1386_v24 = vshll.u32 %v4289_v5, 16  ;;  %vm8819_vm0 = vsmask.f32 7424 }
 0x104   : > { %vm907_vm14 = vmpackc.low %vm6447_vm10, %vm6447_vm10  ;;  %v6481_v33 = vsel %vm8819_vm0, %v1620_v16, %v1624_v39  ;;  %vm8821_vm3 = vsmask.f32 4352  ;;  %v771_v63 = vfloor.f32 %v755_v42  ;;  %v709_v61 = vmul.f32 64.0, %v693_v58 }
 0x105   : > { %v756_v0 = vadd.f32 0.03125, %v740_v62  ;;  %8820 = vst [vmem:[#allocation43_spill] sm:$0xff] %v6481_v33  ;;  %v6486_v9 = vsel %vm8821_vm3, %v6252_v35, %v6441_v57  ;;  %vm6492_vm9 = vmand %vm817_vm7, %vm8613_vm1  ;;  %v6496_v5 = vor.u32 %v1626_v47, %v1624_v39  ;;  %v991_v62 = vrot.slane %v989_v50, 4 }
 0x106   : > { %8822 = vst [vmem:[#allocation44_spill] sm:$0xff] %v6486_v9  ;;  %v994_v16 = vrot.slane %v992_v36, 5  ;;  %vm6502_vm0 = vmand %vm818_vm15, %vm8604_vm11  ;;  %v8827_v30 = vcvt.s32.f32 %v6281_v49  ;;  %v6510_v33 = vcombine.low %v1565_v10, %v1566_v15  ;;  %v6515_v47 = vsel %vm6379_vm4, 65537, %v8769_v8 }
 0x107   : > { %8829 = vst [vmem:[#allocation46_spill] sm:$0xff] %v6515_v47  ;;  %v772_v50 = vfloor.f32 %v756_v0  ;;  %v787_v36 = vmul.f32 8.0, %v771_v63  ;;  %vm6520_vm7 = vmpackc.low %vm818_vm15, %vm818_vm15  ;;  %v923_v0 = vsel %vm907_vm14, 65537, %v8769_v8  ;;  %v1385_v49 = vrot.slane %v1383_v27, 3 }
 0x108   : > { %v6508_v9 = vsub.f32 %v8827_v30, %v708_v19  ;;  %v922_v30 = vsel %vm906_vm13, 65537, %v8769_v8  ;;  %vm1301_vm15 = vmpackc.low %vm6492_vm9, %vm6492_vm9  ;;  %v1388_v51 = vrot.slane %v1386_v24, 4  ;;  %vm819_vm13 = vcmp.ge.f32.partialorder %v6392_v7, 7.5 }
 0x109   : > { %vm1302_vm4 = vmpackc.low %vm6502_vm0, %vm6502_vm0  ;;  %v788_v63 = vmul.f32 8.0, %v772_v50  ;;  %v6543_v6 = vsub.f32 %v6392_v7, %v787_v36  ;;  %v8833_v26 = vcvt.s32.f32 %v6320_v17  ;;  %v6550_v10 = vor.u32 %v994_v16, %v991_v62 }
 0x10a   : > { %8828 = vst [vmem:[#allocation45_spill] sm:$0xff] %v6508_v9  ;;  %vm8835_vm5 = vcmp.ge.f32.partialorder %v6356_v1, 0.5  ;;  %v741_v19 = vmul.f32 0.125, %v6508_v9  ;;  %v1797_v15 = vsel %vm6399_vm6, 65537, %v8769_v8  ;;  %v1798_v17 = vsel %vm6424_vm12, 65537, %v8769_v8 }
 0x10b   : > { %8832 = vst [vmem:[#allocation47_spill] sm:$0xff] %v6543_v6  ;;  %v6548_v42 = vsub.f32 %v8833_v26, %v709_v61  ;;  %vm6555_vm10 = vmpackc.low %vm8835_vm5, %vm8835_vm5  ;;  %v4273_v61 = vcombine.low %v922_v30, %v923_v0  ;;  %vm8838_vm14 = vcmp.ge.f32.partialorder %v6359_v45, 0.5  ;;  %v6574_v24 = vsub.f32 %v6438_v12, %v788_v63 }
 0x10c   : > { %vm6569_vm3 = vmpackc.low %vm8838_vm14, %vm8838_vm14  ;;  %vm820_vm5 = vcmp.ge.f32.partialorder %v6438_v12, 7.5  ;;  %vm8614_vm11 = vcmp.ge.f32.partialorder %v6543_v6, 0.5  ;;  %v1630_v4 = vshll.u32 %v6510_v33, 16  ;;  %v6582_v31 = vsel %vm6455_vm8, 65537, %v8769_v8 }
 0x10d   : > { %8834 = vst [vmem:[#allocation48_spill] sm:$0xff] %v6548_v42  ;;  %8841 = vst [vmem:[#allocation49_spill] sm:$0xff] %v6574_v24  ;;  %v1317_v62 = vsel %vm1301_vm15, 65537, %v8769_v8  ;;  %v6590_v16 = vor.u32 %v1388_v51, %v1385_v49  ;;  %v1318_v3 = vsel %vm1302_vm4, 65537, %v8769_v8  ;;  %vm8620_vm8 = vcmp.ge.f32.partialorder %v6574_v24, 0.5 }
 0x10e   : > { %8842 = vst [vmem:[#allocation50_spill] sm:$0xff] %v6582_v31  ;;  %vm6596_vm6 = vmand %vm819_vm13, %vm8614_vm11  ;;  %vm8612_vm12 = vcmp.lt.f32.partialorder %v6543_v6, 6.5  ;;  %v742_v23 = vmul.f32 0.125, %v6548_v42  ;;  %vm8845_vm15 = vsmask.f32 3328  ;;  %vm8609_vm14 = vcmp.lt.f32.partialorder %v6574_v24, 6.5 }
 0x10f   : > { %vm908_vm9 = vmpackc.low %vm6596_vm6, %vm6596_vm6  ;;  %v6615_v36 = vsel %vm8845_vm15, %v6324_v46, %v6550_v10  ;;  %v757_v30 = vadd.f32 0.03125, %v741_v19  ;;  %v1800_v0 = vsel %vm6470_vm2, 65537, %v8769_v8  ;;  %v998_v46 = vshrl.u32 %v4273_v61, 16 }
 0x110   : > { %vm6622_vm0 = vmand %vm820_vm5, %vm8620_vm8  ;;  %v1001_v51 = vshll.u32 %v4273_v61, 16  ;;  %v758_v63 = vadd.f32 0.03125, %v742_v23  ;;  %v1632_v26 = vrot.slane %v1630_v4, 1  ;;  %v4290_v45 = vcombine.low %v1317_v62, %v1318_v3 }
 0x111   : > { %vm909_vm4 = vmpackc.low %vm6622_vm0, %vm6622_vm0  ;;  %v1634_v40 = vshrl.u32 %v6510_v33, 16  ;;  %v773_v19 = vfloor.f32 %v757_v30  ;;  %vm8850_vm2 = vsmask.f32 4352  ;;  %v6651_v4 = vsel %vm6520_vm7, 65537, %v8769_v8 }
 0x112   : > { %vm6639_vm15 = vmand %vm819_vm13, %vm8612_vm12  ;;  %v6646_v61 = vsel %vm8850_vm2, %v6441_v57, %v6590_v16  ;;  %8852 = vst [vmem:[#allocation52_spill] sm:$0xff] %v6651_v4  ;;  %v774_v62 = vfloor.f32 %v758_v63  ;;  %v6662_v3 = vcombine.low %v5998_v32, %v1800_v0  ;;  %v1567_v57 = vsel %vm6555_vm10, 65537, %v8769_v8  ;;  %v6829_v4 = vld [vmem:[#allocation2] sm:$0xff] }
 0x113   : > { %8851 = vst [vmem:[#allocation51_spill] sm:$0xff] %v6646_v61  ;;  %vm6657_vm0 = vmand %vm820_vm5, %vm8609_vm14  ;;  %v924_v39 = vsel %vm908_vm9, 65537, %v8769_v8  ;;  %v925_v23 = vsel %vm909_vm4, 65537, %v8769_v8  ;;  %v789_v32 = vmul.f32 8.0, %v773_v19  ;;  %v1568_v58 = vsel %vm6569_vm3, 65537, %v8769_v8 }
 0x114   : > { %vm6677_vm7 = vmpackc.low %vm819_vm13, %vm819_vm13  ;;  %v1000_v30 = vrot.slane %v998_v46, 4  ;;  %v1003_v0 = vrot.slane %v1001_v51, 5  ;;  %v790_v50 = vmul.f32 8.0, %v774_v62  ;;  %vm8857_vm6 = vcmp.lt.f32.partialorder %v5799_v38, 6.5 }
 0x115   : > { %vm1303_vm10 = vmpackc.low %vm6639_vm15, %vm6639_vm15  ;;  %v1392_v27 = vshrl.u32 %v4290_v45, 16  ;;  %v1395_v19 = vshll.u32 %v4290_v45, 16  ;;  %v6698_v46 = vsub.f32 %v6508_v9, %v789_v32  ;;  %vm821_vm3 = vcmp.ge.f32.partialorder %v6508_v9, 7.5 }
 0x116   : > { %vm6690_vm9 = vmpackc.low %vm8857_vm6, %vm8857_vm6  ;;  %vm8861_vm4 = vsmask.f32 7424  ;;  %v4274_v62 = vcombine.low %v924_v39, %v925_v23  ;;  %v6705_v49 = vcombine.low %v1797_v15, %v1798_v17  ;;  %vm8624_vm2 = vcmp.lt.f32.partialorder %v5612_v54, 55.5 }
 0x117   : > { %vm1304_vm13 = vmpackc.low %vm6657_vm0, %vm6657_vm0  ;;  %8860 = vst [vmem:[#allocation53_spill] sm:$0xff] %v6698_v46  ;;  %v6703_v51 = vsel %vm8861_vm4, %v6496_v5, %v1632_v26  ;;  %vm8862_vm6 = vcmp.lt.f32.partialorder %v5802_v48, 6.5  ;;  %v6715_v45 = vcombine.low %v1567_v57, %v1568_v58  ;;  %v6725_v15 = vsub.f32 %v6548_v42, %v790_v50 }
 0x118   : > { %vm6711_vm14 = vmpackc.low %vm8862_vm6, %vm8862_vm6  ;;  %vm8617_vm4 = vcmp.ge.f32.partialorder %v6548_v42, 7.5  ;;  %vm8615_vm1 = vcmp.ge.f32.partialorder %v6698_v46, 0.5  ;;  %v6729_v17 = vor.u32 %v1003_v0, %v1000_v30  ;;  %v6734_v57 = vsel %vm6677_vm7, 65537, %v8769_v8 }
 0x119   : > { %vm6720_vm12 = vmpackc.low %vm8614_vm11, %vm8614_vm11  ;;  %8867 = vst [vmem:[#allocation54_spill] sm:$0xff] %v6725_v15  ;;  %v1319_v39 = vsel %vm1303_vm10, 65537, %v8769_v8  ;;  %v1320_v23 = vsel %vm1304_vm13, 65537, %v8769_v8  ;;  %v1394_v32 = vrot.slane %v1392_v27, 3  ;;  %v1397_v58 = vrot.slane %v1395_v19, 4 }
 0x11a   : > { %8868 = vst [vmem:[#allocation55_spill] sm:$0xff] %v6734_v57  ;;  %vm6752_vm7 = vmand %vm821_vm3, %vm8615_vm1  ;;  %vm8616_vm15 = vcmp.ge.f32.partialorder %v6725_v15, 0.5  ;;  %v1845_v56 = vshrl.u32 %v6662_v3, 16  ;;  %v1007_v33 = vshrl.u32 %v4274_v62, 16  ;;  %v1010_v8 = vshll.u32 %v4274_v62, 16 }
 0x11b   : > { %vm8626_vm0 = vcmp.lt.f32.partialorder %v6698_v46, 6.5  ;;  %vm6766_vm13 = vmand %vm8617_vm4, %vm8616_vm15  ;;  %vm8627_vm6 = vcmp.lt.f32.partialorder %v5614_v55, 55.5  ;;  %v1636_v0 = vor.u32 %v1634_v40, %v1632_v26  ;;  %v1638_v50 = vshll.u32 %v6715_v45, 16 }
 0x11c   : > { %v4291_v27 = vcombine.low %v1319_v39, %v1320_v23  ;;  %vm911_vm1 = vmpackc.low %vm6766_vm13, %vm6766_vm13  ;;  %vm8875_vm4 = vsmask.f32 3328  ;;  %v1838_v39 = vshrl.u32 %v6705_v49, 16  ;;  %v1841_v23 = vshll.u32 %v6705_v49, 16 }
 0x11d   : > { %vm6779_vm10 = vmpackc.low %vm820_vm5, %vm820_vm5  ;;  %v6786_v40 = vsel %vm8875_vm4, %v6550_v10, %v6729_v17  ;;  %vm8879_vm5 = vcmp.ge.f32.partialorder %v5631_v20, 0.5  ;;  %v6807_v26 = vor.u32 %v1397_v58, %v1394_v32  ;;  %v1642_v24 = vshrl.u32 %v6715_v45, 16 }
 0x11e   : > { %8876 = vst [vmem:[#allocation56_spill] sm:$0xff] %v6786_v40  ;;  %vm6793_vm11 = vmpackc.low %vm8620_vm8, %vm8620_vm8  ;;  %v6818_v49 = vrot.slane %v1845_v56, 7  ;;  %v1848_v57 = vshll.u32 %v6662_v3, 16  ;;  %v1009_v45 = vrot.slane %v1007_v33, 4  ;;  %v1012_v58 = vrot.slane %v1010_v8, 5 }
 0x11f   : > { %vm6803_vm4 = vmand %vm8624_vm2, %vm8879_vm5  ;;  %vm8884_vm5 = vcmp.ge.f32.partialorder %v5634_v21, 0.5  ;;  %v927_v3 = vsel %vm911_vm1, 65537, %v6829_v4  ;;  %v1640_v33 = vrot.slane %v1638_v50, 1  ;;  %v1569_v8 = vsel %vm6720_vm12, 65537, %v6829_v4 }
 0x120   : > { %vm6814_vm8 = vmand %vm821_vm3, %vm8626_vm0  ;;  %v1570_v35 = vsel %vm6793_vm11, 65537, %v6829_v4  ;;  %v1401_v30 = vshrl.u32 %v4291_v27, 16  ;;  %v1404_v31 = vshll.u32 %v4291_v27, 16  ;;  %v1801_v50 = vsel %vm6690_vm9, 65537, %v6829_v4 }
 0x121   : > { %vm6825_vm2 = vmand %vm8627_vm6, %vm8884_vm5  ;;  %vm8888_vm5 = vcmp.lt.f32.partialorder %v6725_v15, 6.5  ;;  %vm8889_vm6 = vcmp.ge.f32.partialorder %v6548_v42, 7.5  ;;  %v1802_v5 = vsel %vm6711_vm14, 65537, %v6829_v4  ;;  %vm8890_vm11 = vsmask.f32 4352 }
 0x122   : > { %vm8887_vm0 = vmpackc.low %vm6752_vm7, %vm6752_vm7  ;;  %v6866_v62 = vsel %vm8890_vm11, %v6590_v16, %v6807_v26  ;;  %v1840_v63 = vrot.slane %v1838_v39, 7  ;;  %v6876_v61 = vor.u32 %v1012_v58, %v1009_v45  ;;  %vm8650_vm9 = vcmp.lt.f32.partialorder %v5608_v52, 55.5 }
 0x123   : > { %v926_v56 = vsel %vm8887_vm0, 65537, %v6829_v4  ;;  %vm1290_vm15 = vmand %vm8889_vm6, %vm8888_vm5  ;;  %v6898_v58 = vcombine.low %v1801_v50, %v1802_v5  ;;  %vm8899_vm13 = vsmask.f32 7424  ;;  %v1644_v27 = vor.u32 %v1642_v24, %v1640_v33 }
 0x124   : > { %vm1305_vm7 = vmpackc.low %vm6814_vm8, %vm6814_vm8  ;;  %v4275_v12 = vcombine.low %v926_v56, %v927_v3  ;;  %vm8891_vm8 = vcmp.ge.f32.partialorder %v6698_v46, 0.5  ;;  %v1850_v56 = vor.u32 %v1848_v57, %v6818_v49  ;;  %v4299_v3 = vcombine.low %v1569_v8, %v1570_v35 }
 0x125   : > { %vm1306_vm1 = vmpackc.low %vm1290_vm15, %vm1290_vm15  ;;  %v1321_v40 = vsel %vm1305_vm7, 65537, %v6829_v4  ;;  %vm8896_vm15 = vcmp.ge.f32.partialorder %v6725_v15, 0.5  ;;  %v1403_v57 = vrot.slane %v1401_v30, 3  ;;  %vm8902_vm7 = vcmp.ge.f32.partialorder %v5652_v34, 0.5 }
 0x126   : > { %v1322_v47 = vsel %vm1306_vm1, 65537, %v6829_v4  ;;  %vm6872_vm12 = vmpackc.low %vm8891_vm8, %vm8891_vm8  ;;  %v1016_v15 = vshrl.u32 %v4275_v12, 16  ;;  %v1019_v50 = vshll.u32 %v4275_v12, 16  ;;  %vm8905_vm11 = vcmp.lt.f32.partialorder %v5960_v41, 6.5 }
 0x127   : > { %vm6881_vm14 = vmpackc.low %vm821_vm3, %vm821_vm3  ;;  %v4292_v16 = vcombine.low %v1321_v40, %v1322_v47  ;;  %v1571_v45 = vsel %vm6872_vm12, 65537, %v6829_v4  ;;  %vm8649_vm3 = vcmp.lt.f32.partialorder %v5610_v53, 55.5  ;;  %v6901_v47 = vsel %vm8899_vm13, %v1636_v0, %v1640_v33 }
 0x128   : > { %vm6890_vm0 = vmpackc.low %vm8896_vm15, %vm8896_vm15  ;;  %v1406_v40 = vrot.slane %v1404_v31, 4  ;;  %v8906_v0 = vmov 0  ;;  %vm8909_vm12 = vcmp.lt.f32.partialorder %v6152_v60, 6.5  ;;  %v8910_v24 = vmov 0 }
 0x129   : > { %v1572_v8 = vsel %vm6890_vm0, 65537, %v6829_v4  ;;  %vm6909_vm5 = vmpackc.low %vm8889_vm6, %vm8889_vm6  ;;  %v1410_v5 = vshrl.u32 %v4292_v16, 16  ;;  %v1177_v33 = vsel %vm6779_vm10, 65537, %v6829_v4  ;;  %v1413_v12 = vshll.u32 %v4292_v16, 16 }
 0x12a   : > { %vm6917_vm1 = vmand %vm8650_vm9, %vm8902_vm7  ;;  %v6938_v30 = vcombine.low %v1571_v45, %v1572_v8  ;;  %v6940_v39 = vor.u32 %v1841_v23, %v1840_v63  ;;  %vm8913_vm0 = vcmp.ge.f32.partialorder %v5664_v37, 0.5  ;;  %v1646_v9 = vshll.u32 %v4299_v3, 16 }
 0x12b   : > { %vm6924_vm8 = vmpackc.low %vm8905_vm11, %vm8905_vm11  ;;  %vm8916_vm6 = vsmask.f32 3328  ;;  %vm8917_vm10 = vsmask.f32 256  ;;  %v1853_v23 = vshrl.u32 %v6898_v58, 16  ;;  %v1178_v16 = vsel %vm6881_vm14, 65537, %v6829_v4 }
 0x12c   : > { %v8907_v0 = vsel %vm6924_vm8, 4294967295, %v8906_v0  ;;  %vm6931_vm15 = vmpackc.low %vm8909_vm12, %vm8909_vm12  ;;  %v6953_v60 = vsel %vm8916_vm6, %v6729_v17, %v6876_v61  ;;  %v6956_v19 = vsel %vm8917_vm10, %v1840_v63, %v1850_v56  ;;  %v1407_v45 = vor.u32 %v1406_v40, %v1403_v57 }
 0x12d   : > { %8908 = vst [vmem:[#allocation57_spill] sm:$0xff] %v8907_v0  ;;  %v8911_v24 = vsel %vm6931_vm15, 4294967295, %v8910_v24  ;;  %vm6946_vm13 = vmand %vm8649_vm3, %vm8913_vm0  ;;  %v1650_v8 = vshrl.u32 %v4299_v3, 16  ;;  %v1018_v63 = vrot.slane %v1016_v15, 4  ;;  %v1021_v56 = vrot.slane %v1019_v50, 5 }
 0x12e   : > { %8912 = vst [vmem:[#allocation58_spill] sm:$0xff] %v8911_v24  ;;  %8918 = vst [vmem:[#allocation59_spill] sm:$0xff] %v6956_v19  ;;  %v1412_v41 = vrot.slane %v1410_v5, 3  ;;  %v1654_v7 = vshll.u32 %v6938_v30, 16  ;;  %v1415_v19 = vrot.slane %v1413_v12, 4  ;;  %v8920_v15 = vmov 0 }
 0x12f   : > { %vm2027_vm7 = vmpackc.low %vm6803_vm4, %vm6803_vm4  ;;  %v1648_v57 = vrot.slane %v1646_v9, 1  ;;  %v6993_v50 = vrot.slane %v1853_v23, 7  ;;  %v1856_v5 = vshll.u32 %v6898_v58, 16  ;;  %v8928_v31 = vmov 0 }
 0x130   : > { %vm2028_vm11 = vmpackc.low %vm6825_vm2, %vm6825_vm2  ;;  %v2043_v17 = vsel %vm2027_vm7, 65537, %v6829_v4  ;;  %vm8919_vm2 = vcmp.lt.f32.partialorder %v6356_v1, 6.5  ;;  %v7003_v9 = vcombine.low %v1177_v33, %v1178_v16  ;;  %vm8931_vm10 = vcmp.lt.f32.partialorder %v5614_v55, 55.5 }
 0x131   : > { %vm2029_vm4 = vmpackc.low %vm6917_vm1, %vm6917_vm1  ;;  %v2044_v10 = vsel %vm2028_vm11, 65537, %v6829_v4  ;;  %vm8923_vm1 = vcmp.lt.f32.partialorder %v5612_v54, 55.5  ;;  %8926 = vst [vmem:[#allocation61_spill] sm:$0xff] %v6993_v50  ;;  %vm8934_vm11 = vcmp.lt.f32.partialorder %v6698_v46, 6.5  ;;  %v8935_v58 = vmov 0 }
 0x132   : > { %vm2030_vm14 = vmpackc.low %vm6946_vm13, %vm6946_vm13  ;;  %v2045_v32 = vsel %vm2029_vm4, 65537, %v6829_v4  ;;  %v4309_v3 = vcombine.low %v2043_v17, %v2044_v10  ;;  %vm8927_vm13 = vcmp.lt.f32.partialorder %v6543_v6, 6.5  ;;  %v1652_v16 = vor.u32 %v1650_v8, %v1648_v57 }
 0x133   : > { %vm6981_vm12 = vmpackc.low %vm8919_vm2, %vm8919_vm2  ;;  %v2046_v40 = vsel %vm2030_vm14, 65537, %v6829_v4  ;;  %vm8938_vm14 = vsmask.f32 4352  ;;  %v7033_v46 = vor.u32 %v1415_v19, %v1412_v41  ;;  %v1658_v41 = vshrl.u32 %v6938_v30, 16  ;;  %v8999_v30 = vld [vmem:[#allocation35_spill] sm:$0xff] }
 0x134   : > { %v8921_v15 = vsel %vm6981_vm12, 4294967295, %v8920_v15  ;;  %vm6989_vm0 = vmpackc.low %vm8923_vm1, %vm8923_vm1  ;;  %v4310_v12 = vcombine.low %v2045_v32, %v2046_v40  ;;  %v2084_v17 = vshrl.u32 %v4309_v3, 16  ;;  %v2087_v10 = vshll.u32 %v4309_v3, 16 }
 0x135   : > { %8922 = vst [vmem:[#allocation60_spill] sm:$0xff] %v8921_v15  ;;  %vm6999_vm6 = vmpackc.low %vm8927_vm13, %vm8927_vm13  ;;  %v7021_v33 = vsel %vm8938_vm14, %v6807_v26, %v1407_v45  ;;  %v7023_v32 = vor.u32 %v1021_v56, %v1018_v63  ;;  %v1656_v40 = vrot.slane %v1654_v7, 1  ;;  %vm8941_vm13 = vcmp.lt.f32.partialorder %v5631_v20, 6.5 }
 0x136   : > { %v8929_v31 = vsel %vm6999_vm6, 4294967295, %v8928_v31  ;;  %vm7008_vm7 = vmpackc.low %vm8931_vm10, %vm8931_vm10  ;;  %v2092_v6 = vshrl.u32 %v4310_v12, 16  ;;  %v2095_v1 = vshll.u32 %v4310_v12, 16  ;;  %vm8945_vm14 = vsmask.f32 7424 }
 0x137   : > { %8930 = vst [vmem:[#allocation62_spill] sm:$0xff] %v8929_v31  ;;  %vm7015_vm4 = vmpackc.low %vm8934_vm11, %vm8934_vm11  ;;  %v7044_v8 = vsel %vm8945_vm14, %v1644_v27, %v1648_v57  ;;  %v7049_v63 = vsel %vm6909_vm5, 65537, %v6829_v4  ;;  %vm8947_vm3 = vcmp.lt.f32.partialorder %v5614_v55, 55.5  ;;  %v1858_v20 = vor.u32 %v1856_v5, %v6993_v50 }
 0x138   : > { %v8936_v58 = vsel %vm7015_vm4, 4294967295, %v8935_v58  ;;  %vm7028_vm2 = vmpackc.low %vm8650_vm9, %vm8650_vm9  ;;  %v2086_v19 = vrot.slane %v2084_v17, 4  ;;  %v2089_v27 = vrot.slane %v2087_v10, 5  ;;  %v2094_v56 = vrot.slane %v2092_v6, 4 }
 0x139   : > { %8937 = vst [vmem:[#allocation63_spill] sm:$0xff] %v8936_v58  ;;  %vm8942_vm10 = vmmov %vm8923_vm1  ;;  %vm8946_vm1 = vcmp.lt.f32.partialorder %v5634_v21, 6.5  ;;  %v2097_v7 = vrot.slane %v2095_v1, 5  ;;  %vm8951_vm5 = vcmp.lt.f32.partialorder %v5608_v52, 55.5  ;;  %vm8956_vm14 = vcmp.lt.f32.partialorder %v5610_v53, 55.5  ;;  %v9001_v58 = vld [vmem:[#allocation43_spill] sm:$0xff] }
 0x13a   : > { %vm7039_vm11 = vmand %vm8942_vm10, %vm8941_vm13  ;;  %vm8950_vm13 = vcmp.lt.f32.partialorder %v5652_v34, 6.5  ;;  %vm8664_vm6 = vcmp.lt.f32.partialorder %v5680_v44, 55.5  ;;  %v8959_v1 = vcombine.low %v6033_v59, %v6081_v14  ;;  %v7115_v59 = vsel %vm6989_vm0, 65537, %v6829_v4 }
 0x13b   : > { %vm7056_vm9 = vmand %vm8947_vm3, %vm8946_vm1  ;;  %vm8954_vm3 = vsmask.f32 3328  ;;  %vm8955_vm1 = vcmp.lt.f32.partialorder %v5664_v37, 6.5  ;;  %v7092_v37 = vld [vmem:[%s8538_s2] ss:$0 sm:$0xff]  ;;  %v8964_v14 = vcombine.low %v5880_v28, %v5885_v29  ;;  %v2294_v42 = vsel %vm7008_vm7, 65537, %v6829_v4 }
 0x13c   : > { %vm7065_vm10 = vmand %vm8951_vm5, %vm8950_vm13  ;;  %v7072_v55 = vsel %vm8954_vm3, %v6876_v61, %v7023_v32  ;;  %vm7097_vm13 = vcmp.ne.s16.totalorder %v8959_v1, 0  ;;  %vm1025_vm3 = vcmp.ne.s16.totalorder %v5941_v2, 0  ;;  %v2295_v12 = vsel %vm7028_vm2, 65537, %v6829_v4 }
 0x13d   : > { %vm7078_vm4 = vmand %vm8956_vm14, %vm8955_vm1  ;;  %vm8962_vm1 = vsmask.f32 7424  ;;  %vm8963_vm14 = vsmask.f32 4352  ;;  %v7149_v23 = vor.u32 %v2089_v27, %v2086_v19  ;;  %vm8665_vm7 = vcmask 1043456  }
 0x13e   : > { %v7104_v61 = vsel %vm8962_vm1, %v1652_v16, %v1656_v40  ;;  %v7110_v57 = vsel %vm8963_vm14, %v1407_v45, %v7033_v46  ;;  %vm2419_vm5 = vmpackc.low %vm7039_vm11, %vm7039_vm11  ;;  %vm7123_vm1 = vcmp.ne.s16.totalorder %v8964_v14, 0  ;;  %v7129_v45 = vor.u32 %v1658_v41, %v1656_v40 }
 0x13f   : > { %vm2420_vm0 = vmpackc.low %vm7056_vm9, %vm7056_vm9  ;;  %v2435_v28 = vsel %vm2419_vm5, 65537, %v6829_v4  ;;  %vm8967_vm14 = vsmask.f32 256  ;;  %v7151_v16 = vor.u32 %v2097_v7, %v2094_v56  ;;  %v7161_v19 = vcombine.low %v2294_v42, %v2295_v12 }
 0x140   : > { %vm2421_vm11 = vmpackc.low %vm7065_vm10, %vm7065_vm10  ;;  %v2436_v17 = vsel %vm2420_vm0, 65537, %v6829_v4  ;;  %v7147_v10 = vsel %vm8967_vm14, %v6818_v49, %v1858_v20  ;;  %vm8969_vm2 = vcmp.ge.f32.partialorder %v5799_v38, 0.5  ;;  %vm8970_vm10 = vcmp.lt.f32.partialorder %v5676_v43, 55.5 }
 0x141   : > { %8968 = vst [vmem:[#allocation64_spill] sm:$0xff] %v7151_v16  ;;  %vm2422_vm9 = vmpackc.low %vm7078_vm4, %vm7078_vm4  ;;  %v2437_v41 = vsel %vm2421_vm11, 65537, %v6829_v4  ;;  %v4326_v54 = vcombine.low %v2435_v28, %v2436_v17  ;;  %vm8974_vm4 = vcmp.ge.f32.partialorder %v5802_v48, 0.5  ;;  %vm1419_vm11 = vcmp.ne.s16.totalorder %v6128_v22, 0 }
 0x142   : > { %v2438_v27 = vsel %vm2422_vm9, 65537, %v6829_v4  ;;  %vm7168_vm5 = vmand %vm8970_vm10, %vm8969_vm2  ;;  %vm8978_vm9 = vsmask.f32 3328  ;;  %v8981_v17 = vmov 0 }
 0x143   : > { %v7176_v1 = vcombine.low %v2437_v41, %v2438_v27  ;;  %vm7182_vm14 = vmand %vm8664_vm6, %vm8974_vm4  ;;  %v2476_v12 = vshrl.u32 %v4326_v54, 16  ;;  %vm1665_vm6 = vcmp.ne.s16.totalorder %v6703_v51, 0  ;;  %v5067_v51 = vld [vmem:[#allocation9 + $0x198] sm:$0xff]  }
 0x144   : > { %vm2031_vm2 = vmpackc.low %vm7168_vm5, %vm7168_vm5  ;;  %vm8980_vm5 = vcmp.lt.f32.partialorder %v5610_v53, 55.5 }
 0x145   : > { %8973 = vst [vmem:[#allocation65_spill] sm:$0xff] %v7176_v1  ;;  %vm2032_vm4 = vmpackc.low %vm7182_vm14, %vm7182_vm14  ;;  %v2047_v27 = vsel %vm2031_vm2, 65537, %v6829_v4  ;;  %vm8986_vm14 = vcmp.lt.f32.partialorder %v5676_v43, 55.5 }
 0x146   : > { %v2048_v56 = vsel %vm2032_vm4, 65537, %v6829_v4  ;;  %vm7222_vm2 = vmpackc.low %vm8986_vm14, %vm8986_vm14  ;;  %vm8992_vm4 = vcmp.ne.s16.totalorder %v6294_v11, 0 }
 0x17c   : > { %v4824_v29 = vpop.f32.mrb[0].mxu0 }
 0x17d   : > { %v526_v3 = vadd.f32 %v4824_v29, %v7092_v37  ;;  %v517_v40 = vpop.f32.mrb[1].mxu0  ;;  %v7194_v29 = vsel %vm8978_vm9, %v7149_v23, %v7151_v16  ;;  %vm7211_vm9 = vmpackc.low %vm8980_vm5, %vm8980_vm5  ;;  %vm8993_vm5 = vcmp.ne.s16.totalorder %v6159_v13, 0  ;;  %v8995_v13 = vld [vmem:[#allocation34_spill] sm:$0xff] }
 0x17e   : > { %v518_v49 = vadd.f32 %v7092_v37, %v517_v40  ;;  %v4825_v20 = vpop.f32.mrb[2].mxu0  ;;  %v2479_v40 = vshll.u32 %v4326_v54, 16  ;;  %v8982_v17 = vsel %vm7211_vm9, 4294967295, %v8981_v17 }
 0x17f   : > { %v529_v35 = vadd.f32 %v4825_v20, %v7092_v37  ;;  %v520_v21 = vpop.f32.mrb[3].mxu0  ;;  %v582_v41 = vmax.f32 %v526_v3, 0.0  ;;  %8983 = vst [vmem:[#allocation66_spill] sm:$0xff] %v8982_v17  ;;  %v7215_v3 = vrot.slane %v2476_v12, 3 }
 0x180   : > { %v521_v28 = vadd.f32 %v7092_v37, %v520_v21  ;;  %v2484_v21 = vshrl.u32 %v7176_v1, 16  ;;  %v580_v42 = vmax.f32 %v518_v49, 0.0  ;;  %v7229_v14 = vrot.slane %v2479_v40, 4 }
 0x181   : > { %v583_v20 = vmax.f32 %v529_v35, 0.0  ;;  %8984 = vst [vmem:[#allocation67_spill] sm:$0xff] %v7215_v3  ;;  %v7217_v35 = vcombine.low %v2047_v27, %v2048_v56  ;;  %v9000_v3 = vld [vmem:[#allocation22_spill] sm:$0xff]  ;;  %v9016_v27 = vld [vmem:[#allocation28_spill] sm:$0xff] }
 0x182   : > { %v581_v7 = vmax.f32 %v521_v28, 0.0  ;;  %8989 = vst [vmem:[#allocation69_spill] sm:$0xff] %v7229_v14 }
 0x183   : > { %v597_v54 = vpack.c.bf16 %v583_v20, %v582_v41  ;;  %8985 = vst [vmem:[#allocation68_spill] sm:$0xff] %v7217_v35  ;;  %v7236_v20 = vrot.slane %v2484_v21, 3 }
 0x184   : > { %v7231_v28 = vpack.c.bf16 %v581_v7, %v580_v42  ;;  %v4828_v12 = vpop.f32.mrb[4].mxu0 }
 0x185   : > { %8991 = vst [vmem:[#allocation71_spill] sm:$0xff] %v7236_v20  ;;  %605 = vst [vmem:[#allocation2 + $0x10] sm:$0xff] %v597_v54  ;;  %v542_v56 = vadd.f32 %v4828_v12, %v7092_v37  ;;  %v533_v34 = vpop.f32.mrb[5].mxu0  ;;  %v1216_v52 = vsel %vm7097_vm13, %v597_v54, 0  ;;  %v7244_v7 = vsel %vm8992_vm4, %v597_v54, 0  ;;  %v7248_v42 = vsel %vm8993_vm5, %v597_v54, 0 }
 0x186   : > { %8990 = vst [vmem:[#allocation70_spill] sm:$0xff] %v7231_v28  ;;  %604 = vst [vmem:[#allocation2 + $0x8] sm:$0xff] %v7231_v28  ;;  %v534_v40 = vadd.f32 %v7092_v37, %v533_v34  ;;  %v4829_v21 = vpop.f32.mrb[6].mxu0  ;;  %v1215_v12 = vsel %vm7123_vm1, %v7231_v28, 0  ;;  %v1034_v6 = vsel %vm1025_vm3, %v7231_v28, 0  ;;  %vm8994_vm13 = vcmp.ne.s16.totalorder %v6139_v25, 0 }
 0x187   : > { %v1671_v11 = vsel %vm8994_vm13, %v7231_v28, 0  ;;  %v8996_v54 = vcombine.low %v6221_v18, %v8995_v13  ;;  %v586_v34 = vmax.f32 %v542_v56, 0.0  ;;  %v545_v53 = vadd.f32 %v4829_v21, %v7092_v37  ;;  %v536_v5 = vpop.f32.mrb[7].mxu0 }
 0x188   : > { %v1234_v41 = vrot.slane %v1215_v12, 4  ;;  %v1052_v26 = vshrl.u32 %v1034_v6, 16  ;;  %vm1420_vm1 = vcmp.ne.s16.totalorder %v8999_v30, 0  ;;  %v584_v2 = vmax.f32 %v534_v40, 0.0 }
 0x189   : > { %vm7264_vm14 = vcmp.ne.s16.totalorder %v8996_v54, 0  ;;  %v537_v20 = vadd.f32 %v7092_v37, %v536_v5  ;;  %v1055_v25 = vshll.u32 %v1034_v6, 16  ;;  %v1685_v1 = vshrl.u32 %v1671_v11, 16 }
 0x18a   : > { %v587_v14 = vmax.f32 %v545_v53, 0.0  ;;  %v1235_v18 = vsel %vm8665_vm7, %v9000_v3, %v1234_v41  ;;  %v1054_v13 = vrot.slane %v1052_v26, 3  ;;  %v1688_v54 = vshll.u32 %v1671_v11, 16  ;;  %v9002_v3 = vld [vmem:[#allocation41_spill] sm:$0xff] }
 0x18b   : > { %vm1664_vm3 = vcmp.ne.s16.totalorder %v9001_v58, 0  ;;  %v585_v56 = vmax.f32 %v537_v20, 0.0  ;;  %3347 = vmatprep.mubr.bf16.mxu1 %v1235_v18  ;;  %v1057_v21 = vrot.slane %v1055_v25, 4  ;;  %v1687_v12 = vrot.slane %v1685_v1, 7  ;;  %v5049_v1 = vld [vmem:[#allocation9 + $0x100] sm:$0xff]   ;;  %v5054_v58 = vld [vmem:[#allocation9 + $0x158] sm:$0xff]  }
 0x18c   : > { %v7274_v31 = vrot.slane %v1216_v52, 4  ;;  %v599_v15 = vpack.c.bf16 %v587_v14, %v586_v34  ;;  %v1428_v40 = vsel %vm1419_vm11, %v7231_v28, 0  ;;  %v1693_v53 = vshrl.u32 %v7244_v7, 16  ;;  %v4832_v11 = vpop.f32.mrb[8].mxu0 }
 0x18d   : > { %v1696_v6 = vshll.u32 %v7244_v7, 16  ;;  %v7282_v26 = vpack.c.bf16 %v585_v56, %v584_v2  ;;  %v7284_v20 = vor.u32 %v1057_v21, %v1054_v13  ;;  %v1690_v5 = vor.u32 %v1688_v54, %v1687_v12  ;;  %v549_v14 = vpop.f32.mrb[9].mxu0  ;;  %v5050_v7 = vld [vmem:[#allocation9 + $0x148] sm:$0xff]   ;;  %v9003_v54 = vld [vmem:[#allocation21_spill] sm:$0xff]  ;;  %v9004_v56 = vld [vmem:[#allocation20_spill] sm:$0xff] }
 0x18e   : > { %v1237_v52 = vsel %vm8665_vm7, %v1234_v41, %v7274_v31  ;;  %607 = vst [vmem:[#allocation2 + $0x20] sm:$0xff] %v599_v15  ;;  %v558_v22 = vadd.f32 %v4832_v11, %v7092_v37  ;;  %v1445_v34 = vshrl.u32 %v1428_v40, 16  ;;  %v1448_v25 = vshll.u32 %v1428_v40, 16  ;;  %v4833_v13 = vpop.f32.mrb[10].mxu0  ;;  %v9007_v15 = vld [vmem:[#allocation30_spill] sm:$0xff]  ;;  %v9009_v40 = vld [vmem:[#allocation36_spill] sm:$0xff] }
 0x18f   : > { %v7289_v18 = vrot.slane %v1693_v53, 7  ;;  %606 = vst [vmem:[#allocation2 + $0x18] sm:$0xff] %v7282_v26  ;;  %v550_v2 = vadd.f32 %v7092_v37, %v549_v14  ;;  %v9005_v21 = vor.u32 %v9003_v54, %v9004_v56  ;;  %vm9006_vm11 = vsmask.f32 4352  ;;  %v9010_v53 = vld [vmem:[#allocation37_spill] sm:$0xff]  ;;  %v552_v35 = vpop.f32.mrb[11].mxu0 }
 0x190   : > { %vm9008_vm5 = vsmask.f32 256  ;;  %v1061_v28 = vshrl.u32 %v7248_v42, 16  ;;  %v9011_v24 = vcombine.low %v9009_v40, %v9010_v53  ;;  %v590_v14 = vmax.f32 %v558_v22, 0.0  ;;  %v5051_v40 = vld [vmem:[#allocation9 + $0x108] sm:$0xff]   ;;  %v9014_v53 = vld [vmem:[#allocation44_spill] sm:$0xff] }
 0x191   : > { %v1059_v41 = vsel %vm9006_vm11, %v9005_v21, %v7284_v20  ;;  %v1691_v11 = vsel %vm9008_vm5, %v9007_v15, %v1690_v5  ;;  %v561_v16 = vadd.f32 %v4833_v13, %v7092_v37  ;;  %v1447_v54 = vrot.slane %v1445_v34, 4  ;;  %v1268_v21 = vld [vmem:[#allocation2 + $0x10] sm:$0xff] }
 0x192   : > { %vm7304_vm13 = vcmp.ne.s16.totalorder %v9011_v24, 0  ;;  %3348 = vmatmul.mubr.bf16.vlgmr.msra.gmra.mrb[0].mxu1 %v1059_v41  ;;  %3444 = vmatprep.mubr.bf16.mxu0 %v1691_v11  ;;  %v1450_v56 = vrot.slane %v1448_v25, 5  ;;  %v588_v0 = vmax.f32 %v550_v2, 0.0  ;;  %v553_v5 = vadd.f32 %v7092_v37, %v552_v35  ;;  %v5052_v25 = vld [vmem:[#allocation9 + $0x150] sm:$0xff]  }
 0x193   : > { %4647 = vmatpush3.bf16.msra.mxu1 %v5049_v1  ;;  %3355 = vmatprep.mubr.bf16.mxu1 %v1237_v52  ;;  %v1698_v15 = vor.u32 %v1696_v6, %v7289_v18  ;;  %v1063_v24 = vrot.slane %v1061_v28, 3  ;;  %v591_v22 = vmax.f32 %v561_v16, 0.0  ;;  %v1064_v13 = vshll.u32 %v7248_v42, 16  ;;  %v9015_v16 = vld [vmem:[#allocation51_spill] sm:$0xff]  ;;  %v5057_v42 = vld [vmem:[#allocation9 + $0x180] sm:$0xff]  }
 0x194   : > { %v7312_v17 = vor.u32 %v1450_v56, %v1447_v54  ;;  %4648 = vmatprep.subr.bf16.mxu1 %v5050_v7  ;;  %v1217_v34 = vsel %vm7264_vm14, %v7282_v26, 0  ;;  %v589_v35 = vmax.f32 %v553_v5, 0.0  ;;  %v1429_v28 = vsel %vm1420_vm1, %v1268_v21, 0  ;;  %v9017_v7 = vld [vmem:[#allocation27_spill] sm:$0xff]  ;;  %v4836_v30 = vpop.f32.mrb[12].mxu0 }
 0x195   : > { %v1699_v1 = vsel %vm9008_vm5, %v1687_v12, %v1698_v15  ;;  %v7319_v52 = vrot.slane %v1217_v34, 4  ;;  %vm1028_vm11 = vcmp.ne.s16.totalorder %v6615_v36, 0  ;;  %v601_v6 = vpack.c.bf16 %v591_v22, %v590_v14  ;;  %v5060_v54 = vld [vmem:[#allocation9 + $0x1c8] sm:$0xff]   ;;  %v9020_v15 = vld [vmem:[#allocation46_spill] sm:$0xff] }
 0x196   : > { %v9018_v2 = vor.u32 %v9016_v27, %v9017_v7  ;;  %vm9019_vm14 = vsmask.f32 3328  ;;  %v1066_v12 = vrot.slane %v1064_v13, 4  ;;  %v1454_v11 = vshrl.u32 %v1429_v28, 16  ;;  %v9021_v22 = vld [vmem:[#allocation50_spill] sm:$0xff]  ;;  %v5053_v27 = vld [vmem:[#allocation9 + $0x110] sm:$0xff]  }
 0x197   : > { %v600_v56 = vpack.c.bf16 %v589_v35, %v588_v0  ;;  %4649 = vmatpush3.bf16.msra.mxu1 %v5051_v40  ;;  %v1239_v21 = vsel %vm8665_vm7, %v7274_v31, %v7319_v52  ;;  %v1457_v5 = vshll.u32 %v1429_v28, 16  ;;  %v1673_v14 = vsel %vm1664_vm3, %v7282_v26, 0  ;;  %609 = vst [vmem:[#allocation2 + $0x30] sm:$0xff] %v601_v6  ;;  %v565_v40 = vpop.f32.mrb[13].mxu0 }
 0x198   : > { %v1452_v41 = vsel %vm9019_vm14, %v9018_v2, %v7312_v17  ;;  %v9022_v34 = vcombine.low %v9020_v15, %v9021_v22  ;;  %v574_v0 = vadd.f32 %v4836_v30, %v7092_v37  ;;  %v7345_v35 = vor.u32 %v1066_v12, %v1063_v24  ;;  %4650 = vmatprep.subr.bf16.mxu1 %v5052_v25  ;;  %v4837_v2 = vpop.f32.mrb[14].mxu0  ;;  %v1143_v30 = vld [vmem:[#allocation2 + $0x20] sm:$0xff]  ;;  %v5061_v24 = vld [vmem:[#allocation9 + $0x188] sm:$0xff]  }
 0x199   : > { %3445 = vmatmul.mubr.bf16.vlgmr.msra.gmra.mrb[16].mxu0 %v1452_v41  ;;  %v1456_v31 = vrot.slane %v1454_v11, 4  ;;  %v1701_v28 = vshrl.u32 %v1673_v14, 16  ;;  %608 = vst [vmem:[#allocation2 + $0x28] sm:$0xff] %v600_v56  ;;  %v566_v7 = vadd.f32 %v7092_v37, %v565_v40  ;;  %v1459_v41 = vrot.slane %v1457_v5, 5  ;;  %v568_v12 = vpop.f32.mrb[15].mxu0  ;;  %v5064_v5 = vld [vmem:[#allocation9 + $0x1d0] sm:$0xff]  }
 0x19a   : > { %vm7340_vm1 = vcmp.ne.s16.totalorder %v9022_v34, 0  ;;  %3452 = vmatprep.mubr.bf16.mxu0 %v1699_v1  ;;  %v1704_v15 = vshll.u32 %v1673_v14, 16  ;;  %vm9025_vm3 = vcmp.ne.s16.totalorder %v9002_v3, 0  ;;  %4711 = vmatpush3.bf16.msra.mxu0 %v5057_v42  ;;  %v594_v1 = vmax.f32 %v574_v0, 0.0  ;;  %v1269_v22 = vld [vmem:[#allocation2 + $0x18] sm:$0xff] }
 0x19b   : > { %v1036_v6 = vsel %vm9025_vm3, %v7282_v26, 0  ;;  %v577_v25 = vadd.f32 %v4837_v2, %v7092_v37  ;;  %vm9026_vm14 = vsmask.f32 4352  ;;  %v7356_v56 = vrot.slane %v1701_v28, 7  ;;  %4712 = vmatprep.subr.bf16.mxu0 %v5060_v54  ;;  %4651 = vmatpush3.bf16.msra.mxu1 %v5053_v27  ;;  %v5055_v28 = vld [vmem:[#allocation9 + $0x118] sm:$0xff]   ;;  %v9027_v54 = vld [vmem:[#allocation56_spill] sm:$0xff] }
 0x19c   : > { %v1068_v11 = vsel %vm9026_vm14, %v7284_v20, %v7345_v35  ;;  %v592_v14 = vmax.f32 %v566_v7, 0.0  ;;  %v569_v3 = vadd.f32 %v7092_v37, %v568_v12  ;;  %v7359_v26 = vor.u32 %v1459_v41, %v1456_v31  ;;  %v9028_v7 = vld [vmem:[#allocation52_spill] sm:$0xff]  ;;  %v9029_v2 = vld [vmem:[#allocation55_spill] sm:$0xff]  ;;  %4652 = vmatprep.subr.bf16.mxu1 %v5054_v58 }
 0x19d   : > { %3356 = vmatmul.mubr.bf16.gmra.mrb[4].mxu1 %v1068_v11  ;;  %v1070_v42 = vshrl.u32 %v1036_v6, 16  ;;  %v595_v34 = vmax.f32 %v577_v25, 0.0  ;;  %v1706_v0 = vor.u32 %v1704_v15, %v7356_v56  ;;  %v1073_v40 = vshll.u32 %v1036_v6, 16  ;;  %v5058_v15 = vld [vmem:[#allocation9 + $0x160] sm:$0xff]   ;;  %v5065_v6 = vld [vmem:[#allocation9 + $0x190] sm:$0xff]  }
 0x19e   : > { %3363 = vmatprep.mubr.bf16.mxu1 %v1239_v21  ;;  %v1218_v20 = vsel %vm7304_vm13, %v1143_v30, 0  ;;  %v9030_v37 = vcombine.low %v9028_v7, %v9029_v2  ;;  %vm1423_vm5 = vcmp.ne.s16.totalorder %v6866_v62, 0  ;;  %v593_v21 = vmax.f32 %v569_v3, 0.0  ;;  %4713 = vmatpush3.bf16.msra.mxu0 %v5061_v24  ;;  %v5066_v3 = vld [vmem:[#allocation9 + $0x1d8] sm:$0xff]  }
 0x19f   : > { %vm9033_vm4 = vsmask.f32 3328  ;;  %v1072_v41 = vrot.slane %v1070_v42, 3  ;;  %v1240_v50 = vrot.slane %v1218_v20, 4  ;;  %v603_v25 = vpack.c.bf16 %v595_v34, %v594_v1  ;;  %4714 = vmatprep.subr.bf16.mxu0 %v5064_v5  ;;  %4653 = vmatpush3.bf16.msra.mxu1 %v5055_v28 }
 0x1a0   : > { %vm7368_vm14 = vcmp.ne.s16.totalorder %v9030_v37, 0  ;;  %v1461_v27 = vsel %vm9033_vm4, %v7312_v17, %v7359_v26  ;;  %vm9034_vm13 = vsmask.f32 256  ;;  %v1075_v11 = vrot.slane %v1073_v40, 4  ;;  %v1144_v1 = vld [vmem:[#allocation2 + $0x28] sm:$0xff]  ;;  %4654 = vmatprep.subr.bf16.mxu1 %v5058_v15  ;;  %v5062_v40 = vld [vmem:[#allocation9 + $0x168] sm:$0xff]  }
 0x1a1   : > { %v1707_v12 = vsel %vm9034_vm13, %v7289_v18, %v1706_v0  ;;  %vm9035_vm3 = vcmp.ne.s16.totalorder %v9014_v53, 0  ;;  %v602_v2 = vpack.c.bf16 %v593_v21, %v592_v14  ;;  %3453 = vmatmul.mubr.bf16.gmra.mrb[20].mxu0 %v1461_v27  ;;  %v1241_v17 = vsel %vm8665_vm7, %v7319_v52, %v1240_v50  ;;  %611 = vst [vmem:[#allocation2 + $0x40] sm:$0xff] %v603_v25  ;;  %v5059_v14 = vld [vmem:[#allocation9 + $0x120] sm:$0xff]   ;;  %v5063_v25 = vld [vmem:[#allocation9 + $0x128] sm:$0xff]  }
 0x1a2   : > { %v1430_v7 = vsel %vm9035_vm3, %v1269_v22, 0  ;;  %vm1667_vm4 = vcmp.ne.s16.totalorder %v7044_v8, 0  ;;  %3460 = vmatprep.mubr.bf16.mxu0 %v1707_v12  ;;  %v1076_v24 = vor.u32 %v1075_v11, %v1072_v41  ;;  %v1674_v18 = vsel %vm1665_vm6, %v1143_v30, 0  ;;  %4715 = vmatpush3.bf16.msra.mxu0 %v5065_v6 }
 0x1a3   : > { %v1463_v42 = vshrl.u32 %v1430_v7, 16  ;;  %v1466_v58 = vshll.u32 %v1430_v7, 16  ;;  %v1037_v53 = vsel %vm1028_vm11, %v1143_v30, 0  ;;  %vm9036_vm3 = vcmp.ne.s16.totalorder %v9015_v16, 0  ;;  %610 = vst [vmem:[#allocation2 + $0x38] sm:$0xff] %v602_v2  ;;  %4716 = vmatprep.subr.bf16.mxu0 %v5066_v3  ;;  %4655 = vmatpush3.bf16.msra.mxu1 %v5059_v14  ;;  %v5068_v2 = vld [vmem:[#allocation9 + $0x170] sm:$0xff]  }
 0x1a4   : > { %v1431_v5 = vsel %vm9036_vm3, %v1143_v30, 0  ;;  %v1709_v34 = vshrl.u32 %v1674_v18, 16  ;;  %v1712_v0 = vshll.u32 %v1674_v18, 16  ;;  %vm9037_vm6 = vsmask.f32 4352  ;;  %v5070_v30 = vld [vmem:[#allocation9 + $0x1e0] sm:$0xff]   ;;  %4656 = vmatprep.subr.bf16.mxu1 %v5062_v40 }
 0x1a5   : > { %v1465_v52 = vrot.slane %v1463_v42, 4  ;;  %v1468_v22 = vrot.slane %v1466_v58, 5  ;;  %v1077_v36 = vsel %vm9037_vm6, %v7345_v35, %v1076_v24  ;;  %v1079_v20 = vshrl.u32 %v1037_v53, 16 }
 0x1a6   : > { %v1082_v28 = vshll.u32 %v1037_v53, 16  ;;  %v1219_v16 = vsel %vm7340_vm1, %v1144_v1, 0  ;;  %3364 = vmatmul.mubr.bf16.gmra.mrb[8].mxu1 %v1077_v36  ;;  %v7394_v21 = vrot.slane %v1709_v34, 7  ;;  %v1472_v41 = vshrl.u32 %v1431_v5, 16  ;;  %4717 = vmatpush3.bf16.msra.mxu0 %v5067_v51  ;;  %v1145_v53 = vld [vmem:[#allocation2 + $0x30] sm:$0xff]  ;;  %v5069_v51 = vld [vmem:[#allocation9 + $0x130] sm:$0xff]  }
 0x1a7   : > { %v1469_v37 = vor.u32 %v1468_v22, %v1465_v52  ;;  %v1242_v27 = vrot.slane %v1219_v16, 4  ;;  %vm1212_vm11 = vcmp.ne.s16.totalorder %v7003_v9, 0  ;;  %3371 = vmatprep.mubr.bf16.mxu1 %v1241_v17  ;;  %v1081_v35 = vrot.slane %v1079_v20, 3  ;;  %v5071_v17 = vld [vmem:[#allocation9 + $0x1a0] sm:$0xff]   ;;  %4718 = vmatprep.subr.bf16.mxu0 %v5070_v30 }
 0x1a8   : > { %v1084_v15 = vrot.slane %v1082_v28, 4  ;;  %v1475_v6 = vshll.u32 %v1431_v5, 16  ;;  %vm9038_vm1 = vcmp.ne.s16.totalorder %v6901_v47, 0  ;;  %vm9039_vm6 = vsmask.f32 3328  ;;  %v5072_v5 = vld [vmem:[#allocation9 + $0x1e8] sm:$0xff]   ;;  %4657 = vmatpush3.bf16.msra.mxu1 %v5063_v25 }
 0x1a9   : > { %v1675_v13 = vsel %vm9038_vm1, %v1144_v1, 0  ;;  %v1470_v12 = vsel %vm9039_vm6, %v7359_v26, %v1469_v37  ;;  %v1714_v11 = vor.u32 %v1712_v0, %v7394_v21  ;;  %v1243_v7 = vsel %vm8665_vm7, %v1240_v50, %v1242_v27  ;;  %vm9040_vm6 = vmmov %vm9034_vm13  ;;  %4658 = vmatprep.subr.bf16.mxu1 %v5068_v2 }
 0x1aa   : > { %v1474_v3 = vrot.slane %v1472_v41, 4  ;;  %v7405_v42 = vor.u32 %v1084_v15, %v1081_v35  ;;  %v1477_v58 = vrot.slane %v1475_v6, 5  ;;  %v1717_v18 = vshrl.u32 %v1675_v13, 16  ;;  %3461 = vmatmul.mubr.bf16.gmra.mrb[24].mxu0 %v1470_v12  ;;  %v7439_v25 = vld [vmem:[#allocation2 + $0x38] sm:$0xff] }
 0x1ab   : > { %v1720_v47 = vshll.u32 %v1675_v13, 16  ;;  %vm1031_vm1 = vcmp.ne.s16.totalorder %v7072_v55, 0  ;;  %v1715_v26 = vsel %vm9040_vm6, %v7356_v56, %v1714_v11  ;;  %vm9041_vm13 = vcmp.ne.s16.totalorder %v9027_v54, 0  ;;  %4719 = vmatpush3.bf16.msra.mxu0 %v5071_v17 }
 0x1ac   : > { %v1038_v50 = vsel %vm9041_vm13, %v1144_v1, 0  ;;  %v1220_v14 = vsel %vm7368_vm14, %v1145_v53, 0  ;;  %v1432_v52 = vsel %vm1423_vm5, %v1144_v1, 0  ;;  %3468 = vmatprep.mubr.bf16.mxu0 %v1715_v26  ;;  %vm9042_vm3 = vsmask.f32 4352  ;;  %v5074_v1 = vld [vmem:[#allocation9 + $0x178] sm:$0xff]   ;;  %4720 = vmatprep.subr.bf16.mxu0 %v5072_v5 }
 0x1ad   : > { %v1086_v22 = vsel %vm9042_vm3, %v1076_v24, %v7405_v42  ;;  %v1478_v34 = vor.u32 %v1477_v58, %v1474_v3  ;;  %v7418_v0 = vrot.slane %v1717_v18, 7  ;;  %v1088_v40 = vshrl.u32 %v1038_v50, 16  ;;  %v5073_v24 = vld [vmem:[#allocation9 + $0x1a8] sm:$0xff]   ;;  %4659 = vmatpush3.bf16.msra.mxu1 %v5069_v51  ;;  %v5075_v3 = vld [vmem:[#allocation9 + $0x138] sm:$0xff]   ;;  %v7448_v18 = vld [vmem:[#allocation9 + $0x200] sm:$0xff]  }
 0x1ae   : > { %v1091_v56 = vshll.u32 %v1038_v50, 16  ;;  %v7420_v36 = vrot.slane %v1220_v14, 4  ;;  %v1481_v54 = vshrl.u32 %v1432_v52, 16  ;;  %v1484_v20 = vshll.u32 %v1432_v52, 16  ;;  %3372 = vmatmul.mubr.bf16.gmra.mrb[12].mxu1 %v1086_v22  ;;  %4660 = vmatprep.subr.bf16.mxu1 %v5074_v1  ;;  %v5078_v26 = vld [vmem:[#allocation9 + $0x1f8] sm:$0xff]  }
 0x1af   : > { %v9043_v62 = vcombine.low %v7049_v63, %v7049_v63  ;;  %vm9046_vm3 = vsmask.f32 3328  ;;  %v1722_v16 = vor.u32 %v1720_v47, %v7418_v0  ;;  %v1090_v30 = vrot.slane %v1088_v40, 3  ;;  %v5076_v63 = vld [vmem:[#allocation9 + $0x1f0] sm:$0xff]   ;;  %3379 = vmatprep.mubr.bf16.mxu1 %v1243_v7  ;;  %4721 = vmatpush3.bf16.msra.mxu0 %v5073_v24  ;;  %v9052_v40 = vld [vmem:[#allocation59_spill] sm:$0xff]  ;;  %v5079_v51 = vld [vmem:[#allocation9 + $0x1b8] sm:$0xff]  }
 0x1b0   : > { %v1479_v28 = vsel %vm9046_vm3, %v1469_v37, %v1478_v34  ;;  %v1676_v41 = vsel %vm1667_vm4, %v1145_v53, 0  ;;  %v1093_v35 = vrot.slane %v1091_v56, 4  ;;  %v7437_v15 = vsel %vm8665_vm7, %v1242_v27, %v7420_v36  ;;  %v5077_v7 = vld [vmem:[#allocation9 + $0x1b0] sm:$0xff]   ;;  %4722 = vmatprep.subr.bf16.mxu0 %v5076_v63 }
 0x1b1   : > { %vm7425_vm5 = vcmp.ne.s16.totalorder %v9043_v62, 0  ;;  %v1483_v6 = vrot.slane %v1481_v54, 4  ;;  %v1486_v13 = vrot.slane %v1484_v20, 5  ;;  %v1723_v37 = vsel %vm9040_vm6, %v7394_v21, %v1722_v16  ;;  %4661 = vmatpush3.bf16.msra.mxu1 %v5075_v3  ;;  %v1147_v20 = vld [vmem:[#allocation2 + $0x40] sm:$0xf] }
 0x1b2   : > { %v1725_v12 = vshrl.u32 %v1676_v41, 16  ;;  %v1728_v11 = vshll.u32 %v1676_v41, 16  ;;  %vm9047_vm4 = vcmp.ne.s16.totalorder %v6953_v60, 0  ;;  %v1094_v2 = vor.u32 %v1093_v35, %v1090_v30  ;;  %3469 = vmatmul.mubr.bf16.gmra.mrb[28].mxu0 %v1479_v28  ;;  %v7474_v62 = vld [vmem:[#allocation2 + $0x40] sm:$0xff]  ;;  %4838 = vmatprep.subr.bf16.mxu1 %v7448_v18  ;;  %v9054_v30 = vld [vmem:[#allocation18_spill] sm:$0xff] }
 0x1b3   : > { %v1039_v8 = vsel %vm9047_vm4, %v1145_v53, 0  ;;  %v7445_v17 = vor.u32 %v1486_v13, %v1483_v6  ;;  %v7455_v60 = vsel %vm1212_vm11, %v7439_v25, 0  ;;  %vm9048_vm6 = vcmp.ne.s16.totalorder %v7021_v33, 0  ;;  %3476 = vmatprep.mubr.bf16.mxu0 %v1723_v37  ;;  %4723 = vmatpush3.bf16.msra.mxu0 %v5077_v7 }
 0x1b4   : > { %v1097_v27 = vshrl.u32 %v1039_v8, 16  ;;  %v1100_v58 = vshll.u32 %v1039_v8, 16  ;;  %v7450_v21 = vrot.slane %v1725_v12, 7  ;;  %v1433_v47 = vsel %vm9048_vm6, %v1145_v53, 0  ;;  %4724 = vmatprep.subr.bf16.mxu0 %v5078_v26 }
 0x1b5   : > { %vm9049_vm4 = vcmp.ne.s16.totalorder %v7104_v61, 0  ;;  %vm1426_vm13 = vcmp.ne.s16.totalorder %v7033_v46, 0  ;;  %vm9050_vm3 = vsmask.f32 4352  ;;  %vm9051_vm14 = vsmask.f32 3328 }
 0x1b6   : > { %v1677_v5 = vsel %vm9049_vm4, %v7439_v25, 0  ;;  %v1095_v50 = vsel %vm9050_vm3, %v7405_v42, %v1094_v2  ;;  %v1488_v9 = vsel %vm9051_vm14, %v1478_v34, %v7445_v17  ;;  %v1099_v14 = vrot.slane %v1097_v27, 3  ;;  %vm9055_vm4 = vmmov %vm9050_vm3  ;;  %v879_v27 = vld [vmem:[#allocation2 + $0x40] sm:$0xf] }
 0x1b7   : > { %v1102_v52 = vrot.slane %v1100_v58, 4  ;;  %v1730_v33 = vor.u32 %v1728_v11, %v7450_v21  ;;  %v1246_v53 = vrot.slane %v7455_v60, 4  ;;  %v1490_v61 = vshrl.u32 %v1433_v47, 16  ;;  %3380 = vmatmul.mubr.bf16.gmra.mrb[16].mxu1 %v1095_v50  ;;  %4725 = vmatpush3.bf16.msra.mxu0 %v5079_v51  ;;  %v1274_v60 = vld [vmem:[#allocation2 + $0x40] sm:$0x1f] }
 0x1b8   : > { %v1493_v22 = vshll.u32 %v1433_v47, 16  ;;  %v1733_v42 = vshrl.u32 %v1677_v5, 16  ;;  %v1736_v54 = vshll.u32 %v1677_v5, 16  ;;  %v1040_v34 = vsel %vm1031_vm1, %v7439_v25, 0  ;;  %3387 = vmatprep.mubr.bf16.mxu1 %v7437_v15 }
 0x1b9   : > { %v1103_v56 = vor.u32 %v1102_v52, %v1099_v14  ;;  %vm9053_vm14 = vsmask.f32 256  ;;  %v1247_v1 = vsel %vm8665_vm7, %v7420_v36, %v1246_v53  ;;  %v1492_v28 = vrot.slane %v1490_v61, 4  ;;  %v1772_v14 = vld [vmem:[#allocation2 + $0x8] sm:$0xff]  ;;  %v1773_v52 = vld [vmem:[#allocation2 + $0x10] sm:$0xff] }
 0x1ba   : > { %v1731_v24 = vsel %vm9053_vm14, %v7418_v0, %v1730_v33  ;;  %v1495_v16 = vrot.slane %v1493_v22, 5  ;;  %v1735_v41 = vrot.slane %v1733_v42, 7  ;;  %v1106_v63 = vshrl.u32 %v1040_v34, 16  ;;  %v9059_v0 = vld [vmem:[#allocation19_spill] sm:$0xff]  ;;  %3477 = vmatmul.mubr.bf16.gmra.mrb[32].mxu0 %v1488_v9  ;;  %v2268_v42 = vld [vmem:[#allocation2 + $0x8] sm:$0xf0] }
 0x1bb   : > { %v1104_v55 = vsel %vm9055_vm4, %v1094_v2, %v1103_v56  ;;  %v1109_v35 = vshll.u32 %v1040_v34, 16  ;;  %v9056_v6 = vcombine.low %v7115_v59, %v7115_v59  ;;  %v1222_v37 = vsel %vm7425_vm5, %v1147_v20, 0  ;;  %3484 = vmatprep.mubr.bf16.mxu0 %v1731_v24  ;;  %v7536_v34 = vld [vmem:[#allocation2 + $0x18] sm:$0xff] }
 0x1bc   : > { %v1496_v36 = vor.u32 %v1495_v16, %v1492_v28  ;;  %vm9060_vm4 = vcmp.ne.s16.totalorder %v7110_v57, 0  ;;  %vm9061_vm3 = vcmp.ne.s16.totalorder %v7129_v45, 0  ;;  %v1738_v11 = vor.u32 %v1736_v54, %v1735_v41 }
 0x1bd   : > { %vm7486_vm1 = vcmp.ne.s16.totalorder %v9056_v6, 0  ;;  %v1434_v59 = vsel %vm9060_vm4, %v7439_v25, 0  ;;  %v1678_v12 = vsel %vm9061_vm3, %v7474_v62, 0  ;;  %v1108_v8 = vrot.slane %v1106_v63, 3  ;;  %vm9063_vm3 = vmmov %vm9053_vm14 }
 0x1be   : > { %v1111_v3 = vrot.slane %v1109_v35, 4  ;;  %v1248_v2 = vrot.slane %v1222_v37, 4  ;;  %vm9062_vm11 = vsmask.f32 3328  ;;  %v1499_v58 = vshrl.u32 %v1434_v59, 16  ;;  %v9078_v35 = vld [vmem:[#allocation23_spill] sm:$0xff] }
 0x1bf   : > { %v1497_v15 = vsel %vm9062_vm11, %v7445_v17, %v1496_v36  ;;  %v1502_v31 = vshll.u32 %v1434_v59, 16  ;;  %v1741_v7 = vshrl.u32 %v1678_v12, 16  ;;  %v1739_v57 = vsel %vm9063_vm3, %v7450_v21, %v1738_v11  ;;  %3388 = vmatmul.mubr.bf16.gmra.mrb[20].mxu1 %v1104_v55  ;;  %v9086_v11 = vld [vmem:[#allocation24_spill] sm:$0xff] }
 0x1c0   : > { %v1112_v45 = vor.u32 %v1111_v3, %v1108_v8  ;;  %v7509_v25 = vsel %vm8665_vm7, %v1246_v53, %v1248_v2  ;;  %v1744_v47 = vshll.u32 %v1678_v12, 16  ;;  %v1501_v5 = vrot.slane %v1499_v58, 4  ;;  %3395 = vmatprep.mubr.bf16.mxu1 %v1247_v1  ;;  %v2002_v12 = vld [vmem:[#allocation2 + $0x8] sm:$0xf8]  ;;  %v9091_v3 = vld [vmem:[#allocation26_spill] sm:$0xff] }
 0x1c1   : > { %v1504_v17 = vrot.slane %v1502_v31, 5  ;;  %v1743_v26 = vrot.slane %v1741_v7, 7  ;;  %vm9064_vm11 = vcmp.ne.s16.totalorder %v7023_v32, 0  ;;  %vm9065_vm4 = vcmp.lt.f32.partialorder %v5799_v38, 6.5 }
 0x1c2   : > { %v1041_v50 = vsel %vm9064_vm11, %v879_v27, 0  ;;  %vm9066_vm5 = vcmp.lt.f32.partialorder %v5676_v43, 55.5  ;;  %vm9069_vm3 = vsmask.f32 4352  ;;  %v1435_v61 = vsel %vm1426_vm13, %v1274_v60, 0  ;;  %3485 = vmatmul.mubr.bf16.gmra.mrb[36].mxu0 %v1497_v15 }
 0x1c3   : > { %vm7517_vm6 = vmand %vm9066_vm5, %vm9065_vm4  ;;  %v1113_v9 = vsel %vm9069_vm3, %v1103_v56, %v1112_v45  ;;  %v1115_v33 = vshrl.u32 %v1041_v50, 16  ;;  %v1118_v53 = vshll.u32 %v1041_v50, 16  ;;  %vm9070_vm7 = vcmp.lt.f32.partialorder %v5802_v48, 6.5  ;;  %3492 = vmatprep.mubr.bf16.mxu0 %v1739_v57 }
 0x1c4   : > { %vm9071_vm11 = vcmp.lt.f32.partialorder %v5680_v44, 55.5  ;;  %v1505_v43 = vor.u32 %v1504_v17, %v1501_v5  ;;  %v1746_v38 = vor.u32 %v1744_v47, %v1743_v26  ;;  %v1508_v22 = vshrl.u32 %v1435_v61, 16 }
 0x1c5   : > { %vm7528_vm14 = vmand %vm9071_vm11, %vm9070_vm7  ;;  %v1511_v51 = vshll.u32 %v1435_v61, 16  ;;  %v1117_v56 = vrot.slane %v1115_v33, 3  ;;  %v1120_v54 = vrot.slane %v1118_v53, 4  ;;  %vm9074_vm5 = vcmp.ne.s16.totalorder %v6940_v39, 0 }
 0x1c6   : > { %v1909_v46 = vsel %vm9074_vm5, %v1772_v14, 0  ;;  %vm9075_vm13 = vcmp.ne.s16.totalorder %v9052_v40, 0  ;;  %vm9076_vm4 = vsmask.f32 3328  ;;  %vm9077_vm3 = vsmask.f32 256 }
 0x1c7   : > { %v1910_v48 = vsel %vm9075_vm13, %v1773_v52, 0  ;;  %v1506_v20 = vsel %vm9076_vm4, %v1496_v36, %v1505_v43  ;;  %v7543_v24 = vsel %vm9077_vm3, %v1735_v41, %v1746_v38  ;;  %v1510_v28 = vrot.slane %v1508_v22, 4  ;;  %v9083_v41 = vld [vmem:[#allocation25_spill] sm:$0xff]  ;;  %3396 = vmatmul.mubr.bf16.gmra.mrb[24].mxu1 %v1113_v9  ;;  %v7627_v9 = vld [vmem:[#allocation2] sm:$0xff] }
 0x1c8   : > { %v1513_v16 = vrot.slane %v1511_v51, 5  ;;  %v1121_v39 = vor.u32 %v1120_v54, %v1117_v56  ;;  %v1919_v40 = vshrl.u32 %v1909_v46, 16  ;;  %v1921_v55 = vshll.u32 %v1909_v46, 16  ;;  %3403 = vmatprep.mubr.bf16.mxu1 %v7509_v25 }
 0x1c9   : > { %v1926_v63 = vshll.u32 %v1910_v48, 16  ;;  %vm9079_vm5 = vcmp.ge.f32.partialorder %v9078_v35, 0.5  ;;  %vm9080_vm13 = vcmp.lt.f32.partialorder %v9054_v30, 55.5  ;;  %v2343_v36 = vsel %vm7486_vm1, %v2268_v42, 0 }
 0x1ca   : > { %vm7552_vm7 = vmand %vm9080_vm13, %vm9079_vm5  ;;  %v1514_v6 = vor.u32 %v1513_v16, %v1510_v28  ;;  %vm9084_vm3 = vcmp.ne.s16.totalorder %v7161_v19, 0  ;;  %vm9085_vm11 = vcmp.ne.s16.totalorder %v7147_v10, 0  ;;  %vm9087_vm10 = vcmp.ge.f32.partialorder %v9086_v11, 0.5  ;;  %3493 = vmatmul.mubr.bf16.gmra.mrb[40].mxu0 %v1506_v20  ;;  %v9132_v10 = vld [vmem:[#allocation31_spill] sm:$0xff] }
 0x1cb   : > { %v2344_v37 = vsel %vm9084_vm3, %v1773_v52, 0  ;;  %v1911_v59 = vsel %vm9085_vm11, %v7536_v34, 0  ;;  %vm9088_vm5 = vcmp.lt.f32.partialorder %v9059_v0, 55.5  ;;  %vm9092_vm1 = vsmask.f32 4352  ;;  %3500 = vmatprep.mubr.bf16.mxu0 %v7543_v24  ;;  %v9130_v24 = vld [vmem:[#allocation32_spill] sm:$0xff] }
 0x1cc   : > { %vm7568_vm13 = vmand %vm9088_vm5, %vm9087_vm10  ;;  %v7574_v13 = vsel %vm9092_vm1, %v1112_v45, %v1121_v39  ;;  %v1923_v19 = vrot.slane %v1921_v55, 1  ;;  %v1928_v2 = vrot.slane %v1926_v63, 1  ;;  %v2361_v27 = vrot.slane %v2343_v36, 4 }
 0x1cd   : > { %vm9093_vm11 = vcmp.lt.f32.partialorder %v9086_v11, 6.5  ;;  %vm9096_vm10 = vmmov %vm9076_vm4  ;;  %v2362_v31 = vrot.slane %v2344_v37, 4  ;;  %v1930_v7 = vshrl.u32 %v1910_v48, 16  ;;  %v1934_v15 = vshll.u32 %v1911_v59, 16 }
 0x1ce   : > { %vm7579_vm3 = vmpackc.low %vm9093_vm11, %vm9093_vm11  ;;  %v7584_v58 = vsel %vm9096_vm10, %v1505_v43, %v1514_v6  ;;  %v1924_v60 = vor.u32 %v1923_v19, %v1919_v40  ;;  %vm9097_vm1 = vcmp.ne.s16.totalorder %v7149_v23, 0  ;;  %vm9098_vm11 = vcmp.ne.s16.totalorder %v7194_v29, 0  ;;  %v9124_v6 = vld [vmem:[#allocation68_spill] sm:$0xff] }
 0x1cf   : > { %v2163_v45 = vsel %vm9097_vm1, %v2002_v12, 0  ;;  %v2164_v47 = vsel %vm9098_vm11, %v1773_v52, 0  ;;  %v9099_v57 = vsel %vm7222_vm2, 65537, %v6829_v4  ;;  %v9101_v17 = vsel %vm7211_vm9, 65537, %v6829_v4  ;;  %3404 = vmatmul.mubr.bf16.gmra.mrb[28].mxu1 %v7574_v13  ;;  %v9147_v43 = vld [vmem:[#allocation64_spill] sm:$0xff] }
 0x1d0   : > { %v4319_v26 = vcombine.low %v9101_v17, %v9099_v57  ;;  %vm9102_vm5 = vcmask 1043456   ;;  %v1932_v23 = vor.u32 %v1930_v7, %v1928_v2  ;;  %v1936_v14 = vrot.slane %v1934_v15, 1  ;;  %v9137_v7 = vld [vmem:[#allocation33_spill] sm:$0xff]  ;;  %v9171_v57 = vld [vmem:[#allocation40_spill] sm:$0xff] }
 0x1d1   : > { %v7605_v50 = vsel %vm9102_vm5, %v2361_v27, %v2362_v31  ;;  %v2173_v29 = vshrl.u32 %v2163_v45, 16  ;;  %vm9103_vm1 = vcmp.lt.f32.partialorder %v5680_v44, 55.5  ;;  %vm9106_vm9 = vsmask.f32 7424 }
 0x1d2   : > { %vm7610_vm11 = vmpackc.low %vm9103_vm1, %vm9103_vm1  ;;  %v1929_v52 = vsel %vm9106_vm9, %v1924_v60, %v1928_v2  ;;  %v2176_v33 = vshll.u32 %v2163_v45, 16  ;;  %v2181_v53 = vshrl.u32 %v2164_v47, 16  ;;  %v2184_v61 = vshll.u32 %v2164_v47, 16  ;;  %3501 = vmatmul.mubr.bf16.gmra.mrb[44].mxu0 %v7584_v58 }
 0x1d3   : > { %vm9107_vm2 = vcmp.lt.f32.partialorder %v9078_v35, 6.5  ;;  %vm9108_vm5 = vcmp.lt.f32.partialorder %v9054_v30, 55.5  ;;  %vm9111_vm1 = vmmov %vm9106_vm9  ;;  %v2175_v38 = vrot.slane %v2173_v29, 3  ;;  %vm2336_vm4 = vcmp.ne.s16.totalorder %v4319_v26, 0  ;;  %3541 = vmatprep.mubr.bf16.mxu1 %v1929_v52  ;;  %3638 = vmatprep.mubr.bf16.mxu0 %v7605_v50 }
 0x1d4   : > { %vm7619_vm10 = vmand %vm9108_vm5, %vm9107_vm2  ;;  %v7625_v44 = vsel %vm9111_vm1, %v1932_v23, %v1936_v14  ;;  %vm9113_vm2 = vcmp.lt.f32.partialorder %v9086_v11, 6.5  ;;  %vm9114_vm5 = vcmp.lt.f32.partialorder %v9059_v0, 55.5  ;;  %v2178_v51 = vrot.slane %v2176_v33, 4 }
 0x1d5   : > { %vm9112_vm9 = vmpackc.low %vm7517_vm6, %vm7517_vm6  ;;  %v2183_v42 = vrot.slane %v2181_v53, 3  ;;  %v2186_v56 = vrot.slane %v2184_v61, 4  ;;  %v7644_v54 = vsel %vm2336_vm4, %v7536_v34, 0  ;;  %vm9117_vm1 = vcmp.lt.f32.partialorder %v9054_v30, 55.5  ;;  %v7767_v61 = vld [vmem:[#allocation2 + $0x20] sm:$0xff] }
 0x1d6   : > { %v2439_v22 = vsel %vm9112_vm9, 65537, %v7627_v9  ;;  %vm7639_vm0 = vmand %vm9114_vm5, %vm9113_vm2  ;;  %v2364_v46 = vrot.slane %v7644_v54, 4  ;;  %v1804_v28 = vsel %vm7579_vm3, 65537, %v7627_v9  ;;  %v1938_v16 = vshrl.u32 %v1911_v59, 16  ;;  %v9125_v59 = vld [vmem:[#allocation29_spill] sm:$0xff] }
 0x1d7   : > { %vm7649_vm12 = vmpackc.low %vm9117_vm1, %vm9117_vm1  ;;  %v2179_v30 = vor.u32 %v2178_v51, %v2175_v38  ;;  %v7666_v39 = vor.u32 %v2186_v56, %v2183_v42  ;;  %v9122_v32 = vsel %vm6924_vm8, 65537, %v6829_v4  ;;  %vm9123_vm3 = vcmask 1043456   ;;  %v9153_v42 = vld [vmem:[#allocation61_spill] sm:$0xff] }
 0x1d8   : > { %vm9120_vm6 = vmpackc.low %vm7528_vm14, %vm7528_vm14  ;;  %v4304_v63 = vcombine.low %v9122_v32, %v1804_v28  ;;  %v7679_v35 = vsel %vm9123_vm3, %v2362_v31, %v2364_v46  ;;  %v7681_v20 = vor.u32 %v1938_v16, %v1936_v14  ;;  %v2101_v36 = vshrl.u32 %v9124_v6, 16  ;;  %v5081_v32 = vld [vmem:[#allocation9 + $0x208] sm:$0xff]  }
 0x1d9   : > { %v2440_v48 = vsel %vm9120_vm6, 65537, %v7627_v9  ;;  %vm2425_vm4 = vmpackc.low %vm7619_vm10, %vm7619_vm10  ;;  %v2104_v37 = vshll.u32 %v9124_v6, 16  ;;  %vm9126_vm8 = vcmp.ge.f32.partialorder %v9125_v59, 0.5  ;;  %vm9127_vm9 = vcmp.lt.f32.partialorder %v9083_v41, 55.5 }
 0x1da   : > { %v4328_v40 = vcombine.low %v2439_v22, %v2440_v48  ;;  %vm7689_vm2 = vmand %vm9127_vm9, %vm9126_vm8  ;;  %vm9131_vm1 = vsmask.f32 4352  ;;  %v1861_v27 = vshrl.u32 %v4304_v63, 16  ;;  %vm9133_vm6 = vcmp.ge.f32.partialorder %v9132_v10, 0.5 }
 0x1db   : > { %v7696_v11 = vsel %vm9131_vm1, %v2179_v30, %v7666_v39  ;;  %vm9134_vm3 = vcmp.lt.f32.partialorder %v9091_v3, 55.5  ;;  %vm834_vm8 = vcmp.lt.f32.partialorder %v9137_v7, 55.5  ;;  %v1864_v15 = vshll.u32 %v4304_v63, 16  ;;  %vm9138_vm9 = vmpackc.low %vm7552_vm7, %vm7552_vm7  ;;  %v9249_v7 = vld [vmem:[#allocation63_spill] sm:$0xff] }
 0x1dc   : > { %v2493_v19 = vshrl.u32 %v4328_v40, 16  ;;  %v2496_v2 = vshll.u32 %v4328_v40, 16  ;;  %vm7702_vm14 = vmand %vm9134_vm3, %vm9133_vm6  ;;  %v2103_v60 = vrot.slane %v2101_v36, 4  ;;  %v2106_v45 = vrot.slane %v2104_v37, 5  ;;  %3639 = vmatmul.mubr.bf16.vlgmr.msra.gmra.mrb[48].mxu0 %v7696_v11 }
 0x1dd   : > { %v2049_v47 = vsel %vm9138_vm9, 65537, %v7627_v9  ;;  %vm9139_vm1 = vcmp.lt.f32.partialorder %v9132_v10, 6.5  ;;  %v7725_v26 = vrot.slane %v1861_v27, 7  ;;  %vm9142_vm7 = vmpackc.low %vm7568_vm13, %vm7568_vm13  ;;  %v2298_v14 = vsel %vm7610_vm11, 65537, %v7627_v9  ;;  %3646 = vmatprep.mubr.bf16.mxu0 %v7679_v35 }
 0x1de   : > { %vm7716_vm5 = vmpackc.low %vm9139_vm1, %vm9139_vm1  ;;  %v7721_v5 = vrot.slane %v2493_v19, 3  ;;  %v7723_v17 = vrot.slane %v2496_v2, 4  ;;  %v2050_v1 = vsel %vm9142_vm7, 65537, %v7627_v9  ;;  %v7736_v23 = vor.u32 %v2106_v45, %v2103_v60  ;;  %v9164_v2 = vld [vmem:[#allocation70_spill] sm:$0xff] }
 0x1df   : > { %vm2035_vm6 = vmpackc.low %vm7689_vm2, %vm7689_vm2  ;;  %v4312_v13 = vcombine.low %v2049_v47, %v2050_v1  ;;  %v2299_v29 = vsel %vm7649_vm12, 65537, %v7627_v9  ;;  %v1866_v8 = vor.u32 %v1864_v15, %v7725_v26  ;;  %v2441_v52 = vsel %vm2425_vm4, 65537, %v7627_v9  ;;  %3542 = vmatmul.mubr.bf16.vlgmr.msra.gmra.mrb[32].mxu1 %v9164_v2  ;;  %v9166_v45 = vld [vmem:[#allocation38_spill] sm:$0xff] }
 0x1e0   : > { %vm2036_vm13 = vmpackc.low %vm7702_vm14, %vm7702_vm14  ;;  %v4320_v33 = vcombine.low %v2298_v14, %v2299_v29  ;;  %vm9144_vm11 = vcmp.lt.f32.partialorder %v9059_v0, 55.5  ;;  %vm9148_vm10 = vsmask.f32 3328  ;;  %v1806_v25 = vsel %vm7716_vm5, 65537, %v7627_v9  ;;  %4839 = vmatpush3.bf16.msra.mxu1 %v7448_v18  ;;  %3549 = vmatprep.mubr.bf16.mxu1 %v7625_v44  ;;  %v9172_v18 = vld [vmem:[#allocation39_spill] sm:$0xff]  ;;  %v9176_v14 = vld [vmem:[#allocation42_spill] sm:$0xff] }
 0x1e1   : > { %vm9143_vm12 = vmpackc.low %vm7639_vm0, %vm7639_vm0  ;;  %v2108_v38 = vsel %vm9148_vm10, %v9147_v43, %v7736_v23  ;;  %v2110_v51 = vshrl.u32 %v4312_v13, 16  ;;  %vm9149_vm0 = vcmp.lt.f32.partialorder %v9125_v59, 6.5  ;;  %vm9150_vm4 = vcmp.lt.f32.partialorder %v9083_v41, 55.5  ;;  %4840 = vmatprep.subr.bf16.mxu1 %v5081_v32  ;;  %v5082_v29 = vld [vmem:[#allocation9 + $0x210] sm:$0xff]  }
 0x1e2   : > { %v2442_v49 = vsel %vm9143_vm12, 65537, %v7627_v9  ;;  %vm7763_vm3 = vmpackc.low %vm9144_vm11, %vm9144_vm11  ;;  %vm9154_vm1 = vsmask.f32 256  ;;  %vm2156_vm7 = vcmp.ne.s16.totalorder %v2108_v38, 0  ;;  %vm2337_vm12 = vcmp.ne.s16.totalorder %v4320_v33, 0 }
 0x1e3   : > { %v7772_v22 = vcombine.low %v2441_v52, %v2442_v49  ;;  %vm7781_vm9 = vmand %vm9150_vm4, %vm9149_vm0  ;;  %v1867_v56 = vsel %vm9154_vm1, %v9153_v42, %v1866_v8  ;;  %v9156_v48 = vsel %vm6931_vm15, 65537, %v6829_v4  ;;  %vm9157_vm5 = vcmp.lt.f32.partialorder %v9132_v10, 6.5 }
 0x1e4   : > { %v4305_v28 = vcombine.low %v9156_v48, %v1806_v25  ;;  %vm9158_vm11 = vcmp.lt.f32.partialorder %v9091_v3, 55.5  ;;  %vm1903_vm0 = vcmp.ne.s16.totalorder %v1867_v56, 0  ;;  %v2165_v58 = vsel %vm2156_vm7, %v7536_v34, 0  ;;  %vm9161_vm15 = vmmov %vm9150_vm4  ;;  %4841 = vmatpush3.bf16.msra.mxu1 %v5081_v32 }
 0x1e5   : > { %vm7796_vm10 = vmand %vm9158_vm11, %vm9157_vm5  ;;  %v7803_v30 = vsel %vm2337_vm12, %v7767_v61, 0  ;;  %v2112_v40 = vrot.slane %v2110_v51, 4  ;;  %v1912_v63 = vsel %vm1903_vm0, %v7767_v61, 0  ;;  %v2190_v6 = vshrl.u32 %v2165_v58, 16  ;;  %v7889_v51 = vld [vmem:[#allocation2 + $0x28] sm:$0xff]  ;;  %4842 = vmatprep.subr.bf16.mxu1 %v5082_v29 }
 0x1e6   : > { %vm7808_vm4 = vmpackc.low %vm9161_vm15, %vm9161_vm15  ;;  %v2193_v36 = vshll.u32 %v2165_v58, 16  ;;  %v2366_v50 = vrot.slane %v7803_v30, 4  ;;  %v1942_v37 = vshll.u32 %v1912_v63, 16  ;;  %v1869_v59 = vshrl.u32 %v4305_v28, 16 }
 0x1e7   : > { %vm2427_vm1 = vmpackc.low %vm7781_vm9, %vm7781_vm9  ;;  %v1872_v19 = vshll.u32 %v4305_v28, 16  ;;  %v1946_v41 = vshrl.u32 %v1912_v63, 16  ;;  %v2192_v27 = vrot.slane %v2190_v6, 3  ;;  %vm9165_vm12 = vcmask 1043456   ;;  %v5083_v28 = vld [vmem:[#allocation9 + $0x218] sm:$0xff]   ;;  %v5106_v63 = vld [vmem:[#allocation2 + $0x10] sm:$0xff] }
 0x1e8   : > { %vm2428_vm7 = vmpackc.low %vm7796_vm10, %vm7796_vm10  ;;  %v2195_v10 = vrot.slane %v2193_v36, 4  ;;  %v7826_v15 = vsel %vm9165_vm12, %v2364_v46, %v2366_v50  ;;  %v2113_v60 = vshll.u32 %v4312_v13, 16  ;;  %vm9167_vm5 = vcmp.ge.f32.partialorder %v9166_v45, 0.5  ;;  %3550 = vmatmul.mubr.bf16.gmra.mrb[36].mxu1 %v5106_v63 }
 0x1e9   : > { %vm9168_vm11 = vcmp.lt.f32.partialorder %v9130_v24, 55.5  ;;  %vm835_vm15 = vcmp.lt.f32.partialorder %v9171_v57, 55.5  ;;  %v1944_v1 = vrot.slane %v1942_v37, 1  ;;  %v7839_v54 = vrot.slane %v1869_v59, 7  ;;  %4843 = vmatpush3.bf16.msra.mxu1 %v5082_v29 }
 0x1ea   : > { %vm7832_vm0 = vmand %vm9168_vm11, %vm9167_vm5  ;;  %v2051_v46 = vsel %vm2035_vm6, 65537, %v7627_v9  ;;  %v2052_v13 = vsel %vm2036_vm13, 65537, %v7627_v9  ;;  %vm9173_vm12 = vcmp.ge.f32.partialorder %v9172_v18, 0.5  ;;  %v7862_v12 = vor.u32 %v2195_v10, %v2192_v27  ;;  %4844 = vmatprep.subr.bf16.mxu1 %v5083_v28 }
 0x1eb   : > { %vm7857_vm5 = vmand %vm834_vm8, %vm9173_vm12  ;;  %v2115_v8 = vrot.slane %v2113_v60, 5  ;;  %v7864_v33 = vcombine.low %v2051_v46, %v2052_v13  ;;  %v2300_v31 = vsel %vm7763_vm3, 65537, %v7627_v9  ;;  %vm9177_vm14 = vcmp.lt.f32.partialorder %v9172_v18, 6.5  ;;  %v5084_v46 = vld [vmem:[#allocation9 + $0x220] sm:$0xff]  }
 0x1ec   : > { %vm7872_vm2 = vmpackc.low %vm9177_vm14, %vm9177_vm14  ;;  %vm9180_vm6 = vsmask.f32 7424  ;;  %v1874_v43 = vor.u32 %v1872_v19, %v7839_v54  ;;  %v1948_v38 = vor.u32 %v1946_v41, %v1944_v1  ;;  %v2301_v25 = vsel %vm7808_vm4, 65537, %v7627_v9 }
 0x1ed   : > { %v1945_v49 = vsel %vm9180_vm6, %v7681_v20, %v1944_v1  ;;  %vm2037_vm13 = vmpackc.low %vm7832_vm0, %vm7832_vm0  ;;  %vm9181_vm3 = vsmask.f32 4352  ;;  %v7891_v20 = vor.u32 %v2115_v8, %v2112_v40  ;;  %v4321_v42 = vcombine.low %v2300_v31, %v2301_v25  ;;  %v9191_v40 = vld [vmem:[#allocation60_spill] sm:$0xff]  ;;  %v9211_v25 = vld [vmem:[#allocation45_spill] sm:$0xff]  ;;  %4845 = vmatpush3.bf16.msra.mxu1 %v5083_v28 }
 0x1ee   : > { %v2197_v53 = vsel %vm9181_vm3, %v7666_v39, %v7862_v12  ;;  %v2443_v56 = vsel %vm2427_vm1, 65537, %v7627_v9  ;;  %vm2038_vm4 = vmpackc.low %vm7857_vm5, %vm7857_vm5  ;;  %vm9182_vm12 = vsmask.f32 256  ;;  %v2444_v11 = vsel %vm2428_vm7, 65537, %v7627_v9  ;;  %3557 = vmatprep.mubr.bf16.mxu1 %v1945_v49  ;;  %v9206_v49 = vld [vmem:[#allocation49_spill] sm:$0xff]  ;;  %4846 = vmatprep.subr.bf16.mxu1 %v5084_v46 }
 0x1ef   : > { %v1875_v39 = vsel %vm9182_vm12, %v7725_v26, %v1874_v43  ;;  %v1808_v0 = vsel %vm7872_vm2, 65537, %v7627_v9  ;;  %v2119_v21 = vshrl.u32 %v7864_v33, 16  ;;  %vm9183_vm9 = vcmp.lt.f32.partialorder %v9091_v3, 55.5  ;;  %vm9188_vm2 = vmmov %vm9168_vm11  ;;  %3647 = vmatmul.mubr.bf16.gmra.mrb[52].mxu0 %v2197_v53 }
 0x1f0   : > { %vm7918_vm1 = vmpackc.low %vm9183_vm9, %vm9183_vm9  ;;  %vm1904_vm14 = vcmp.ne.s16.totalorder %v1875_v39, 0  ;;  %vm9186_vm6 = vsmask.f32 3328  ;;  %vm2338_vm10 = vcmp.ne.s16.totalorder %v4321_v42, 0  ;;  %v7925_v48 = vcombine.low %v2443_v56, %v2444_v11  ;;  %3654 = vmatprep.mubr.bf16.mxu0 %v7826_v15  ;;  %v9215_v39 = vld [vmem:[#allocation48_spill] sm:$0xff]  ;;  %v8023_v15 = vld [vmem:[#allocation2 + $0x30] sm:$0xff] }
 0x1f1   : > { %v2117_v26 = vsel %vm9186_vm6, %v7736_v23, %v7891_v20  ;;  %vm9187_vm7 = vcmp.lt.f32.partialorder %v9166_v45, 6.5  ;;  %v1913_v16 = vsel %vm1904_vm14, %v7889_v51, 0  ;;  %v7937_v58 = vsel %vm2338_vm10, %v7889_v51, 0  ;;  %vm9197_vm14 = vmmov %vm9188_vm2  ;;  %4847 = vmatpush3.bf16.msra.mxu1 %v5084_v46  ;;  %v5087_v56 = vld [vmem:[#allocation9 + $0x238] sm:$0xff]  }
 0x1f2   : > { %vm7931_vm3 = vmand %vm9188_vm2, %vm9187_vm7  ;;  %vm2157_vm12 = vcmp.ne.s16.totalorder %v2117_v26, 0  ;;  %vm9192_vm9 = vnez %v9191_v40  ;;  %vm9194_vm6 = vcmp.lt.f32.partialorder %v9172_v18, 6.5  ;;  %v1950_v6 = vshll.u32 %v1913_v16, 16  ;;  %v5085_v26 = vld [vmem:[#allocation9 + $0x228] sm:$0xff]  }
 0x1f3   : > { %v9193_v23 = vsel %vm9192_vm9, 65537, %v6829_v4  ;;  %vm7947_vm11 = vmand %vm834_vm8, %vm9194_vm6  ;;  %v2166_v36 = vsel %vm2157_vm12, %v7767_v61, 0  ;;  %v2368_v37 = vrot.slane %v7937_v58, 4  ;;  %v1954_v59 = vshrl.u32 %v1913_v16, 16  ;;  %4848 = vmatprep.subr.bf16.mxu1 %v5085_v26 }
 0x1f4   : > { %v4306_v55 = vcombine.low %v9193_v23, %v1808_v0  ;;  %vm7956_vm10 = vmpackc.low %vm9197_vm14, %vm9197_vm14  ;;  %v2199_v41 = vshrl.u32 %v2166_v36, 16  ;;  %v2202_v2 = vshll.u32 %v2166_v36, 16  ;;  %v1952_v60 = vrot.slane %v1950_v6, 1  ;;  %v5107_v23 = vld [vmem:[#allocation2 + $0x18] sm:$0xff]  ;;  %v9221_v6 = vld [vmem:[#allocation62_spill] sm:$0xff] }
 0x1f5   : > { %vm2429_vm7 = vmpackc.low %vm7931_vm3, %vm7931_vm3  ;;  %vm9200_vm2 = vcmask 1043456   ;;  %v2121_v45 = vrot.slane %v2119_v21, 4  ;;  %v2122_v1 = vshll.u32 %v7864_v33, 16  ;;  %v2053_v30 = vsel %vm2037_vm13, 65537, %v7627_v9  ;;  %3558 = vmatmul.mubr.bf16.gmra.mrb[40].mxu1 %v5107_v23 }
 0x1f6   : > { %v1877_v27 = vshrl.u32 %v4306_v55, 16  ;;  %v1880_v10 = vshll.u32 %v4306_v55, 16  ;;  %v7968_v24 = vsel %vm9200_vm2, %v2366_v50, %v2368_v37  ;;  %vm2430_vm12 = vmpackc.low %vm7947_vm11, %vm7947_vm11  ;;  %v2201_v13 = vrot.slane %v2199_v41, 3  ;;  %v9201_v50 = vld [vmem:[#allocation47_spill] sm:$0xff]  ;;  %4849 = vmatpush3.bf16.msra.mxu1 %v5085_v26 }
 0x1f7   : > { %v2204_v18 = vrot.slane %v2202_v2, 4  ;;  %vm9202_vm9 = vcmp.ge.f32.partialorder %v9201_v50, 0.5  ;;  %vm9205_vm14 = vsmask.f32 7424  ;;  %v7991_v31 = vor.u32 %v1954_v59, %v1952_v60 }
 0x1f8   : > { %v7974_v29 = vrot.slane %v1877_v27, 7  ;;  %vm7986_vm6 = vmand %vm835_vm15, %vm9202_vm9  ;;  %v1953_v33 = vsel %vm9205_vm14, %v1948_v38, %v1952_v60  ;;  %v2124_v52 = vrot.slane %v2122_v1, 5  ;;  %v2054_v47 = vsel %vm2038_vm4, 65537, %v7627_v9 }
 0x1f9   : > { %vm9207_vm0 = vcmp.ge.f32.partialorder %v9206_v49, 0.5  ;;  %vm9208_vm13 = vcmp.lt.f32.partialorder %v9176_v14, 55.5  ;;  %vm837_vm9 = vcmp.lt.f32.partialorder %v9211_v25, 55.5  ;;  %v8009_v38 = vor.u32 %v2204_v18, %v2201_v13  ;;  %3565 = vmatprep.mubr.bf16.mxu1 %v1953_v33 }
 0x1fa   : > { %vm8003_vm2 = vmand %vm9208_vm13, %vm9207_vm0  ;;  %v1882_v53 = vor.u32 %v1880_v10, %v7974_v29  ;;  %v4314_v44 = vcombine.low %v2053_v30, %v2054_v47  ;;  %v2302_v42 = vsel %vm7918_vm1, 65537, %v7627_v9  ;;  %vm9212_vm5 = vcmp.lt.f32.partialorder %v9206_v49, 6.5  ;;  %v5086_v10 = vld [vmem:[#allocation9 + $0x230] sm:$0xff]  }
 0x1fb   : > { %vm8018_vm4 = vmpackc.low %vm9212_vm5, %vm9212_vm5  ;;  %vm838_vm14 = vcmp.lt.f32.partialorder %v9215_v39, 55.5  ;;  %v8025_v11 = vor.u32 %v2124_v52, %v2121_v45  ;;  %v2303_v0 = vsel %vm7956_vm10, 65537, %v7627_v9  ;;  %v2445_v21 = vsel %vm2429_vm7, 65537, %v7627_v9  ;;  %4850 = vmatprep.subr.bf16.mxu1 %v5086_v10 }
 0x1fc   : > { %v2446_v35 = vsel %vm2430_vm12, 65537, %v7627_v9  ;;  %vm2039_vm1 = vmpackc.low %vm7986_vm6, %vm7986_vm6  ;;  %vm9216_vm10 = vsmask.f32 4352  ;;  %vm9217_vm3 = vsmask.f32 256  ;;  %v4322_v16 = vcombine.low %v2302_v42, %v2303_v0  ;;  %4851 = vmatpush3.bf16.msra.mxu1 %v5086_v10 }
 0x1fd   : > { %v2206_v28 = vsel %vm9216_vm10, %v7862_v12, %v8009_v38  ;;  %v1883_v3 = vsel %vm9217_vm3, %v7839_v54, %v1882_v53  ;;  %v8050_v40 = vcombine.low %v2445_v21, %v2446_v35  ;;  %vm2040_vm11 = vmpackc.low %vm8003_vm2, %vm8003_vm2  ;;  %vm9218_vm12 = vsmask.f32 3328  ;;  %v9239_v35 = vld [vmem:[#allocation53_spill] sm:$0xff]  ;;  %4852 = vmatprep.subr.bf16.mxu1 %v5087_v56 }
 0x1fe   : > { %vm1905_vm7 = vcmp.ne.s16.totalorder %v1883_v3, 0  ;;  %v2126_v55 = vsel %vm9218_vm12, %v7891_v20, %v8025_v11  ;;  %v1810_v12 = vsel %vm8018_vm4, 65537, %v7627_v9  ;;  %v2128_v32 = vshrl.u32 %v4314_v44, 16  ;;  %vm8064_vm0 = vmpackc.low %vm834_vm8, %vm834_vm8  ;;  %3655 = vmatmul.mubr.bf16.gmra.mrb[56].mxu0 %v2206_v28  ;;  %v5108_v28 = vld [vmem:[#allocation2 + $0x20] sm:$0xff]  ;;  %v8150_v3 = vld [vmem:[#allocation2 + $0x38] sm:$0xff] }
 0x1ff   : > { %v1914_v63 = vsel %vm1905_vm7, %v8023_v15, 0  ;;  %vm2158_vm13 = vcmp.ne.s16.totalorder %v2126_v55, 0  ;;  %vm2339_vm5 = vcmp.ne.s16.totalorder %v4322_v16, 0  ;;  %vm9222_vm10 = vnez %v9221_v6  ;;  %3662 = vmatprep.mubr.bf16.mxu0 %v7968_v24  ;;  %3566 = vmatmul.mubr.bf16.gmra.mrb[44].mxu1 %v5108_v28 }
 0x200   : > { %v9223_v20 = vsel %vm9222_vm10, 65537, %v6829_v4  ;;  %vm9224_vm4 = vcmp.lt.f32.partialorder %v9201_v50, 6.5  ;;  %v1958_v59 = vshll.u32 %v1914_v63, 16  ;;  %v2167_v19 = vsel %vm2158_vm13, %v7889_v51, 0  ;;  %vm8097_vm13 = vmpackc.low %vm835_vm15, %vm835_vm15  ;;  %4853 = vmatpush3.bf16.msra.mxu1 %v5087_v56 }
 0x201   : > { %v4307_v36 = vcombine.low %v9223_v20, %v1810_v12  ;;  %vm8077_vm3 = vmand %vm835_vm15, %vm9224_vm4  ;;  %v8083_v41 = vsel %vm2339_vm5, %v8023_v15, 0  ;;  %v1962_v2 = vshrl.u32 %v1914_v63, 16  ;;  %vm9227_vm8 = vcmp.lt.f32.partialorder %v9206_v49, 6.5 }
 0x202   : > { %vm9228_vm7 = vcmp.lt.f32.partialorder %v9176_v14, 55.5  ;;  %v2208_v60 = vshrl.u32 %v2167_v19, 16  ;;  %v2211_v45 = vshll.u32 %v2167_v19, 16  ;;  %v2370_v1 = vrot.slane %v8083_v41, 4  ;;  %vm2431_vm5 = vmpackc.low %vm8077_vm3, %vm8077_vm3 }
 0x203   : > { %vm8089_vm12 = vmand %vm9228_vm7, %vm9227_vm8  ;;  %v1885_v46 = vshrl.u32 %v4307_v36, 16  ;;  %v1960_v18 = vrot.slane %v1958_v59, 1  ;;  %v1888_v30 = vshll.u32 %v4307_v36, 16  ;;  %v2130_v50 = vrot.slane %v2128_v32, 4 }
 0x204   : > { %v2131_v33 = vshll.u32 %v4314_v44, 16  ;;  %v2210_v52 = vrot.slane %v2208_v60, 3  ;;  %v2213_v47 = vrot.slane %v2211_v45, 4  ;;  %vm9233_vm15 = vcmask 1043456   ;;  %vm2432_vm10 = vmpackc.low %vm8089_vm12, %vm8089_vm12 }
 0x205   : > { %v2371_v57 = vsel %vm9233_vm15, %v2368_v37, %v2370_v1  ;;  %v8110_v49 = vrot.slane %v1885_v46, 7  ;;  %vm9234_vm4 = vsmask.f32 7424  ;;  %v1964_v44 = vor.u32 %v1962_v2, %v1960_v18  ;;  %v9235_v37 = vld [vmem:[#allocation54_spill] sm:$0xff] }
 0x206   : > { %v1961_v53 = vsel %vm9234_vm4, %v7991_v31, %v1960_v18  ;;  %v2133_v24 = vrot.slane %v2131_v33, 5  ;;  %v2055_v58 = vsel %vm2039_vm1, 65537, %v7627_v9  ;;  %vm9236_vm8 = vcmp.lt.f32.partialorder %v9235_v37, 6.5 }
 0x207   : > { %vm8126_vm7 = vmpackc.low %vm9236_vm8, %vm9236_vm8  ;;  %v8130_v0 = vor.u32 %v2213_v47, %v2210_v52  ;;  %v1890_v31 = vor.u32 %v1888_v30, %v8110_v49  ;;  %v2056_v8 = vsel %vm2040_vm11, 65537, %v7627_v9  ;;  %v2304_v21 = vsel %vm8064_vm0, 65537, %v7627_v9  ;;  %3573 = vmatprep.mubr.bf16.mxu1 %v1961_v53 }
 0x208   : > { %vm9240_vm6 = vcmp.ge.f32.partialorder %v9239_v35, 0.5  ;;  %v8152_v16 = vor.u32 %v2133_v24, %v2130_v50  ;;  %v4315_v43 = vcombine.low %v2055_v58, %v2056_v8  ;;  %v2305_v23 = vsel %vm8097_vm13, 65537, %v7627_v9  ;;  %v9270_v58 = vld [vmem:[#allocation67_spill] sm:$0xff] }
 0x209   : > { %vm8146_vm1 = vmand %vm837_vm9, %vm9240_vm6  ;;  %v2447_v55 = vsel %vm2431_vm5, 65537, %v7627_v9  ;;  %vm9243_vm2 = vcmp.ge.f32.partialorder %v9235_v37, 0.5  ;;  %vm9246_vm0 = vsmask.f32 4352  ;;  %vm9247_vm13 = vsmask.f32 256 }
 0x20a   : > { %vm8167_vm11 = vmand %vm838_vm14, %vm9243_vm2  ;;  %v2215_v32 = vsel %vm9246_vm0, %v8009_v38, %v8130_v0  ;;  %v1891_v54 = vsel %vm9247_vm13, %v7974_v29, %v1890_v31  ;;  %v4323_v63 = vcombine.low %v2304_v21, %v2305_v23  ;;  %v2448_v6 = vsel %vm2432_vm10, 65537, %v7627_v9 }
 0x20b   : > { %vm1906_vm3 = vcmp.ne.s16.totalorder %v1891_v54, 0  ;;  %vm9248_vm5 = vsmask.f32 3328  ;;  %v8185_v36 = vcombine.low %v2447_v55, %v2448_v6  ;;  %v1812_v29 = vsel %vm8126_vm7, 65537, %v7627_v9  ;;  %vm2041_vm15 = vmpackc.low %vm8146_vm1, %vm8146_vm1  ;;  %3663 = vmatmul.mubr.bf16.gmra.mrb[60].mxu0 %v2215_v32  ;;  %v8272_v55 = vld [vmem:[#allocation2 + $0x40] sm:$0xff] }
 0x20c   : > { %v2135_v20 = vsel %vm9248_vm5, %v8025_v11, %v8152_v16  ;;  %v1915_v38 = vsel %vm1906_vm3, %v8150_v3, 0  ;;  %vm2340_vm10 = vcmp.ne.s16.totalorder %v4323_v63, 0  ;;  %vm9250_vm4 = vnez %v9249_v7  ;;  %vm2042_vm8 = vmpackc.low %vm8167_vm11, %vm8167_vm11  ;;  %3670 = vmatprep.mubr.bf16.mxu0 %v2371_v57  ;;  %v1780_v54 = vld [vmem:[#allocation2 + $0x48] sm:$0x1] }
 0x20d   : > { %vm2159_vm12 = vcmp.ne.s16.totalorder %v2135_v20, 0  ;;  %v9251_v59 = vsel %vm9250_vm4, 65537, %v6829_v4  ;;  %v1966_v19 = vshll.u32 %v1915_v38, 16  ;;  %v8203_v27 = vsel %vm2340_vm10, %v8150_v3, 0 }
 0x20e   : > { %v4308_v11 = vcombine.low %v9251_v59, %v1812_v29  ;;  %v2168_v2 = vsel %vm2159_vm12, %v8023_v15, 0  ;;  %v1970_v10 = vshrl.u32 %v1915_v38, 16  ;;  %vm9252_vm7 = vcmp.lt.f32.partialorder %v9176_v14, 55.5  ;;  %vm8237_vm12 = vmpackc.low %vm837_vm9, %vm837_vm9 }
 0x20f   : > { %vm8208_vm6 = vmpackc.low %vm9252_vm7, %vm9252_vm7  ;;  %v2217_v4 = vshrl.u32 %v2168_v2, 16  ;;  %v2220_v45 = vshll.u32 %v2168_v2, 16  ;;  %v2372_v46 = vrot.slane %v8203_v27, 4  ;;  %vm9255_vm2 = vcmp.lt.f32.partialorder %v9239_v35, 6.5  ;;  %v5110_v2 = vld [vmem:[#allocation2 + $0x30] sm:$0xff] }
 0x210   : > { %v1893_v13 = vshrl.u32 %v4308_v11, 16  ;;  %vm8217_vm0 = vmand %vm837_vm9, %vm9255_vm2  ;;  %v1968_v14 = vrot.slane %v1966_v19, 1  ;;  %v1896_v30 = vshll.u32 %v4308_v11, 16  ;;  %v2137_v50 = vshrl.u32 %v4315_v43, 16 }
 0x211   : > { %v2140_v33 = vshll.u32 %v4315_v43, 16  ;;  %vm9258_vm13 = vcmp.lt.f32.partialorder %v9235_v37, 6.5  ;;  %v2219_v47 = vrot.slane %v2217_v4, 3  ;;  %v2222_v57 = vrot.slane %v2220_v45, 4  ;;  %v5109_v37 = vld [vmem:[#allocation2 + $0x28] sm:$0xff]  ;;  %vm2433_vm4 = vmpackc.low %vm8217_vm0, %vm8217_vm0 }
 0x212   : > { %vm8225_vm3 = vmand %vm838_vm14, %vm9258_vm13  ;;  %vm9261_vm5 = vcmask 1043456   ;;  %v1895_v24 = vrot.slane %v1893_v13, 7  ;;  %3574 = vmatmul.mubr.bf16.gmra.mrb[48].mxu1 %v5109_v37  ;;  %vm9264_vm10 = vsmask.f32 7424  ;;  %v1972_v56 = vor.u32 %v1970_v10, %v1968_v14  ;;  %v9271_v37 = vld [vmem:[#allocation69_spill] sm:$0xff] }
 0x213   : > { %v2373_v53 = vsel %vm9261_vm5, %v2370_v1, %v2372_v46  ;;  %v1969_v42 = vsel %vm9264_vm10, %v1964_v44, %v1968_v14  ;;  %v2139_v31 = vrot.slane %v2137_v50, 4  ;;  %v2142_v8 = vrot.slane %v2140_v33, 5  ;;  %vm2434_vm9 = vmpackc.low %vm8225_vm3, %vm8225_vm3 }
 0x214   : > { %3581 = vmatprep.mubr.bf16.mxu1 %v1969_v42  ;;  %v2223_v41 = vor.u32 %v2222_v57, %v2219_v47  ;;  %v1898_v1 = vor.u32 %v1896_v30, %v1895_v24  ;;  %v2057_v25 = vsel %vm2041_vm15, 65537, %v7627_v9  ;;  %v2058_v44 = vsel %vm2042_vm8, 65537, %v7627_v9  ;;  %vm2292_vm0 = vmpackc.low %vm838_vm14, %vm838_vm14  ;;  %v2276_v57 = vld [vmem:[#allocation2 + $0x48] sm:$0xf] }
 0x215   : > { %v8260_v21 = vor.u32 %v2142_v8, %v2139_v31  ;;  %v4316_v35 = vcombine.low %v2057_v25, %v2058_v44  ;;  %v2306_v26 = vsel %vm8208_vm6, 65537, %v7627_v9  ;;  %v2307_v28 = vsel %vm8237_vm12, 65537, %v7627_v9  ;;  %vm9268_vm13 = vmmov %vm9261_vm5  ;;  %v9273_v31 = vld [vmem:[#allocation65_spill] sm:$0xff] }
 0x216   : > { %vm9265_vm1 = vsmask.f32 4352  ;;  %vm9266_vm11 = vsmask.f32 256  ;;  %v4324_v12 = vcombine.low %v2306_v26, %v2307_v28  ;;  %v2449_v32 = vsel %vm2433_vm4, 65537, %v7627_v9  ;;  %vm9269_vm3 = vmmov %vm9264_vm10  ;;  %v9276_v26 = vld [vmem:[#allocation71_spill] sm:$0xff] }
 0x217   : > { %v2224_v43 = vsel %vm9265_vm1, %v8130_v0, %v2223_v41  ;;  %v1899_v23 = vsel %vm9266_vm11, %v8110_v49, %v1898_v1  ;;  %vm9267_vm8 = vsmask.f32 3328  ;;  %v2450_v6 = vsel %vm2434_vm9, 65537, %v7627_v9  ;;  %vm9272_vm14 = vmmov %vm9269_vm3  ;;  %v2010_v44 = vld [vmem:[#allocation2 + $0x48] sm:$0xf] }
 0x218   : > { %3671 = vmatmul.mubr.bf16.gmra.mrb[64].mxu0 %v2224_v43  ;;  %vm1907_vm15 = vcmp.ne.s16.totalorder %v1899_v23, 0  ;;  %v2144_v63 = vsel %vm9267_vm8, %v8152_v16, %v8260_v21  ;;  %vm1908_vm7 = vcmp.ne.s16.totalorder %v1895_v24, 0  ;;  %vm2341_vm2 = vcmp.ne.s16.totalorder %v4324_v12, 0  ;;  %v2394_v24 = vld [vmem:[#allocation2 + $0x8] sm:$0xf0]  ;;  %vm9275_vm5 = vmmov %vm9265_vm1 }
 0x219   : > { %3678 = vmatprep.mubr.bf16.mxu0 %v2373_v53  ;;  %v1916_v0 = vsel %vm1907_vm15, %v7474_v62, 0  ;;  %vm2160_vm6 = vcmp.ne.s16.totalorder %v2144_v63, 0  ;;  %v8280_v49 = vcombine.low %v2449_v32, %v2450_v6  ;;  %v2350_v38 = vsel %vm2341_vm2, %v8272_v55, 0  ;;  %vm9277_vm4 = vmmov %vm9267_vm8  ;;  %v5111_v32 = vld [vmem:[#allocation2 + $0x38] sm:$0xff] }
 0x21a   : > { %v1974_v20 = vshll.u32 %v1916_v0, 16  ;;  %v2169_v29 = vsel %vm2160_vm6, %v8150_v3, 0  ;;  %v1917_v7 = vsel %vm1908_vm7, %v1780_v54, 0  ;;  %v2374_v11 = vrot.slane %v2350_v38, 4  ;;  %3582 = vmatmul.mubr.bf16.gmra.mrb[52].mxu1 %v5110_v2  ;;  %v2395_v54 = vld [vmem:[#allocation2 + $0x10] sm:$0xff]  ;;  %vm9278_vm11 = vmmov %vm9275_vm5 }
 0x21b   : > { %v2226_v16 = vshrl.u32 %v2169_v29, 16  ;;  %v2229_v59 = vshll.u32 %v2169_v29, 16  ;;  %v1978_v19 = vshrl.u32 %v1916_v0, 16  ;;  %v1982_v10 = vshll.u32 %v1917_v7, 16  ;;  %vm9279_vm15 = vmmov %vm9268_vm13 }
 0x21c   : > { %v1976_v62 = vrot.slane %v1974_v20, 1  ;;  %v2146_v60 = vshrl.u32 %v4316_v35, 16  ;;  %v2149_v4 = vshll.u32 %v4316_v35, 16  ;;  %v2375_v18 = vsel %vm9268_vm13, %v2372_v46, %v2374_v11  ;;  %vm9280_vm7 = vmmov %vm9275_vm5 }
 0x21d   : > { %v2228_v45 = vrot.slane %v2226_v16, 3  ;;  %v2231_v13 = vrot.slane %v2229_v59, 4  ;;  %v2308_v39 = vsel %vm2292_vm0, 65537, %v7627_v9  ;;  %v1984_v50 = vrot.slane %v1982_v10, 1  ;;  %vm9281_vm2 = vmmov %vm9275_vm5 }
 0x21e   : > { %v1977_v14 = vsel %vm9269_vm3, %v1972_v56, %v1976_v62  ;;  %v1980_v30 = vor.u32 %v1978_v19, %v1976_v62  ;;  %v2148_v33 = vrot.slane %v2146_v60, 4  ;;  %v2151_v47 = vrot.slane %v2149_v4, 5  ;;  %vm9282_vm0 = vmmov %vm9281_vm2 }
 0x21f   : > { %3589 = vmatprep.mubr.bf16.mxu1 %v1977_v14  ;;  %v2232_v52 = vor.u32 %v2231_v13, %v2228_v45  ;;  %v4325_v53 = vcombine.low %v2308_v39, %v2308_v39  ;;  %v2482_v42 = vor.u32 %v9271_v37, %v9270_v58  ;;  %v9274_v46 = vshll.u32 %v9273_v31, 16  ;;  %v5112_v58 = vld [vmem:[#allocation2 + $0x40] sm:$0xff]  ;;  %vm9283_vm13 = vmmov %vm9277_vm4 }
 0x220   : > { %v1985_v27 = vsel %vm9272_vm14, %v1980_v30, %v1984_v50  ;;  %v8299_v9 = vor.u32 %v7723_v17, %v7721_v5  ;;  %v2502_v56 = vshrl.u32 %v7772_v22, 16  ;;  %v2152_v25 = vor.u32 %v2151_v47, %v2148_v33  ;;  %vm9284_vm3 = vmmov %vm9282_vm0 }
 0x221   : > { %v2489_v8 = vrot.slane %v9274_v46, 4  ;;  %v2233_v1 = vsel %vm9275_vm5, %v2223_v41, %v2232_v52  ;;  %vm2342_vm12 = vcmp.ne.s16.totalorder %v4325_v53, 0  ;;  %vm2546_vm10 = vcmp.ne.s16.totalorder %v2482_v42, 0  ;;  %vm9285_vm5 = vmmov %vm9282_vm0 }
 0x222   : > { %3679 = vmatmul.mubr.bf16.gmra.mrb[68].mxu0 %v2233_v1  ;;  %v2351_v35 = vsel %vm2342_vm12, %v2276_v57, 0  ;;  %v2555_v43 = vsel %vm2546_vm10, %v2394_v24, 0  ;;  %v2504_v23 = vrot.slane %v2502_v56, 3  ;;  %v2153_v12 = vsel %vm9277_vm4, %v8260_v21, %v2152_v25  ;;  %3590 = vmatmul.mubr.bf16.gmra.mrb[56].mxu1 %v5111_v32  ;;  %vm9286_vm10 = vmmov %vm9277_vm4 }
 0x223   : > { %v2490_v28 = vor.u32 %v2489_v8, %v9276_v26  ;;  %3686 = vmatprep.mubr.bf16.mxu0 %v2375_v18  ;;  %v2376_v5 = vrot.slane %v2351_v35, 4  ;;  %vm2162_vm9 = vcmp.ne.s16.totalorder %v2152_v25, 0  ;;  %v2565_v17 = vshrl.u32 %v2555_v43, 16  ;;  %3597 = vmatprep.mubr.bf16.mxu1 %v1985_v27  ;;  %vm9287_vm4 = vmmov %vm9282_vm0 }
 0x224   : > { %vm2161_vm1 = vcmp.ne.s16.totalorder %v2153_v12, 0  ;;  %v2171_v41 = vsel %vm2162_vm9, %v2010_v44, 0  ;;  %v2568_v6 = vshll.u32 %v2555_v43, 16  ;;  %v2511_v57 = vshrl.u32 %v7925_v48, 16 }
 0x225   : > { %v2491_v63 = vsel %vm9278_vm11, %v2482_v42, %v2490_v28  ;;  %v2170_v0 = vsel %vm2161_vm1, %v8272_v55, 0  ;;  %v2377_v20 = vsel %vm9279_vm15, %v2374_v11, %v2376_v5  ;;  %v2244_v29 = vshrl.u32 %v2171_v41, 16  ;;  %vm9288_vm1 = vmmov %vm9282_vm0 }
 0x226   : > { %v2247_v38 = vshll.u32 %v2171_v41, 16  ;;  %v2235_v7 = vshrl.u32 %v2170_v0, 16  ;;  %v2238_v21 = vshll.u32 %v2170_v0, 16  ;;  %vm2547_vm8 = vcmp.ne.s16.totalorder %v2491_v63, 0  ;;  %vm9289_vm11 = vmmov %vm9286_vm10 }
 0x227   : > { %v2567_v16 = vrot.slane %v2565_v17, 4  ;;  %v2246_v59 = vrot.slane %v2244_v29, 3  ;;  %v2556_v2 = vsel %vm2547_vm8, %v2395_v54, 0  ;;  %v2570_v62 = vrot.slane %v2568_v6, 5  ;;  %vm9290_vm8 = vmmov %vm9286_vm10 }
 0x228   : > { %v2249_v19 = vrot.slane %v2247_v38, 4  ;;  %v2237_v10 = vrot.slane %v2235_v7, 3  ;;  %v2240_v60 = vrot.slane %v2238_v21, 4  ;;  %v2573_v4 = vshrl.u32 %v2556_v2, 16 }
 0x229   : > { %v2576_v45 = vshll.u32 %v2556_v2, 16  ;;  %v2571_v18 = vor.u32 %v2570_v62, %v2567_v16  ;;  %v2500_v39 = vsel %vm9280_vm7, %v2490_v28, %v8299_v9  ;;  %v2505_v11 = vshll.u32 %v7772_v22, 16  ;;  %vm9291_vm7 = vmmov %vm9282_vm0 }
 0x22a   : > { %v2250_v13 = vor.u32 %v2249_v19, %v2246_v59  ;;  %v2241_v14 = vor.u32 %v2240_v60, %v2237_v10  ;;  %v2575_v30 = vrot.slane %v2573_v4, 4  ;;  %vm2548_vm6 = vcmp.ne.s16.totalorder %v2500_v39, 0  ;;  %3598 = vmatmul.mubr.bf16.gmra.mrb[60].mxu1 %v5112_v58 }
 0x22b   : > { %v2578_v50 = vrot.slane %v2576_v45, 5  ;;  %v2557_v33 = vsel %vm2548_vm6, %v7536_v34, 0  ;;  %v2507_v47 = vrot.slane %v2505_v11, 4  ;;  %v2514_v53 = vshll.u32 %v7925_v48, 16 }
 0x22c   : > { %v2242_v24 = vsel %vm9281_vm2, %v2232_v52, %v2241_v14  ;;  %v2251_v37 = vsel %vm9282_vm0, %v2241_v14, %v2250_v13  ;;  %v2582_v27 = vshrl.u32 %v2557_v33, 16  ;;  %v2585_v22 = vshll.u32 %v2557_v33, 16  ;;  %vm9292_vm0 = vmmov %vm9290_vm8 }
 0x22d   : > { %v2579_v42 = vor.u32 %v2578_v50, %v2575_v30  ;;  %3687 = vmatmul.mubr.bf16.gmra.mrb[72].mxu0 %v2242_v24  ;;  %v2508_v31 = vor.u32 %v2507_v47, %v2504_v23  ;;  %v2513_v46 = vrot.slane %v2511_v57, 3  ;;  %v2516_v8 = vrot.slane %v2514_v53, 4 }
 0x22e   : > { %3694 = vmatprep.mubr.bf16.mxu0 %v2377_v20  ;;  %v2584_v56 = vrot.slane %v2582_v27, 4  ;;  %v2520_v1 = vshrl.u32 %v8050_v40, 16  ;;  %v2523_v48 = vshll.u32 %v8050_v40, 16  ;;  %v2587_v52 = vrot.slane %v2585_v22, 5 }
 0x22f   : > { %v2580_v34 = vsel %vm9283_vm13, %v2571_v18, %v2579_v42  ;;  %v2509_v25 = vsel %vm9284_vm3, %v8299_v9, %v2508_v31  ;;  %v2517_v44 = vor.u32 %v2516_v8, %v2513_v46  ;;  %v2529_v35 = vshrl.u32 %v8185_v36, 16  ;;  %v2402_v18 = vld [vmem:[#allocation2 + $0x48] sm:$0x1f]  ;;  %vm9293_vm13 = vmmov %vm9292_vm0 }
 0x230   : > { %4854 = vmatprep.mubr.bf16.mxu1 %v2580_v34  ;;  %vm2549_vm14 = vcmp.ne.s16.totalorder %v2509_v25, 0  ;;  %v2522_v26 = vrot.slane %v2520_v1, 3  ;;  %v2525_v28 = vrot.slane %v2523_v48, 4  ;;  %v2532_v43 = vshll.u32 %v8185_v36, 16  ;;  %vm9294_vm3 = vmmov %vm9292_vm0  ;;  %v5088_v25 = vld [vmem:[#allocation10] sm:$0xff]  }
 0x231   : > { %v2588_v23 = vor.u32 %v2587_v52, %v2584_v56  ;;  %v2558_v12 = vsel %vm2549_vm14, %v7767_v61, 0  ;;  %v2518_v5 = vsel %vm9285_vm5, %v2508_v31, %v2517_v44  ;;  %v2531_v17 = vrot.slane %v2529_v35, 3  ;;  %vm9295_vm14 = vmmov %vm9292_vm0  ;;  %4870 = vmatprep.subr.bf16.mxu0 %v5088_v25  ;;  %4902 = vmatprep.subr.bf16.mxu1 %v5088_v25  ;;  %v5090_v35 = vld [vmem:[#allocation10 + $0x10] sm:$0xff]  }
 0x232   : > { %v2591_v40 = vshrl.u32 %v2558_v12, 16  ;;  %v2594_v32 = vshll.u32 %v2558_v12, 16  ;;  %vm2550_vm12 = vcmp.ne.s16.totalorder %v2518_v5, 0  ;;  %v2526_v41 = vor.u32 %v2525_v28, %v2522_v26  ;;  %4871 = vmatpush3.bf16.msra.mxu0 %v5088_v25  ;;  %v5091_v26 = vld [vmem:[#allocation10 + $0x18] sm:$0xff]  }
 0x233   : > { %v2589_v9 = vsel %vm9286_vm10, %v2579_v42, %v2588_v23  ;;  %v2559_v54 = vsel %vm2550_vm12, %v7889_v51, 0  ;;  %v2534_v63 = vrot.slane %v2532_v43, 4  ;;  %v2538_v6 = vshrl.u32 %v8280_v49, 16 }
 0x234   : > { %4855 = vmatmul.mubr.bf16.vlgmr.msra.gmra.mrb[64].mxu1 %v2589_v9  ;;  %v2593_v0 = vrot.slane %v2591_v40, 4  ;;  %v2596_v36 = vrot.slane %v2594_v32, 5  ;;  %v2600_v20 = vshrl.u32 %v2559_v54, 16  ;;  %v2603_v29 = vshll.u32 %v2559_v54, 16  ;;  %v5092_v32 = vld [vmem:[#allocation10 + $0x20] sm:$0xff]  }
 0x235   : > { %3695 = vmatmul.mubr.bf16.gmra.mrb[76].mxu0 %v2251_v37  ;;  %v2527_v61 = vsel %vm9287_vm4, %v2517_v44, %v2526_v41  ;;  %v2535_v38 = vor.u32 %v2534_v63, %v2531_v17  ;;  %v2540_v7 = vrot.slane %v2538_v6, 3  ;;  %v2541_v21 = vshll.u32 %v8280_v49, 16  ;;  %4910 = vmatpush3.bf16.msra.mxu1 %v5088_v25  ;;  %v5089_v44 = vld [vmem:[#allocation10 + $0x8] sm:$0xff]  }
 0x236   : > { %v2597_v16 = vor.u32 %v2596_v36, %v2593_v0  ;;  %v2602_v59 = vrot.slane %v2600_v20, 4  ;;  %v2605_v19 = vrot.slane %v2603_v29, 5  ;;  %vm2551_vm9 = vcmp.ne.s16.totalorder %v2527_v61, 0  ;;  %4872 = vmatprep.subr.bf16.mxu0 %v5089_v44  ;;  %4903 = vmatprep.subr.bf16.mxu1 %v5089_v44  ;;  %v5093_v63 = vld [vmem:[#allocation10 + $0x28] sm:$0xff]  }
 0x237   : > { %v2560_v51 = vsel %vm2551_vm9, %v8023_v15, 0  ;;  %v2536_v2 = vsel %vm9288_vm1, %v2526_v41, %v2535_v38  ;;  %v2543_v62 = vrot.slane %v2541_v21, 4  ;;  %4873 = vmatpush3.bf16.msra.mxu0 %v5089_v44 }
 0x238   : > { %v2598_v10 = vsel %vm9289_vm11, %v2588_v23, %v2597_v16  ;;  %v2606_v60 = vor.u32 %v2605_v19, %v2602_v59  ;;  %v2609_v4 = vshrl.u32 %v2560_v51, 16  ;;  %v2612_v45 = vshll.u32 %v2560_v51, 16  ;;  %4874 = vmatprep.subr.bf16.mxu0 %v5090_v35  ;;  %v8345_v23 = vld [vmem:[%s8540_s4] ss:$0 sm:$0xff] }
 0x239   : > { %4858 = vmatprep.mubr.bf16.mxu1 %v2598_v10  ;;  %vm2552_vm15 = vcmp.ne.s16.totalorder %v2536_v2, 0  ;;  %v2544_v13 = vor.u32 %v2543_v62, %v2540_v7  ;;  %4911 = vmatpush3.bf16.msra.mxu1 %v5089_v44  ;;  %v5094_v7 = vld [vmem:[#allocation10 + $0x30] sm:$0xff]   ;;  %v5095_v2 = vld [vmem:[#allocation10 + $0x38] sm:$0xff]  }
 0x23a   : > { %v2607_v49 = vsel %vm9290_vm8, %v2597_v16, %v2606_v60  ;;  %v2611_v39 = vrot.slane %v2609_v4, 4  ;;  %v2614_v11 = vrot.slane %v2612_v45, 5  ;;  %v2561_v14 = vsel %vm2552_vm15, %v8150_v3, 0  ;;  %4904 = vmatprep.subr.bf16.mxu1 %v5090_v35 }
 0x23b   : > { %v2618_v30 = vshrl.u32 %v2561_v14, 16  ;;  %v2621_v15 = vshll.u32 %v2561_v14, 16  ;;  %v2545_v50 = vsel %vm9291_vm7, %v2535_v38, %v2544_v13  ;;  %vm2554_vm6 = vcmp.ne.s16.totalorder %v2544_v13, 0  ;;  %4875 = vmatpush3.bf16.msra.mxu0 %v5090_v35 }
 0x23c   : > { %4859 = vmatmul.mubr.bf16.gmra.mrb[68].mxu1 %v2607_v49  ;;  %v2615_v33 = vor.u32 %v2614_v11, %v2611_v39  ;;  %vm2553_vm2 = vcmp.ne.s16.totalorder %v2545_v50, 0  ;;  %v2563_v47 = vsel %vm2554_vm6, %v2402_v18, 0  ;;  %4876 = vmatprep.subr.bf16.mxu0 %v5091_v26 }
 0x23d   : > { %v2620_v57 = vrot.slane %v2618_v30, 4  ;;  %v2623_v53 = vrot.slane %v2621_v15, 5  ;;  %v2562_v24 = vsel %vm2553_vm2, %v8272_v55, 0  ;;  %v2636_v58 = vshrl.u32 %v2563_v47, 16  ;;  %4912 = vmatpush3.bf16.msra.mxu1 %v5090_v35 }
 0x23e   : > { %v2616_v37 = vsel %vm9292_vm0, %v2606_v60, %v2615_v33  ;;  %v2627_v42 = vshrl.u32 %v2562_v24, 16  ;;  %v2630_v27 = vshll.u32 %v2562_v24, 16  ;;  %v2639_v22 = vshll.u32 %v2563_v47, 16  ;;  %4905 = vmatprep.subr.bf16.mxu1 %v5091_v26 }
 0x23f   : > { %4862 = vmatprep.mubr.bf16.mxu1 %v2616_v37  ;;  %v2624_v3 = vor.u32 %v2623_v53, %v2620_v57  ;;  %v2638_v31 = vrot.slane %v2636_v58, 4  ;;  %4877 = vmatpush3.bf16.msra.mxu0 %v5091_v26 }
 0x240   : > { %v2629_v46 = vrot.slane %v2627_v42, 4  ;;  %v2632_v8 = vrot.slane %v2630_v27, 5  ;;  %v2641_v34 = vrot.slane %v2639_v22, 5  ;;  %4878 = vmatprep.subr.bf16.mxu0 %v5092_v32 }
 0x241   : > { %v2625_v56 = vsel %vm9293_vm13, %v2615_v33, %v2624_v3  ;;  %4913 = vmatpush3.bf16.msra.mxu1 %v5091_v26 }
 0x242   : > { %v2633_v1 = vor.u32 %v2632_v8, %v2629_v46  ;;  %v2642_v48 = vor.u32 %v2641_v34, %v2638_v31  ;;  %4906 = vmatprep.subr.bf16.mxu1 %v5092_v32 }
 0x243   : > { %4879 = vmatpush3.bf16.msra.mxu0 %v5092_v32 }
 0x244   : > { %4863 = vmatmul.mubr.bf16.gmra.mrb[72].mxu1 %v2625_v56  ;;  %v2634_v52 = vsel %vm9294_vm3, %v2624_v3, %v2633_v1  ;;  %v2643_v55 = vsel %vm9295_vm14, %v2633_v1, %v2642_v48  ;;  %4880 = vmatprep.subr.bf16.mxu0 %v5093_v63 }
 0x245   : > { %4866 = vmatprep.mubr.bf16.mxu1 %v2634_v52  ;;  %4914 = vmatpush3.bf16.msra.mxu1 %v5092_v32 }
 0x246   : > { %4907 = vmatprep.subr.bf16.mxu1 %v5093_v63 }
 0x247   : > { %4881 = vmatpush3.bf16.msra.mxu0 %v5093_v63 }
 0x248   : > { %4882 = vmatprep.subr.bf16.mxu0 %v5094_v7 }
 0x249   : > { %4915 = vmatpush3.bf16.msra.mxu1 %v5093_v63 }
 0x24a   : > { %4908 = vmatprep.subr.bf16.mxu1 %v5094_v7 }
 0x24b   : > { %4883 = vmatpush3.bf16.msra.mxu0 %v5094_v7 }
 0x24c   : > { %4867 = vmatmul.mubr.bf16.gmra.mrb[76].mxu1 %v2643_v55  ;;  %4884 = vmatprep.subr.bf16.mxu0 %v5095_v2 }
 0x24d   : > { %4916 = vmatpush3.bf16.msra.mxu1 %v5094_v7 }
 0x24e   : > { %4909 = vmatprep.subr.bf16.mxu1 %v5095_v2 }
 0x24f   : > { %4885 = vmatpush3.bf16.msra.mxu0 %v5095_v2 }
 0x251   : > { %4917 = vmatpush3.bf16.msra.mxu1 %v5095_v2 }
 0x265   : > { %v4534_v28 = vpop.f32.mrb[0].mxu1 }
 0x266   : > { %v4535_v43 = vpop.f32.mrb[1].mxu1 }
 0x267   : > { %v4536_v12 = vadd.f32 %v4535_v43, %v4534_v28  ;;  %v4537_v5 = vpop.f32.mrb[2].mxu1 }
 0x268   : > { %v4538_v17 = vpop.f32.mrb[3].mxu1 }
 0x269   : > { %v4539_v40 = vadd.f32 %v4538_v17, %v4537_v5  ;;  %v3350_v41 = vadd.f32 %v4536_v12, %v8345_v23 }
 0x26b   : > { %v3353_v0 = vadd.f32 %v4539_v40, %v8345_v23 }
 0x26c   : > { %v4598_v9 = vpop.f32.mrb[16].mxu0 }
 0x26d   : > { %v4599_v54 = vpop.f32.mrb[17].mxu0 }
 0x26e   : > { %v4600_v6 = vadd.f32 %v4599_v54, %v4598_v9  ;;  %v4601_v36 = vpop.f32.mrb[18].mxu0 }
 0x26f   : > { %v4602_v20 = vpop.f32.mrb[19].mxu0 }
 0x270   : > { %v8349_v29 = vadd.f32 %v4600_v6, %v3350_v41  ;;  %v4603_v61 = vadd.f32 %v4602_v20, %v4601_v36  ;;  %v4540_v38 = vpop.f32.mrb[4].mxu1 }
 0x271   : > { %v4541_v21 = vpop.f32.mrb[5].mxu1 }
 0x272   : > { %v8351_v16 = vadd.f32 %v4603_v61, %v3353_v0  ;;  %v4542_v59 = vadd.f32 %v4541_v21, %v4540_v38  ;;  %v4543_v19 = vpop.f32.mrb[6].mxu1 }
 0x273   : > { %v4544_v51 = vpop.f32.mrb[7].mxu1 }
 0x274   : > { %v3358_v62 = vadd.f32 %v4542_v59, %v8345_v23  ;;  %v4604_v10 = vpop.f32.mrb[20].mxu0  ;;  %v4545_v60 = vadd.f32 %v4544_v51, %v4543_v19 }
 0x275   : > { %v4605_v4 = vpop.f32.mrb[21].mxu0 }
 0x276   : > { %v4606_v45 = vadd.f32 %v4605_v4, %v4604_v10  ;;  %v3361_v13 = vadd.f32 %v4545_v60, %v8345_v23  ;;  %v4607_v18 = vpop.f32.mrb[22].mxu0 }
 0x277   : > { %v4608_v49 = vpop.f32.mrb[23].mxu0 }
 0x278   : > { %v8355_v39 = vadd.f32 %v4606_v45, %v3358_v62  ;;  %v4609_v11 = vadd.f32 %v4608_v49, %v4607_v18 }
 0x279   : > { %v4546_v14 = vpop.f32.mrb[8].mxu1 }
 0x27a   : > { %v4547_v30 = vpop.f32.mrb[9].mxu1  ;;  %v8357_v15 = vadd.f32 %v4609_v11, %v3361_v13 }
 0x27b   : > { %v4548_v50 = vadd.f32 %v4547_v30, %v4546_v14  ;;  %v4549_v33 = vpop.f32.mrb[10].mxu1 }
 0x27c   : > { %v4550_v47 = vpop.f32.mrb[11].mxu1 }
 0x27d   : > { %v3366_v57 = vadd.f32 %v4548_v50, %v8345_v23  ;;  %v4610_v53 = vpop.f32.mrb[24].mxu0  ;;  %v4551_v24 = vadd.f32 %v4550_v47, %v4549_v33 }
 0x27e   : > { %v4611_v58 = vpop.f32.mrb[25].mxu0 }
 0x27f   : > { %v4612_v37 = vadd.f32 %v4611_v58, %v4610_v53  ;;  %v3369_v42 = vadd.f32 %v4551_v24, %v8345_v23  ;;  %v4613_v27 = vpop.f32.mrb[26].mxu0 }
 0x280   : > { %v4614_v22 = vpop.f32.mrb[27].mxu0 }
 0x281   : > { %v8361_v3 = vadd.f32 %v4612_v37, %v3366_v57  ;;  %v4615_v31 = vadd.f32 %v4614_v22, %v4613_v27  ;;  %v4552_v46 = vpop.f32.mrb[12].mxu1 }
 0x282   : > { %v4553_v8 = vpop.f32.mrb[13].mxu1 }
 0x283   : > { %v8363_v34 = vadd.f32 %v4615_v31, %v3369_v42  ;;  %v4554_v56 = vadd.f32 %v4553_v8, %v4552_v46  ;;  %v4555_v1 = vpop.f32.mrb[14].mxu1 }
 0x284   : > { %v4556_v48 = vpop.f32.mrb[15].mxu1 }
 0x285   : > { %v3374_v52 = vadd.f32 %v4554_v56, %v8345_v23  ;;  %v4616_v55 = vpop.f32.mrb[28].mxu0  ;;  %v4557_v25 = vadd.f32 %v4556_v48, %v4555_v1 }
 0x286   : > { %v4617_v44 = vpop.f32.mrb[29].mxu0 }
 0x287   : > { %v4618_v35 = vadd.f32 %v4617_v44, %v4616_v55  ;;  %v3377_v26 = vadd.f32 %v4557_v25, %v8345_v23  ;;  %v4619_v28 = vpop.f32.mrb[30].mxu0 }
 0x288   : > { %v4620_v43 = vpop.f32.mrb[31].mxu0 }
 0x289   : > { %v8367_v12 = vadd.f32 %v4618_v35, %v3374_v52  ;;  %v4621_v5 = vadd.f32 %v4620_v43, %v4619_v28 }
 0x28a   : > { %v4558_v17 = vpop.f32.mrb[16].mxu1 }
 0x28b   : > { %v4559_v40 = vpop.f32.mrb[17].mxu1  ;;  %v8369_v32 = vadd.f32 %v4621_v5, %v3377_v26 }
 0x28c   : > { %v4560_v41 = vadd.f32 %v4559_v40, %v4558_v17  ;;  %v4561_v9 = vpop.f32.mrb[18].mxu1 }
 0x28d   : > { %v4562_v54 = vpop.f32.mrb[19].mxu1  ;;  %v4622_v6 = vpop.f32.mrb[32].mxu0 }
 0x28e   : > { %v3382_v63 = vadd.f32 %v4560_v41, %v8345_v23  ;;  %v4563_v0 = vadd.f32 %v4562_v54, %v4561_v9  ;;  %v4623_v36 = vpop.f32.mrb[33].mxu0 }
 0x28f   : > { %v4624_v20 = vadd.f32 %v4623_v36, %v4622_v6  ;;  %v4625_v38 = vpop.f32.mrb[34].mxu0 }
 0x290   : > { %v3385_v61 = vadd.f32 %v4563_v0, %v8345_v23  ;;  %v4626_v7 = vpop.f32.mrb[35].mxu0 }
 0x291   : > { %v8373_v21 = vadd.f32 %v4624_v20, %v3382_v63  ;;  %v4627_v59 = vadd.f32 %v4626_v7, %v4625_v38 }
 0x292   : > { %v4564_v19 = vpop.f32.mrb[20].mxu1 }
 0x293   : > { %v4565_v51 = vpop.f32.mrb[21].mxu1  ;;  %v8375_v2 = vadd.f32 %v4627_v59, %v3385_v61 }
 0x294   : > { %v4566_v62 = vadd.f32 %v4565_v51, %v4564_v19  ;;  %v4567_v10 = vpop.f32.mrb[22].mxu1 }
 0x295   : > { %v4568_v60 = vpop.f32.mrb[23].mxu1  ;;  %v4628_v45 = vpop.f32.mrb[36].mxu0 }
 0x296   : > { %v3390_v4 = vadd.f32 %v4566_v62, %v8345_v23  ;;  %v4569_v13 = vadd.f32 %v4568_v60, %v4567_v10  ;;  %v4629_v18 = vpop.f32.mrb[37].mxu0 }
 0x297   : > { %v4630_v49 = vadd.f32 %v4629_v18, %v4628_v45  ;;  %v4631_v14 = vpop.f32.mrb[38].mxu0 }
 0x298   : > { %v3393_v11 = vadd.f32 %v4569_v13, %v8345_v23  ;;  %v4632_v30 = vpop.f32.mrb[39].mxu0 }
 0x299   : > { %v8379_v50 = vadd.f32 %v4630_v49, %v3390_v4  ;;  %v4633_v33 = vadd.f32 %v4632_v30, %v4631_v14 }
 0x29a   : > { %v4570_v47 = vpop.f32.mrb[24].mxu1 }
 0x29b   : > { %v4571_v57 = vpop.f32.mrb[25].mxu1  ;;  %v8381_v53 = vadd.f32 %v4633_v33, %v3393_v11 }
 0x29c   : > { %v4572_v24 = vadd.f32 %v4571_v57, %v4570_v47  ;;  %v4573_v58 = vpop.f32.mrb[26].mxu1 }
 0x29d   : > { %v4574_v37 = vpop.f32.mrb[27].mxu1  ;;  %v4634_v27 = vpop.f32.mrb[40].mxu0 }
 0x29e   : > { %v3398_v42 = vadd.f32 %v4572_v24, %v8345_v23  ;;  %v4575_v22 = vadd.f32 %v4574_v37, %v4573_v58  ;;  %v4635_v31 = vpop.f32.mrb[41].mxu0 }
 0x29f   : > { %v4636_v46 = vadd.f32 %v4635_v31, %v4634_v27  ;;  %v4637_v56 = vpop.f32.mrb[42].mxu0 }
 0x2a0   : > { %v3401_v8 = vadd.f32 %v4575_v22, %v8345_v23  ;;  %v4638_v1 = vpop.f32.mrb[43].mxu0 }
 0x2a1   : > { %v8385_v48 = vadd.f32 %v4636_v46, %v3398_v42  ;;  %v4639_v52 = vadd.f32 %v4638_v1, %v4637_v56 }
 0x2a2   : > { %v4576_v55 = vpop.f32.mrb[28].mxu1 }
 0x2a3   : > { %v4577_v25 = vpop.f32.mrb[29].mxu1  ;;  %v8387_v44 = vadd.f32 %v4639_v52, %v3401_v8 }
 0x2a4   : > { %v4578_v35 = vadd.f32 %v4577_v25, %v4576_v55  ;;  %v4579_v26 = vpop.f32.mrb[30].mxu1 }
 0x2a5   : > { %v4580_v28 = vpop.f32.mrb[31].mxu1  ;;  %v4640_v5 = vpop.f32.mrb[44].mxu0 }
 0x2a6   : > { %v3406_v43 = vadd.f32 %v4578_v35, %v8345_v23  ;;  %v4581_v17 = vadd.f32 %v4580_v28, %v4579_v26  ;;  %v4641_v40 = vpop.f32.mrb[45].mxu0 }
 0x2a7   : > { %v4642_v41 = vadd.f32 %v4641_v40, %v4640_v5  ;;  %v4643_v54 = vpop.f32.mrb[46].mxu0 }
 0x2a8   : > { %v3409_v9 = vadd.f32 %v4581_v17, %v8345_v23  ;;  %v4644_v63 = vpop.f32.mrb[47].mxu0 }
 0x2a9   : > { %v8391_v6 = vadd.f32 %v4642_v41, %v3406_v43  ;;  %v4645_v0 = vadd.f32 %v4644_v63, %v4643_v54 }
 0x2ab   : > { %v8393_v61 = vadd.f32 %v4645_v0, %v3409_v9 }
 0x2af   : > { %v4726_v51 = vpop.f32.mrb[48].mxu0 }
 0x2b0   : > { %v4727_v10 = vpop.f32.mrb[49].mxu0 }
 0x2b1   : > { %v4728_v60 = vadd.f32 %v4727_v10, %v4726_v51  ;;  %v4729_v4 = vpop.f32.mrb[50].mxu0 }
 0x2b2   : > { %v4662_v36 = vpop.f32.mrb[32].mxu1  ;;  %v4730_v45 = vpop.f32.mrb[51].mxu0 }
 0x2b3   : > { %v4663_v20 = vpop.f32.mrb[33].mxu1  ;;  %v4731_v13 = vadd.f32 %v4730_v45, %v4729_v4 }
 0x2b4   : > { %v4664_v38 = vadd.f32 %v4663_v20, %v4662_v36  ;;  %v4665_v7 = vpop.f32.mrb[34].mxu1 }
 0x2b5   : > { %v4666_v59 = vpop.f32.mrb[35].mxu1 }
 0x2b6   : > { %v3544_v19 = vadd.f32 %v4664_v38, %v8349_v29  ;;  %v4667_v62 = vadd.f32 %v4666_v59, %v4665_v7 }
 0x2b8   : > { %v3547_v23 = vadd.f32 %v4667_v62, %v8351_v16  ;;  %v8397_v49 = vadd.f32 %v4728_v60, %v3544_v19 }
 0x2ba   : > { %v8399_v33 = vadd.f32 %v4731_v13, %v3547_v23 }
 0x2bb   : > { %v4668_v18 = vpop.f32.mrb[36].mxu1 }
 0x2bc   : > { %v4669_v11 = vpop.f32.mrb[37].mxu1 }
 0x2bd   : > { %v4670_v14 = vadd.f32 %v4669_v11, %v4668_v18  ;;  %v4671_v30 = vpop.f32.mrb[38].mxu1 }
 0x2be   : > { %v4672_v47 = vpop.f32.mrb[39].mxu1 }
 0x2bf   : > { %v3552_v29 = vadd.f32 %v4670_v14, %v8355_v39  ;;  %v4673_v24 = vadd.f32 %v4672_v47, %v4671_v30 }
 0x2c1   : > { %v3555_v16 = vadd.f32 %v4673_v24, %v8357_v15 }
 0x2c2   : > { %v4732_v57 = vpop.f32.mrb[52].mxu0 }
 0x2c3   : > { %v4733_v58 = vpop.f32.mrb[53].mxu0 }
 0x2c4   : > { %v4734_v37 = vadd.f32 %v4733_v58, %v4732_v57  ;;  %v4735_v42 = vpop.f32.mrb[54].mxu0 }
 0x2c5   : > { %v4736_v27 = vpop.f32.mrb[55].mxu0 }
 0x2c6   : > { %v4737_v22 = vadd.f32 %v4736_v27, %v4735_v42  ;;  %v8403_v46 = vadd.f32 %v4734_v37, %v3552_v29 }
 0x2c8   : > { %v4674_v31 = vpop.f32.mrb[40].mxu1  ;;  %v8405_v52 = vadd.f32 %v4737_v22, %v3555_v16 }
 0x2c9   : > { %v4675_v8 = vpop.f32.mrb[41].mxu1 }
 0x2ca   : > { %v4676_v56 = vadd.f32 %v4675_v8, %v4674_v31  ;;  %v4677_v1 = vpop.f32.mrb[42].mxu1 }
 0x2cb   : > { %v4678_v55 = vpop.f32.mrb[43].mxu1 }
 0x2cc   : > { %v3560_v39 = vadd.f32 %v4676_v56, %v8361_v3  ;;  %v4679_v35 = vadd.f32 %v4678_v55, %v4677_v1 }
 0x2ce   : > { %v3563_v15 = vadd.f32 %v4679_v35, %v8363_v34 }
 0x2d1   : > { %v4738_v25 = vpop.f32.mrb[56].mxu0 }
 0x2d2   : > { %v4739_v26 = vpop.f32.mrb[57].mxu0  ;;  %v4680_v40 = vpop.f32.mrb[44].mxu1 }
 0x2d3   : > { %v4740_v28 = vadd.f32 %v4739_v26, %v4738_v25  ;;  %v4741_v43 = vpop.f32.mrb[58].mxu0  ;;  %v4681_v9 = vpop.f32.mrb[45].mxu1 }
 0x2d4   : > { %v4742_v5 = vpop.f32.mrb[59].mxu0  ;;  %v4682_v54 = vadd.f32 %v4681_v9, %v4680_v40  ;;  %v4683_v63 = vpop.f32.mrb[46].mxu1 }
 0x2d5   : > { %v4743_v17 = vadd.f32 %v4742_v5, %v4741_v43  ;;  %v8409_v41 = vadd.f32 %v4740_v28, %v3560_v39  ;;  %v4684_v36 = vpop.f32.mrb[47].mxu1 }
 0x2d6   : > { %v3568_v3 = vadd.f32 %v4682_v54, %v8367_v12  ;;  %v4685_v38 = vadd.f32 %v4684_v36, %v4683_v63 }
 0x2d7   : > { %v8411_v0 = vadd.f32 %v4743_v17, %v3563_v15 }
 0x2d8   : > { %v3571_v34 = vadd.f32 %v4685_v38, %v8369_v32 }
 0x2de   : > { %v4744_v20 = vpop.f32.mrb[60].mxu0 }
 0x2df   : > { %v4745_v7 = vpop.f32.mrb[61].mxu0 }
 0x2e0   : > { %v4746_v59 = vadd.f32 %v4745_v7, %v4744_v20  ;;  %v4747_v19 = vpop.f32.mrb[62].mxu0 }
 0x2e1   : > { %v4748_v51 = vpop.f32.mrb[63].mxu0 }
 0x2e2   : > { %v4749_v62 = vadd.f32 %v4748_v51, %v4747_v19  ;;  %v8415_v60 = vadd.f32 %v4746_v59, %v3568_v3 }
 0x2e4   : > { %v8417_v13 = vadd.f32 %v4749_v62, %v3571_v34 }
 0x2e5   : > { %v4686_v10 = vpop.f32.mrb[48].mxu1 }
 0x2e6   : > { %v4687_v23 = vpop.f32.mrb[49].mxu1 }
 0x2e7   : > { %v4688_v4 = vadd.f32 %v4687_v23, %v4686_v10  ;;  %v4689_v45 = vpop.f32.mrb[50].mxu1 }
 0x2e8   : > { %v4690_v18 = vpop.f32.mrb[51].mxu1 }
 0x2e9   : > { %v3576_v12 = vadd.f32 %v4688_v4, %v8373_v21  ;;  %v4691_v14 = vadd.f32 %v4690_v18, %v4689_v45 }
 0x2eb   : > { %v4750_v11 = vpop.f32.mrb[64].mxu0  ;;  %v3579_v32 = vadd.f32 %v4691_v14, %v8375_v2 }
 0x2ec   : > { %v4751_v30 = vpop.f32.mrb[65].mxu0 }
 0x2ed   : > { %v4752_v47 = vadd.f32 %v4751_v30, %v4750_v11  ;;  %v4753_v29 = vpop.f32.mrb[66].mxu0  ;;  %v4692_v58 = vpop.f32.mrb[52].mxu1 }
 0x2ee   : > { %v4754_v57 = vpop.f32.mrb[67].mxu0  ;;  %v4693_v16 = vpop.f32.mrb[53].mxu1 }
 0x2ef   : > { %v4755_v24 = vadd.f32 %v4754_v57, %v4753_v29  ;;  %v8421_v37 = vadd.f32 %v4752_v47, %v3576_v12  ;;  %v4694_v42 = vadd.f32 %v4693_v16, %v4692_v58  ;;  %v4695_v27 = vpop.f32.mrb[54].mxu1 }
 0x2f0   : > { %v4696_v31 = vpop.f32.mrb[55].mxu1 }
 0x2f1   : > { %v8423_v22 = vadd.f32 %v4755_v24, %v3579_v32  ;;  %v3584_v21 = vadd.f32 %v4694_v42, %v8379_v50  ;;  %v4697_v8 = vadd.f32 %v4696_v31, %v4695_v27 }
 0x2f3   : > { %v3587_v1 = vadd.f32 %v4697_v8, %v8381_v53 }
 0x2f5   : > { %v4756_v56 = vpop.f32.mrb[68].mxu0  ;;  %v4698_v25 = vpop.f32.mrb[56].mxu1 }
 0x2f6   : > { %v4757_v55 = vpop.f32.mrb[69].mxu0  ;;  %v4699_v26 = vpop.f32.mrb[57].mxu1 }
 0x2f7   : > { %v4758_v2 = vadd.f32 %v4757_v55, %v4756_v56  ;;  %v4759_v39 = vpop.f32.mrb[70].mxu0  ;;  %v4700_v15 = vadd.f32 %v4699_v26, %v4698_v25  ;;  %v4701_v43 = vpop.f32.mrb[58].mxu1 }
 0x2f8   : > { %v4760_v35 = vpop.f32.mrb[71].mxu0  ;;  %v4702_v17 = vpop.f32.mrb[59].mxu1 }
 0x2f9   : > { %v4761_v28 = vadd.f32 %v4760_v35, %v4759_v39  ;;  %v3681_v5 = vadd.f32 %v4758_v2, %v3584_v21  ;;  %v3592_v40 = vadd.f32 %v4700_v15, %v8385_v48  ;;  %v4703_v9 = vadd.f32 %v4702_v17, %v4701_v43 }
 0x2fb   : > { %v3684_v54 = vadd.f32 %v4761_v28, %v3587_v1  ;;  %v3595_v50 = vadd.f32 %v4703_v9, %v8387_v44 }
 0x2fd   : > { %v4704_v63 = vpop.f32.mrb[60].mxu1 }
 0x2fe   : > { %v4705_v53 = vpop.f32.mrb[61].mxu1 }
 0x2ff   : > { %v4706_v20 = vadd.f32 %v4705_v53, %v4704_v63  ;;  %v4707_v38 = vpop.f32.mrb[62].mxu1 }
 0x300   : > { %v4762_v36 = vpop.f32.mrb[72].mxu0  ;;  %v4708_v34 = vpop.f32.mrb[63].mxu1 }
 0x301   : > { %v4763_v3 = vpop.f32.mrb[73].mxu0  ;;  %v3600_v51 = vadd.f32 %v4706_v20, %v8391_v6  ;;  %v4709_v62 = vadd.f32 %v4708_v34, %v4707_v38 }
 0x302   : > { %v4764_v7 = vadd.f32 %v4763_v3, %v4762_v36  ;;  %v4765_v59 = vpop.f32.mrb[74].mxu0 }
 0x303   : > { %v4766_v19 = vpop.f32.mrb[75].mxu0  ;;  %v3603_v48 = vadd.f32 %v4709_v62, %v8393_v61 }
 0x304   : > { %v4767_v10 = vadd.f32 %v4766_v19, %v4765_v59  ;;  %v3689_v23 = vadd.f32 %v4764_v7, %v3592_v40 }
 0x306   : > { %v8431_v4 = vadd.f32 %v4767_v10, %v3595_v50 }
 0x307   : > { %v4856_v44 = vpop.f32.mrb[64].mxu1 }
 0x308   : > { %v4768_v45 = vpop.f32.mrb[76].mxu0  ;;  %v3746_v18 = vadd.f32 %v4856_v44, %v8403_v46  ;;  %v3737_v12 = vpop.f32.mrb[65].mxu1 }
 0x309   : > { %v4769_v11 = vpop.f32.mrb[77].mxu0  ;;  %v3738_v14 = vadd.f32 %v3737_v12, %v8397_v49  ;;  %v4857_v30 = vpop.f32.mrb[66].mxu1 }
 0x30a   : > { %v4770_v47 = vadd.f32 %v4769_v11, %v4768_v45  ;;  %v4771_v32 = vpop.f32.mrb[78].mxu0  ;;  %v3749_v6 = vadd.f32 %v4857_v30, %v8405_v52  ;;  %v3740_v29 = vpop.f32.mrb[67].mxu1  ;;  %v3802_v58 = vmax.f32 %v3746_v18, 0.0  ;;  %v5113_v18 = vld [vmem:[%s5572_s8 + $0x8] sm:$0xff]   ;;  %v5114_v11 = vld [vmem:[%s5572_s8] sm:$0xff]  }
 0x30b   : > { %v4772_v57 = vpop.f32.mrb[79].mxu0  ;;  %v3741_v24 = vadd.f32 %v3740_v29, %v8399_v33  ;;  %v3800_v27 = vmax.f32 %v3738_v14, 0.0  ;;  %v3994_v12 = vunpack.c.l.bf16 %v5113_v18  ;;  %v3992_v14 = vunpack.c.l.bf16 %v5114_v11 }
 0x30c   : > { %v4773_v61 = vadd.f32 %v4772_v57, %v4771_v32  ;;  %v3803_v16 = vmax.f32 %v3749_v6, 0.0  ;;  %v3697_v42 = vadd.f32 %v4770_v47, %v3600_v51  ;;  %v3995_v32 = vunpack.c.h.bf16 %v5113_v18 }
 0x30d   : > { %v3801_v31 = vmax.f32 %v3741_v24, 0.0  ;;  %v3993_v6 = vunpack.c.h.bf16 %v5114_v11 }
 0x30e   : > { %v3817_v46 = vpack.c.bf16 %v3803_v16, %v3802_v58  ;;  %v3700_v21 = vadd.f32 %v4773_v61, %v3603_v48 }
 0x30f   : > { %v3816_v8 = vpack.c.bf16 %v3801_v31, %v3800_v27  ;;  %v4860_v56 = vpop.f32.mrb[68].mxu1 }
 0x310   : > { %v3762_v49 = vadd.f32 %v4860_v56, %v8415_v60  ;;  %v3753_v1 = vpop.f32.mrb[69].mxu1 }
 0x311   : > { %v3754_v55 = vadd.f32 %v3753_v1, %v8409_v41  ;;  %v4861_v52 = vpop.f32.mrb[70].mxu1  ;;  %4886 = vmatprep.mubr.bf16.mxu0 %v3816_v8  ;;  %v5115_v8 = vld [vmem:[%s5572_s8 + $0x18] sm:$0xff]  }
 0x312   : > { %v3765_v2 = vadd.f32 %v4861_v52, %v8417_v13  ;;  %v3756_v33 = vpop.f32.mrb[71].mxu1  ;;  %4887 = vmatmul.mubr.bf16.vlgmr.msra.gmra.mrb[80].mxu0 %v3817_v46  ;;  %v3806_v25 = vmax.f32 %v3762_v49, 0.0  ;;  %v3998_v56 = vunpack.c.l.bf16 %v5115_v8  ;;  %v5116_v52 = vld [vmem:[%s5572_s8 + $0x10] sm:$0xff]  }
 0x313   : > { %v3757_v39 = vadd.f32 %v3756_v33, %v8411_v0  ;;  %v3804_v26 = vmax.f32 %v3754_v55, 0.0 }
 0x314   : > { %v3807_v35 = vmax.f32 %v3765_v2, 0.0  ;;  %v3996_v2 = vunpack.c.l.bf16 %v5116_v52 }
 0x315   : > { %v3805_v28 = vmax.f32 %v3757_v39, 0.0 }
 0x316   : > { %v3819_v15 = vpack.c.bf16 %v3807_v35, %v3806_v25  ;;  %v3999_v35 = vunpack.c.h.bf16 %v5115_v8 }
 0x317   : > { %v3818_v43 = vpack.c.bf16 %v3805_v28, %v3804_v26  ;;  %v4864_v17 = vpop.f32.mrb[72].mxu1 }
 0x318   : > { %v3778_v40 = vadd.f32 %v4864_v17, %v3681_v5  ;;  %v3769_v60 = vpop.f32.mrb[73].mxu1 }
 0x319   : > { %v3770_v9 = vadd.f32 %v3769_v60, %v8421_v37  ;;  %v4865_v41 = vpop.f32.mrb[74].mxu1  ;;  %4890 = vmatprep.mubr.bf16.mxu0 %v3818_v43  ;;  %v3997_v43 = vunpack.c.h.bf16 %v5116_v52 }
 0x31a   : > { %v3781_v50 = vadd.f32 %v4865_v41, %v3684_v54  ;;  %v3772_v63 = vpop.f32.mrb[75].mxu1  ;;  %4891 = vmatmul.mubr.bf16.gmra.mrb[84].mxu0 %v3819_v15  ;;  %v3810_v36 = vmax.f32 %v3778_v40, 0.0 }
 0x31b   : > { %v3773_v13 = vadd.f32 %v3772_v63, %v8423_v22  ;;  %v3808_v53 = vmax.f32 %v3770_v9, 0.0 }
 0x31c   : > { %v3811_v0 = vmax.f32 %v3781_v50, 0.0 }
 0x31d   : > { %v3809_v3 = vmax.f32 %v3773_v13, 0.0 }
 0x31e   : > { %v3821_v20 = vpack.c.bf16 %v3811_v0, %v3810_v36  ;;  %v5117_v0 = vld [vmem:[%s5572_s8 + $0x28] sm:$0xff]  }
 0x31f   : > { %v3820_v38 = vpack.c.bf16 %v3809_v3, %v3808_v53  ;;  %v4868_v7 = vpop.f32.mrb[76].mxu1  ;;  %v4002_v53 = vunpack.c.l.bf16 %v5117_v0 }
 0x320   : > { %v3794_v59 = vadd.f32 %v4868_v7, %v3697_v42  ;;  %v3785_v34 = vpop.f32.mrb[77].mxu1  ;;  %v5118_v7 = vld [vmem:[%s5572_s8 + $0x20] sm:$0xff]  }
 0x321   : > { %v3786_v5 = vadd.f32 %v3785_v34, %v3689_v23  ;;  %v4869_v19 = vpop.f32.mrb[78].mxu1  ;;  %4894 = vmatprep.mubr.bf16.mxu1 %v3820_v38  ;;  %v8447_v23 = vld [vmem:[%s8542_s6] ss:$0 sm:$0xff] }
 0x322   : > { %v3797_v37 = vadd.f32 %v4869_v19, %v3700_v21  ;;  %v3788_v54 = vpop.f32.mrb[79].mxu1  ;;  %4895 = vmatmul.mubr.bf16.vlgmr.msra.gmra.mrb[80].mxu1 %v3821_v20  ;;  %v3814_v22 = vmax.f32 %v3794_v59, 0.0  ;;  %v4000_v59 = vunpack.c.l.bf16 %v5118_v7 }
 0x323   : > { %v3789_v51 = vadd.f32 %v3788_v54, %v8431_v4  ;;  %v3812_v10 = vmax.f32 %v3786_v5, 0.0 }
 0x324   : > { %v3815_v62 = vmax.f32 %v3797_v37, 0.0  ;;  %v4003_v37 = vunpack.c.h.bf16 %v5117_v0 }
 0x325   : > { %v3813_v48 = vmax.f32 %v3789_v51, 0.0 }
 0x326   : > { %v3823_v44 = vpack.c.bf16 %v3815_v62, %v3814_v22  ;;  %v4001_v62 = vunpack.c.h.bf16 %v5118_v7 }
 0x327   : > { %v3822_v45 = vpack.c.bf16 %v3813_v48, %v3812_v10 }
 0x329   : > { %4898 = vmatprep.mubr.bf16.mxu1 %v3822_v45 }
 0x32a   : > { %4899 = vmatmul.mubr.bf16.gmra.mrb[84].mxu1 %v3823_v44 }
 0x3e5   : > { %v4888_v30 = vpop.f32.mrb[80].mxu0 }
 0x3e6   : > { %v3938_v4 = vadd.f32 %v4888_v30, %v8447_v23  ;;  %v3929_v47 = vpop.f32.mrb[81].mxu0 }
 0x3e7   : > { %v3930_v29 = vadd.f32 %v8447_v23, %v3929_v47  ;;  %v4889_v57 = vpop.f32.mrb[82].mxu0 }
 0x3e8   : > { %v4010_v24 = vadd.f32 %v3994_v12, %v3938_v4  ;;  %v3941_v61 = vadd.f32 %v4889_v57, %v8447_v23  ;;  %v3932_v58 = vpop.f32.mrb[83].mxu0  ;;  %v5119_v4 = vld [vmem:[%s5572_s8 + $0x38] sm:$0xff]   ;;  %v5120_v57 = vld [vmem:[%s5572_s8 + $0x30] sm:$0xff]   ;;  %s5318_s8 = smov [#allocation12]  }
 0x3e9   : > { %v4008_v16 = vadd.f32 %v3992_v14, %v3930_v29  ;;  %v3933_v42 = vadd.f32 %v8447_v23, %v3932_v58  ;;  %v4006_v47 = vunpack.c.l.bf16 %v5119_v4  ;;  %s5239_s30 = sshll.u32 %s5318_s8, 4  ;;  %s5240_s30 = int_to_ptr.vmem [resolvable:$false] %s5239_s30 }
 0x3ea   : > { %v4011_v27 = vadd.f32 %v3995_v32, %v3941_v61  ;;  %v4026_v46 = vmax.f32 %v4010_v24, 0.0  ;;  %v4004_v24 = vunpack.c.l.bf16 %v5120_v57  ;;  %s5241_s9 = scalar_lea.vmem %s5240_s30, 2048  ;;  %p5242_p12 = scmp.lt.s32.totalorder %s8490_s21, %s5240_s30 }
 0x3eb   : > { %v4009_v31 = vadd.f32 %v3993_v6, %v3933_v42  ;;  %v4024_v49 = vmax.f32 %v4008_v16, 0.0  ;;  %v4007_v42 = vunpack.c.h.bf16 %v5119_v4  ;;  %p5243_p1 = scmp.lt.s32.totalorder %s5241_s9, %s5235_s11 }
 0x3ec   : > { %v4027_v21 = vmax.f32 %v4011_v27, 0.0 }
 0x3ed   : > { %v4025_v1 = vmax.f32 %v4009_v31, 0.0  ;;  %v4892_v55 = vpop.f32.mrb[84].mxu0  ;;  %p5244_p2 = por %p5243_p1, %p5242_p12 }
 0x3ee   : > { %v4463_v33 = vpack.c.bf16 %v4027_v21, %v4026_v46  ;;  %v3954_v39 = vadd.f32 %v4892_v55, %v8447_v23  ;;  %v3945_v25 = vpop.f32.mrb[85].mxu0  ;;  %v4005_v21 = vunpack.c.h.bf16 %v5120_v57 }
 0x3ef   : > { %v4458_v26 = vpack.c.bf16 %v4025_v1, %v4024_v49  ;;  %v3946_v28 = vadd.f32 %v8447_v23, %v3945_v25  ;;  %v4893_v15 = vpop.f32.mrb[86].mxu0  ;;  %p5245_p4 = pnand %p5244_p2, %p5238_p7 }
 0x3f0   : > { %4495 = vst [vmem:[%s8461_s12 + $0x8] sm:$0xff] %v4463_v33   ;;  %v4014_v17 = vadd.f32 %v3998_v56, %v3954_v39  ;;  %v3957_v40 = vadd.f32 %v4893_v15, %v8447_v23  ;;  %v3948_v60 = vpop.f32.mrb[87].mxu0 }
 0x3f1   : > { %4459 = vst [vmem:[%s8461_s12] sm:$0xff] %v4458_v26   ;;  %v4012_v9 = vadd.f32 %v3996_v2, %v3946_v28  ;;  %v3949_v41 = vadd.f32 %v8447_v23, %v3948_v60 }
 0x3f2   : > { %v4015_v50 = vadd.f32 %v3999_v35, %v3957_v40  ;;  %v4030_v13 = vmax.f32 %v4014_v17, 0.0 }
 0x3f3   : > { %v4013_v63 = vadd.f32 %v3997_v43, %v3949_v41  ;;  %v4028_v3 = vmax.f32 %v4012_v9, 0.0 }
 0x3f4   : > { %v4031_v36 = vmax.f32 %v4015_v50, 0.0 }
 0x3f5   : > { %v4029_v20 = vmax.f32 %v4013_v63, 0.0  ;;  %v4896_v38 = vpop.f32.mrb[80].mxu1 }
 0x3f6   : > { %v4473_v34 = vpack.c.bf16 %v4031_v36, %v4030_v13  ;;  %v3970_v5 = vadd.f32 %v4896_v38, %v8447_v23  ;;  %v3961_v19 = vpop.f32.mrb[81].mxu1 }
 0x3f7   : > { %v4468_v54 = vpack.c.bf16 %v4029_v20, %v4028_v3  ;;  %v3962_v51 = vadd.f32 %v8447_v23, %v3961_v19  ;;  %v4897_v22 = vpop.f32.mrb[82].mxu1 }
 0x3f8   : > { %4497 = vst [vmem:[%s8461_s12 + $0x18] sm:$0xff] %v4473_v34   ;;  %v4018_v10 = vadd.f32 %v4002_v53, %v3970_v5  ;;  %v3973_v48 = vadd.f32 %v4897_v22, %v8447_v23  ;;  %v3964_v44 = vpop.f32.mrb[83].mxu1 }
 0x3f9   : > { %4496 = vst [vmem:[%s8461_s12 + $0x10] sm:$0xff] %v4468_v54   ;;  %v4016_v45 = vadd.f32 %v4000_v59, %v3962_v51  ;;  %v3965_v18 = vadd.f32 %v8447_v23, %v3964_v44 }
 0x3fa   : > { %v4019_v12 = vadd.f32 %v4003_v37, %v3973_v48  ;;  %v4034_v14 = vmax.f32 %v4018_v10, 0.0 }
 0x3fb   : > { %v4017_v11 = vadd.f32 %v4001_v62, %v3965_v18  ;;  %v4032_v32 = vmax.f32 %v4016_v45, 0.0 }
 0x3fc   : > { %v4035_v30 = vmax.f32 %v4019_v12, 0.0 }
 0x3fd   : > { %v4033_v6 = vmax.f32 %v4017_v11, 0.0  ;;  %v4900_v29 = vpop.f32.mrb[84].mxu1 }
 0x3fe   : > { %v4483_v61 = vpack.c.bf16 %v4035_v30, %v4034_v14  ;;  %v3986_v58 = vadd.f32 %v4900_v29, %v8447_v23  ;;  %v3977_v16 = vpop.f32.mrb[85].mxu1 }
 0x3ff   : > { %v4478_v27 = vpack.c.bf16 %v4033_v6, %v4032_v32  ;;  %v3978_v31 = vadd.f32 %v8447_v23, %v3977_v16  ;;  %v4901_v46 = vpop.f32.mrb[86].mxu1 }
 0x400   : > { %4499 = vst [vmem:[%s8461_s12 + $0x28] sm:$0xff] %v4483_v61   ;;  %v4022_v8 = vadd.f32 %v4006_v47, %v3986_v58  ;;  %v3989_v56 = vadd.f32 %v4901_v46, %v8447_v23  ;;  %v3980_v49 = vpop.f32.mrb[87].mxu1 }
 0x401   : > { %4498 = vst [vmem:[%s8461_s12 + $0x20] sm:$0xff] %v4478_v27   ;;  %v4020_v1 = vadd.f32 %v4004_v24, %v3978_v31  ;;  %v3981_v55 = vadd.f32 %v8447_v23, %v3980_v49 }
 0x402   : > { %v4023_v52 = vadd.f32 %v4007_v42, %v3989_v56  ;;  %v4038_v33 = vmax.f32 %v4022_v8, 0.0 }
 0x403   : > { %v4021_v2 = vadd.f32 %v4005_v21, %v3981_v55  ;;  %v4036_v25 = vmax.f32 %v4020_v1, 0.0 }
 0x404   : > { %v4039_v39 = vmax.f32 %v4023_v52, 0.0 }
 0x405   : > { %v4037_v35 = vmax.f32 %v4021_v2, 0.0 }
 0x406   : > { %v4493_v26 = vpack.c.bf16 %v4039_v39, %v4038_v33 }
 0x407   : > { %v4488_v23 = vpack.c.bf16 %v4037_v35, %v4036_v25 }
 0x408   : > { %4501 = vst [vmem:[%s8461_s12 + $0x38] sm:$0xff] %v4493_v26  }
 0x409   : > { %4500 = vst [vmem:[%s8461_s12 + $0x30] sm:$0xff] %v4488_v23  }
 0x40a   : > { %5248 = shalt.err (!%p5245_p4)
}
 0x40b   : > { %s5249_s13 = scalar_lea.hbm %s8488_s23, 1024  ;;  %s5253_s14 = scalar_lea.hbm %s8543_s7, 2048 }
 0x40c   : > { %p5250_p9 = scmp.ne.s32.totalorder %s8488_s23, %s5249_s13  ;;  %p5254_p8 = scmp.lt.u32.totalorder %s8488_s23, %s8543_s7 }
 0x40d   : > { %p5255_p13 = scmp.lt.u32.totalorder %s5253_s14, %s5249_s13  ;;  %p5257_p10 = scmp.lt.u32.totalorder %s5249_s13, %s8488_s23 }
 0x40e   : > { %p5251_p0 = pnand %p5250_p9, %p5515_p5 }
 0x40f   : > { %p5256_p6 = por %p5255_p13, %p5254_p8 }
 0x410   : > { %p5252_p11 = pneg %p5251_p0 }
 0x411   : > { %p5258_p3 = por %p5257_p10, %p5256_p6 }
 0x413   : > { %p5259_p7 = pnand %p5258_p3, %p5252_p11 }
 0x415   : > { %5262 = shalt.err (!%p5259_p7)
}
 0x416   : > { %s5319_s16 = smov 64   ;;  %s5320_s29 = smov 4  }
 0x417   : > { %4932 = dma.vmem_to_hbm [thread:$0]  (%p5515_p5), %s8490_s21, 1024, %s8488_s23, %s4121_s28, %s5319_s16, %s5319_s16, %s5320_s29  }
 0x418 PF: > { %s9296_s11 = sld [smem:[#allocation17_spill]]  ;;  %s4149_s8 = sand.u32 1, %s5297_s24  }
 0x419   : > { %p9298_p1 = scmp.ge.s32.totalorder %s5309_s27, 2  ;;  %s4150_s30 = scalar_lea.sflag [#allocation6], %s4149_s8 }
 0x41e   : > { %p9297_p12 = scmp.ne.s32.totalorder %s9296_s11, 0 }
 0x420   : > { %p4949_p2 = pnand %p9298_p1, %p9297_p12 }
 0x422   : > { %5292 = dma.done.wait (!%p4949_p2), %s4150_s30, 1024  }
 0x423   : > { %5294 = vsyncadd (!%p4949_p2), %s4150_s30, 4294966272  ;;  %p22_p4 = scmp.ge.s32.totalorder %s5501_s22, 4   ;;  %s9299_s24 = smov %s5301_s25 }
 0x424   : > { %s9300_s25 = smov %s5305_s26  ;;  %s9301_s26 = smov %s5511_s18 }
 0x425   : > { %s9302_s27 = smov %s5501_s22  ;;  %24 = sbr.rel (!%p22_p4) target bundleno = 7 (0x7), region = 105 }
 0x42c   :  { %4155 = vsyncpa [#allocation5], 1 }
 0x42d   :  { %4157 = vsyncpa [#allocation5 + $0x1], 1 }
 0x42e   :  { %4158 = vsyncpa [#allocation8], 1 }
 0x42f   :  { %4159 = vsyncpa [#allocation11], 1 }
 0x430   :  { %4160 = vsyncpa [#allocation6], 1 }
 0x431   :  { %4162 = vsyncpa [#allocation6 + $0x1], 1 }

</bundles_post_ra>
